<compile_context>
chip_gen: v5e
topology: v5e:2x2
jax: 0.10.0
libtpu: 0.0.40
codegen_flags: <defaults>
</compile_context>

<pallas_src>
import numpy as np

import jax
import jax.numpy as jnp
from jax import lax
from jax.experimental import pallas as pl
from jax.experimental.pallas import tpu as pltpu

LANE = 128  # f32 lane width; all channel dims are zero-padded to this.


# ----------------------------------------------------------------------------
# small static helpers
# ----------------------------------------------------------------------------
def _apply_act(v, act):
    if act == "relu":
        return jnp.maximum(v, 0.0)
    if act == "tanh":
        return jnp.tanh(v)
    return v


def _deconv_out(h_in, k, s, p):
    return (h_in - 1) * s - 2 * p + k


def _phase_pad(h_in, k, s, p):
    """Symmetric zero-pad (in un-dilated input pixels) so every phase's tap
    windows of the phase-decomposed transposed conv stay in bounds."""
    T = k // s
    h_out = _deconv_out(h_in, k, s, p)
    pad = 0
    for a in range(s):
        q = (a + p) // s
        m_a = len(range(a, h_out, s))
        pad = max(pad, (T - 1) - q)                  # top reach (ih < 0)
        pad = max(pad, (m_a - 1) + q - (h_in - 1))   # bottom reach (ih >= H)
    return pad


def _const_index_map(ndim):
    zeros = (0,) * ndim
    return lambda n: zeros


# ----------------------------------------------------------------------------
# one-time (hoisted) weight packing into lane-dense per-phase matmul weights
# ----------------------------------------------------------------------------
def _pack_subpixel(w_pt, bias, cpad):
    """k == stride, padding == 0: ConvTranspose2d is a per-pixel matmul
    x(H,W,Ci) @ W(Ci, s*s*Co) with the s*s output phases stacked along the
    (lane-dense) last dim."""
    ci, co, k, k2 = w_pt.shape
    assert k == k2
    s = k
    wp = np.zeros((cpad, s * s * cpad), np.float32)
    bp = np.zeros((1, 1, s * s * cpad), np.float32)
    w_np = np.asarray(w_pt)
    b_np = np.asarray(bias)
    for a in range(s):
        for b in range(s):
            base = (a * s + b) * cpad
            wp[:ci, base:base + co] = w_np[:, :, a, b]
            bp[0, 0, base:base + co] = b_np
    return jnp.asarray(wp), jnp.asarray(bp)


def _pack_phase(w_pt, bias, stride, padding, cpad):
    """General stride-s phase decomposition (requires k % s == 0): for each
    output phase (a, b) the transposed conv is a dense T x T (T = k // s)
    stride-1 conv over the UN-dilated input; its T*T taps are folded into one
    deep contraction of width T*T*cpad."""
    ci, co, k, k2 = w_pt.shape
    assert k == k2 and k % stride == 0
    s, p, T = stride, padding, k // stride
    wp = np.zeros((s, s, T * T * cpad, cpad), np.float32)
    bp = np.zeros((1, 1, cpad), np.float32)
    w_np = np.asarray(w_pt)
    bp[0, 0, :co] = np.asarray(bias)
    for a in range(s):
        rh = (a + p) % s
        for b in range(s):
            rw = (b + p) % s
            for j in range(T):
                for i in range(T):
                    tap = j * T + i
                    wp[a, b, tap * cpad:tap * cpad + ci, :co] = (
                        w_np[:, :, rh + s * j, rw + s * i])
    return jnp.asarray(wp), jnp.asarray(bp)


# ----------------------------------------------------------------------------
# fused generator kernel (all layers, one batch element per grid step)
# ----------------------------------------------------------------------------
def _build_kernel(layers, cpad):
    L = len(layers)

    def kernel(*refs):
        x_ref = refs[0]
        w_refs = refs[1:1 + L]
        b_refs = refs[1 + L:1 + 2 * L]
        o_ref = refs[1 + 2 * L]
        bufs = refs[2 + 2 * L:]          # per-layer padded input buffers (VMEM)

        # Stage this batch element's latent block into layer 0's input buffer.
        lay0 = layers[0]
        P0, H0, W0 = lay0["pad"], lay0["h_in"], lay0["w_in"]
        if P0 > 0:
            bufs[0][...] = jnp.zeros_like(bufs[0])
            bufs[0][P0:P0 + H0, P0:P0 + W0, :] = x_ref[0]
        else:
            bufs[0][...] = x_ref[0]

        for li, lay in enumerate(layers):
            is_last = li == L - 1
            buf = bufs[li]
            P, H, W = lay["pad"], lay["h_in"], lay["w_in"]
            s, k, p, act = lay["s"], lay["k"], lay["p"], lay["act"]

            if not is_last:
                nxt = bufs[li + 1]
                Pn = layers[li + 1]["pad"]
                if Pn > 0:
                    # only the pad ring needs zeroing, but the buffer is tiny
                    nxt[...] = jnp.zeros_like(nxt)

            if lay["kind"] == "subpixel":
                # one deep, lane-dense matmul; output phases stacked on lanes
                x = buf[P:P + H, P:P + W, :] if P > 0 else buf[...]
                r = lax.dot_general(x, w_refs[li][...], (((2,), (0,)), ((), ())),
                                    preferred_element_type=jnp.float32)
                r = _apply_act(r + b_refs[li][...], act)       # (H, W, s*s*C)
                if is_last:
                    # phase-packed, lane-dense output block; depth-to-space of
                    # this tiny tensor happens in the wrapper.
                    o_ref[0] = r
                else:
                    # interleave the s*s phases into the next layer's buffer
                    for m in range(H):
                        for n in range(W):
                            for a in range(s):
                                for b in range(s):
                                    base = (a * s + b) * cpad
                                    orow = Pn + s * m + a
                                    ocol = Pn + s * n + b
                                    nxt[orow:orow + 1, ocol:ocol + 1, :] = (
                                        r[m:m + 1, n:n + 1, base:base + cpad])
            else:  # "phase"  (never the last layer; asserted at build time)
                T = k // s
                for a in range(s):
                    qh = (a + p) // s
                    Ma = len(range(a, lay["h_out"], s))
                    for b in range(s):
                        qw = (b + p) // s
                        Nb = len(range(b, lay["w_out"], s))
                        # read the T*T tap windows straight from the VMEM ref
                        # and fold them into ONE deep (K = T*T*cpad) contraction
                        wins = []
                        for j in range(T):
                            r0 = P + qh - j
                            for i in range(T):
                                c0 = P + qw - i
                                wins.append(buf[r0:r0 + Ma, c0:c0 + Nb, :])
                        patch = jnp.concatenate(wins, axis=-1)   # (Ma, Nb, T*T*C)
                        rr = lax.dot_general(
                            patch, w_refs[li][a, b], (((2,), (0,)), ((), ())),
                            preferred_element_type=jnp.float32)  # (Ma, Nb, C)
                        rr = _apply_act(rr + b_refs[li][...], act)
                        # interleave this phase into the next layer's buffer
                        for m in range(Ma):
                            for n in range(Nb):
                                orow = Pn + s * m + a
                                ocol = Pn + s * n + b
                                nxt[orow:orow + 1, ocol:ocol + 1, :] = (
                                    rr[m:m + 1, n:n + 1, :])

    return kernel


# ----------------------------------------------------------------------------
# ConvGenerator (forward pass) with deterministic synthetic parameters
# ----------------------------------------------------------------------------
class ConvGeneratorPallas:
    def __init__(self, key, *, nz, nfeatures, kernels, strides, res, cpad=LANE):
        self.nz = nz
        self.res = res
        self.cpad = cpad
        self.z_res = res // (2 ** (1 + len(nfeatures)))

        # ---- raw parameters in PyTorch ConvTranspose2d layout (Ci, Co, KH, KW) ----
        self.params = []
        c_in = nz
        for i, nc in enumerate(nfeatures):
            key, kw_, kb_ = jax.random.split(key, 3)
            w = 0.1 * jax.random.normal(kw_, (c_in, nc, kernels[i], kernels[i]), jnp.float32)
            b = 0.05 * jax.random.normal(kb_, (nc,), jnp.float32)
            pad = 1 if i > 0 else 0
            self.params.append(dict(w=w, b=b, stride=strides[i], pad=pad, act="relu"))
            c_in = nc
        key, kw_, kb_ = jax.random.split(key, 3)
        w = 0.1 * jax.random.normal(kw_, (c_in, 3, 2, 2), jnp.float32)
        b = 0.05 * jax.random.normal(kb_, (3,), jnp.float32)
        self.params.append(dict(w=w, b=b, stride=strides[-1], pad=0, act="tanh"))

        # ---- one-time packing into lane-dense (cpad=128) per-phase weights ----
        self.layers = []
        h = self.z_res
        for prm in self.params:
            ci, co, k, _ = prm["w"].shape
            s, p = prm["stride"], prm["pad"]
            assert ci <= cpad and co <= cpad
            h_out = _deconv_out(h, k, s, p)
            if k == s and p == 0:
                kind = "subpixel"
                wq, bq = _pack_subpixel(prm["w"], prm["b"], cpad)
                padn = 0
            else:
                # TODO(synk): phase decomposition assumes k % stride == 0 (true
                # for every config this module produces: kernels 2 / 4, stride 2).
                assert k % s == 0
                kind = "phase"
                wq, bq = _pack_phase(prm["w"], prm["b"], s, p, cpad)
                padn = _phase_pad(h, k, s, p)
            self.layers.append(dict(kind=kind, k=k, s=s, p=p, act=prm["act"],
                                    h_in=h, w_in=h, h_out=h_out, w_out=h_out,
                                    pad=padn, w=wq, b=bq))
            h = h_out

        # The module's output deconv is ConvTranspose2d(c_in, 3, 2, stride=2):
        # always a pure sub-pixel layer, emitted phase-packed by the kernel.
        assert self.layers[-1]["kind"] == "subpixel"
        self.out_s = self.layers[-1]["s"]
        self._calls = {}

    # ------------------------------------------------------------------ #
    def _build_call(self, nb):
        layers, cpad = self.layers, self.cpad
        last = layers[-1]
        hh, ww, s = last["h_in"], last["w_in"], last["s"]

        in_specs = [pl.BlockSpec((1, layers[0]["h_in"], layers[0]["w_in"], cpad),
                                 lambda n: (n, 0, 0, 0))]
        for lay in layers:           # weights: full blocks, VMEM-resident
            in_specs.append(pl.BlockSpec(lay["w"].shape, _const_index_map(lay["w"].ndim)))
        for lay in layers:           # biases
            in_specs.append(pl.BlockSpec(lay["b"].shape, _const_index_map(lay["b"].ndim)))

        out_specs = pl.BlockSpec((1, hh, ww, s * s * cpad), lambda n: (n, 0, 0, 0))
        out_shape = jax.ShapeDtypeStruct((nb, hh, ww, s * s * cpad), jnp.float32)

        scratch_shapes = [
            pltpu.VMEM((lay["h_in"] + 2 * lay["pad"],
                        lay["w_in"] + 2 * lay["pad"], cpad), jnp.float32)
            for lay in layers
        ]

        return pl.pallas_call(
            _build_kernel(layers, cpad),
            grid=(nb,),
            in_specs=in_specs,
            out_specs=out_specs,
            out_shape=out_shape,
            scratch_shapes=scratch_shapes,
            compiler_params=pltpu.CompilerParams(
                dimension_semantics=("parallel",),      # batch across TCs on v7x
                vmem_limit_bytes=32 * 1024 * 1024,      # ~4 MiB working set; safe everywhere
            ),
        )

    def _get_call(self, nb):
        if nb not in self._calls:
            self._calls[nb] = self._build_call(nb)
        return self._calls[nb]

    # ------------------------------------------------------------------ #
    def forward(self, x_nchw):
        """x_nchw: latent (nb, nz, z_res, z_res). Returns (output NCHW, x NCHW)."""
        # TODO(synk): the PyTorch forward redraws x from self.sampler (uniform
        # noise); here the latent is an explicit, deterministically generated input.
        nb, nz = x_nchw.shape[:2]
        x_nhwc = jnp.transpose(x_nchw, (0, 2, 3, 1)).astype(jnp.float32)
        x_lane = jnp.pad(x_nhwc, ((0, 0), (0, 0), (0, 0), (0, self.cpad - nz)))

        packed = self._get_call(nb)(
            x_lane,
            *(lay["w"] for lay in self.layers),
            *(lay["b"] for lay in self.layers),
        )                                               # (nb, H/2, W/2, s*s*128)

        # depth-to-space of the phase-packed, lane-dense kernel output + crop
        # the 128-lane channel padding back to the real 3 channels (tiny glue).
        s, cpad = self.out_s, self.cpad
        hh, ww = self.layers[-1]["h_in"], self.layers[-1]["w_in"]
        o = packed.reshape(nb, hh, ww, s, s, cpad)
        o = jnp.transpose(o, (0, 1, 3, 2, 4, 5)).reshape(nb, hh * s, ww * s, cpad)
        o = o[..., :3]
        return jnp.transpose(o, (0, 3, 1, 2)), x_nchw


# ----------------------------------------------------------------------------
# Pure-JAX reference (lax.conv_general_dilated) for numerical verification
# ----------------------------------------------------------------------------
def _ref_forward(model, x_nchw):
    out = jnp.transpose(x_nchw, (0, 2, 3, 1))
    for prm in model.params:
        ci, co, kh, kw = prm["w"].shape
        wk = jnp.transpose(prm["w"][:, :, ::-1, ::-1], (2, 3, 0, 1))
        pad = prm["pad"]
        out = lax.conv_general_dilated(
            out, wk, window_strides=(1, 1),
            padding=[(kh - 1 - pad, kh - 1 - pad), (kw - 1 - pad, kw - 1 - pad)],
            lhs_dilation=(prm["stride"], prm["stride"]),
            dimension_numbers=("NHWC", "HWIO", "NHWC"))
        out = out + prm["b"].reshape(1, 1, 1, co)
        out = jnp.maximum(out, 0.0) if prm["act"] == "relu" else jnp.tanh(out)
    return jnp.transpose(out, (0, 3, 1, 2))


if __name__ == "__main__":
    # Config implied by the module: res=16, 2 upsampling blocks + output deconv
    # -> z_res = 16 / 2**3 = 2; non-const noise -> latent (nb, nz, 2, 2).
    nb, nz, res = 2, 8, 16
    nfeatures = [16, 8]
    kernels = [2, 4]
    strides = [2, 2, 2]

    key = jax.random.PRNGKey(0)
    key, kx = jax.random.split(key)
    model = ConvGeneratorPallas(
        key, nz=nz, nfeatures=nfeatures, kernels=kernels, strides=strides, res=res)

    x = jax.random.uniform(
        kx, (nb, nz, model.z_res, model.z_res), jnp.float32, minval=-1.0, maxval=1.0)

    fwd = jax.jit(model.forward)
    out, latent = fwd(x)
    out = jax.block_until_ready(out)

    assert out.shape == (nb, 3, res, res), out.shape
    assert latent.shape == (nb, nz, model.z_res, model.z_res)

    ref = jax.block_until_ready(_ref_forward(model, x))
    np.testing.assert_allclose(np.asarray(out), np.asarray(ref), rtol=1e-4, atol=1e-4)

    print("KERNEL_OK")
</pallas_src>

<mosaic_0001>
module attributes {stable_mosaic.version = 11 : i64} {
  func.func @kernel(%arg0: i32, %arg1: memref<1x2x2x128xf32, #tpu.memory_space<vmem>>, %arg2: memref<128x512xf32, #tpu.memory_space<vmem>>, %arg3: memref<2x2x512x128xf32, #tpu.memory_space<vmem>>, %arg4: memref<128x512xf32, #tpu.memory_space<vmem>>, %arg5: memref<1x1x512xf32, #tpu.memory_space<vmem>>, %arg6: memref<1x1x128xf32, #tpu.memory_space<vmem>>, %arg7: memref<1x1x512xf32, #tpu.memory_space<vmem>>, %arg8: memref<1x8x8x512xf32, #tpu.memory_space<vmem>>, %arg9: memref<2x2x128xf32, #tpu.memory_space<vmem>>, %arg10: memref<6x6x128xf32, #tpu.memory_space<vmem>>, %arg11: memref<8x8x128xf32, #tpu.memory_space<vmem>>) attributes {dimension_semantics = [#tpu.dimension_semantics<parallel>], iteration_bounds = array<i64: 2>, scalar_prefetch = 0 : i64, scratch_operands = 3 : i64, tpu.core_type = #tpu.core_type<tc>, window_params = [{transform_indices = @transform_0, window_bounds = array<i64: 1, 2, 2, 128>}, {pipeline_mode = #tpu.pipeline_mode<synchronous>, transform_indices = @transform_1, window_bounds = array<i64: 128, 512>}, {pipeline_mode = #tpu.pipeline_mode<synchronous>, transform_indices = @transform_2, window_bounds = array<i64: 2, 2, 512, 128>}, {pipeline_mode = #tpu.pipeline_mode<synchronous>, transform_indices = @transform_3, window_bounds = array<i64: 128, 512>}, {pipeline_mode = #tpu.pipeline_mode<synchronous>, transform_indices = @transform_4, window_bounds = array<i64: 1, 1, 512>}, {pipeline_mode = #tpu.pipeline_mode<synchronous>, transform_indices = @transform_5, window_bounds = array<i64: 1, 1, 128>}, {pipeline_mode = #tpu.pipeline_mode<synchronous>, transform_indices = @transform_6, window_bounds = array<i64: 1, 1, 512>}, {transform_indices = @transform_7, window_bounds = array<i64: 1, 8, 8, 512>}]} {
    %c0 = arith.constant 0 : index
    %c0_0 = arith.constant 0 : index
    %c0_1 = arith.constant 0 : index
    %c0_2 = arith.constant 0 : index
    %0 = vector.load %arg1[%c0, %c0_0, %c0_1, %c0_2] : memref<1x2x2x128xf32, #tpu.memory_space<vmem>>, vector<1x2x2x128xf32>
    %1 = vector.shape_cast %0 : vector<1x2x2x128xf32> to vector<2x2x128xf32>
    %c0_3 = arith.constant 0 : index
    %c0_4 = arith.constant 0 : index
    %c0_5 = arith.constant 0 : index
    %2 = vector.load %arg9[%c0_3, %c0_4, %c0_5] : memref<2x2x128xf32, #tpu.memory_space<vmem>>, vector<2x2x128xf32>
    tpu.vector_store %arg9[%c0_3, %c0_4, %c0_5], %1 {strides = array<i32>} : memref<2x2x128xf32, #tpu.memory_space<vmem>>, vector<2x2x128xf32>,
    %cst = arith.constant 0.000000e+00 : f32
    %3 = vector.broadcast %cst : f32 to vector<6x6x128xf32>
    %c0_6 = arith.constant 0 : index
    %c0_7 = arith.constant 0 : index
    %c0_8 = arith.constant 0 : index
    %4 = vector.load %arg10[%c0_6, %c0_7, %c0_8] : memref<6x6x128xf32, #tpu.memory_space<vmem>>, vector<6x6x128xf32>
    tpu.vector_store %arg10[%c0_6, %c0_7, %c0_8], %3 {strides = array<i32>} : memref<6x6x128xf32, #tpu.memory_space<vmem>>, vector<6x6x128xf32>,
    %c0_9 = arith.constant 0 : index
    %c0_10 = arith.constant 0 : index
    %c0_11 = arith.constant 0 : index
    %5 = vector.load %arg9[%c0_9, %c0_10, %c0_11] : memref<2x2x128xf32, #tpu.memory_space<vmem>>, vector<2x2x128xf32>
    %c0_12 = arith.constant 0 : index
    %c0_13 = arith.constant 0 : index
    %6 = vector.load %arg2[%c0_12, %c0_13] : memref<128x512xf32, #tpu.memory_space<vmem>>, vector<128x512xf32>
    %cst_14 = arith.constant dense<0.000000e+00> : vector<2x2x512xf32>
    %7 = tpu.matmul %5, %6, %cst_14 {dimension_numbers = #tpu.dot_dimension_numbers<[2], [0], [0, 1], [1], [0, 0, 0, 1, 1, 1], [], []>} : vector<2x2x128xf32>, vector<128x512xf32>, vector<2x2x512xf32> -> vector<2x2x512xf32>
    %c0_15 = arith.constant 0 : index
    %c0_16 = arith.constant 0 : index
    %c0_17 = arith.constant 0 : index
    %8 = vector.load %arg5[%c0_15, %c0_16, %c0_17] : memref<1x1x512xf32, #tpu.memory_space<vmem>>, vector<1x1x512xf32>
    %9 = vector.broadcast %8 : vector<1x1x512xf32> to vector<2x2x512xf32>
    %10 = arith.addf %7, %9 : vector<2x2x512xf32>
    %cst_18 = arith.constant 0.000000e+00 : f32
    %11 = vector.broadcast %cst_18 : f32 to vector<2x2x512xf32>
    %12 = arith.maximumf %10, %11 : vector<2x2x512xf32>
    %13 = vector.extract_strided_slice %12 {offsets = [0, 0, 0], sizes = [1, 1, 128], strides = [1, 1, 1]} : vector<2x2x512xf32> to vector<1x1x128xf32>
    %c1 = arith.constant 1 : index
    %c1_19 = arith.constant 1 : index
    %c0_20 = arith.constant 0 : index
    %14 = vector.load %arg10[%c1, %c1_19, %c0_20] : memref<6x6x128xf32, #tpu.memory_space<vmem>>, vector<1x1x128xf32>
    tpu.vector_store %arg10[%c1, %c1_19, %c0_20], %13 {strides = array<i32>} : memref<6x6x128xf32, #tpu.memory_space<vmem>>, vector<1x1x128xf32>,
    %15 = vector.extract_strided_slice %12 {offsets = [0, 0, 128], sizes = [1, 1, 128], strides = [1, 1, 1]} : vector<2x2x512xf32> to vector<1x1x128xf32>
    %c1_21 = arith.constant 1 : index
    %c2 = arith.constant 2 : index
    %c0_22 = arith.constant 0 : index
    %16 = vector.load %arg10[%c1_21, %c2, %c0_22] : memref<6x6x128xf32, #tpu.memory_space<vmem>>, vector<1x1x128xf32>
    tpu.vector_store %arg10[%c1_21, %c2, %c0_22], %15 {strides = array<i32>} : memref<6x6x128xf32, #tpu.memory_space<vmem>>, vector<1x1x128xf32>,
    %17 = vector.extract_strided_slice %12 {offsets = [0, 0, 256], sizes = [1, 1, 128], strides = [1, 1, 1]} : vector<2x2x512xf32> to vector<1x1x128xf32>
    %c2_23 = arith.constant 2 : index
    %c1_24 = arith.constant 1 : index
    %c0_25 = arith.constant 0 : index
    %18 = vector.load %arg10[%c2_23, %c1_24, %c0_25] : memref<6x6x128xf32, #tpu.memory_space<vmem>>, vector<1x1x128xf32>
    tpu.vector_store %arg10[%c2_23, %c1_24, %c0_25], %17 {strides = array<i32>} : memref<6x6x128xf32, #tpu.memory_space<vmem>>, vector<1x1x128xf32>,
    %19 = vector.extract_strided_slice %12 {offsets = [0, 0, 384], sizes = [1, 1, 128], strides = [1, 1, 1]} : vector<2x2x512xf32> to vector<1x1x128xf32>
    %c2_26 = arith.constant 2 : index
    %c2_27 = arith.constant 2 : index
    %c0_28 = arith.constant 0 : index
    %20 = vector.load %arg10[%c2_26, %c2_27, %c0_28] : memref<6x6x128xf32, #tpu.memory_space<vmem>>, vector<1x1x128xf32>
    tpu.vector_store %arg10[%c2_26, %c2_27, %c0_28], %19 {strides = array<i32>} : memref<6x6x128xf32, #tpu.memory_space<vmem>>, vector<1x1x128xf32>,
    %21 = vector.extract_strided_slice %12 {offsets = [0, 1, 0], sizes = [1, 1, 128], strides = [1, 1, 1]} : vector<2x2x512xf32> to vector<1x1x128xf32>
    %c1_29 = arith.constant 1 : index
    %c3 = arith.constant 3 : index
    %c0_30 = arith.constant 0 : index
    %22 = vector.load %arg10[%c1_29, %c3, %c0_30] : memref<6x6x128xf32, #tpu.memory_space<vmem>>, vector<1x1x128xf32>
    tpu.vector_store %arg10[%c1_29, %c3, %c0_30], %21 {strides = array<i32>} : memref<6x6x128xf32, #tpu.memory_space<vmem>>, vector<1x1x128xf32>,
    %23 = vector.extract_strided_slice %12 {offsets = [0, 1, 128], sizes = [1, 1, 128], strides = [1, 1, 1]} : vector<2x2x512xf32> to vector<1x1x128xf32>
    %c1_31 = arith.constant 1 : index
    %c4 = arith.constant 4 : index
    %c0_32 = arith.constant 0 : index
    %24 = vector.load %arg10[%c1_31, %c4, %c0_32] : memref<6x6x128xf32, #tpu.memory_space<vmem>>, vector<1x1x128xf32>
    tpu.vector_store %arg10[%c1_31, %c4, %c0_32], %23 {strides = array<i32>} : memref<6x6x128xf32, #tpu.memory_space<vmem>>, vector<1x1x128xf32>,
    %25 = vector.extract_strided_slice %12 {offsets = [0, 1, 256], sizes = [1, 1, 128], strides = [1, 1, 1]} : vector<2x2x512xf32> to vector<1x1x128xf32>
    %c2_33 = arith.constant 2 : index
    %c3_34 = arith.constant 3 : index
    %c0_35 = arith.constant 0 : index
    %26 = vector.load %arg10[%c2_33, %c3_34, %c0_35] : memref<6x6x128xf32, #tpu.memory_space<vmem>>, vector<1x1x128xf32>
    tpu.vector_store %arg10[%c2_33, %c3_34, %c0_35], %25 {strides = array<i32>} : memref<6x6x128xf32, #tpu.memory_space<vmem>>, vector<1x1x128xf32>,
    %27 = vector.extract_strided_slice %12 {offsets = [0, 1, 384], sizes = [1, 1, 128], strides = [1, 1, 1]} : vector<2x2x512xf32> to vector<1x1x128xf32>
    %c2_36 = arith.constant 2 : index
    %c4_37 = arith.constant 4 : index
    %c0_38 = arith.constant 0 : index
    %28 = vector.load %arg10[%c2_36, %c4_37, %c0_38] : memref<6x6x128xf32, #tpu.memory_space<vmem>>, vector<1x1x128xf32>
    tpu.vector_store %arg10[%c2_36, %c4_37, %c0_38], %27 {strides = array<i32>} : memref<6x6x128xf32, #tpu.memory_space<vmem>>, vector<1x1x128xf32>,
    %29 = vector.extract_strided_slice %12 {offsets = [1, 0, 0], sizes = [1, 1, 128], strides = [1, 1, 1]} : vector<2x2x512xf32> to vector<1x1x128xf32>
    %c3_39 = arith.constant 3 : index
    %c1_40 = arith.constant 1 : index
    %c0_41 = arith.constant 0 : index
    %30 = vector.load %arg10[%c3_39, %c1_40, %c0_41] : memref<6x6x128xf32, #tpu.memory_space<vmem>>, vector<1x1x128xf32>
    tpu.vector_store %arg10[%c3_39, %c1_40, %c0_41], %29 {strides = array<i32>} : memref<6x6x128xf32, #tpu.memory_space<vmem>>, vector<1x1x128xf32>,
    %31 = vector.extract_strided_slice %12 {offsets = [1, 0, 128], sizes = [1, 1, 128], strides = [1, 1, 1]} : vector<2x2x512xf32> to vector<1x1x128xf32>
    %c3_42 = arith.constant 3 : index
    %c2_43 = arith.constant 2 : index
    %c0_44 = arith.constant 0 : index
    %32 = vector.load %arg10[%c3_42, %c2_43, %c0_44] : memref<6x6x128xf32, #tpu.memory_space<vmem>>, vector<1x1x128xf32>
    tpu.vector_store %arg10[%c3_42, %c2_43, %c0_44], %31 {strides = array<i32>} : memref<6x6x128xf32, #tpu.memory_space<vmem>>, vector<1x1x128xf32>,
    %33 = vector.extract_strided_slice %12 {offsets = [1, 0, 256], sizes = [1, 1, 128], strides = [1, 1, 1]} : vector<2x2x512xf32> to vector<1x1x128xf32>
    %c4_45 = arith.constant 4 : index
    %c1_46 = arith.constant 1 : index
    %c0_47 = arith.constant 0 : index
    %34 = vector.load %arg10[%c4_45, %c1_46, %c0_47] : memref<6x6x128xf32, #tpu.memory_space<vmem>>, vector<1x1x128xf32>
    tpu.vector_store %arg10[%c4_45, %c1_46, %c0_47], %33 {strides = array<i32>} : memref<6x6x128xf32, #tpu.memory_space<vmem>>, vector<1x1x128xf32>,
    %35 = vector.extract_strided_slice %12 {offsets = [1, 0, 384], sizes = [1, 1, 128], strides = [1, 1, 1]} : vector<2x2x512xf32> to vector<1x1x128xf32>
    %c4_48 = arith.constant 4 : index
    %c2_49 = arith.constant 2 : index
    %c0_50 = arith.constant 0 : index
    %36 = vector.load %arg10[%c4_48, %c2_49, %c0_50] : memref<6x6x128xf32, #tpu.memory_space<vmem>>, vector<1x1x128xf32>
    tpu.vector_store %arg10[%c4_48, %c2_49, %c0_50], %35 {strides = array<i32>} : memref<6x6x128xf32, #tpu.memory_space<vmem>>, vector<1x1x128xf32>,
    %37 = vector.extract_strided_slice %12 {offsets = [1, 1, 0], sizes = [1, 1, 128], strides = [1, 1, 1]} : vector<2x2x512xf32> to vector<1x1x128xf32>
    %c3_51 = arith.constant 3 : index
    %c3_52 = arith.constant 3 : index
    %c0_53 = arith.constant 0 : index
    %38 = vector.load %arg10[%c3_51, %c3_52, %c0_53] : memref<6x6x128xf32, #tpu.memory_space<vmem>>, vector<1x1x128xf32>
    tpu.vector_store %arg10[%c3_51, %c3_52, %c0_53], %37 {strides = array<i32>} : memref<6x6x128xf32, #tpu.memory_space<vmem>>, vector<1x1x128xf32>,
    %39 = vector.extract_strided_slice %12 {offsets = [1, 1, 128], sizes = [1, 1, 128], strides = [1, 1, 1]} : vector<2x2x512xf32> to vector<1x1x128xf32>
    %c3_54 = arith.constant 3 : index
    %c4_55 = arith.constant 4 : index
    %c0_56 = arith.constant 0 : index
    %40 = vector.load %arg10[%c3_54, %c4_55, %c0_56] : memref<6x6x128xf32, #tpu.memory_space<vmem>>, vector<1x1x128xf32>
    tpu.vector_store %arg10[%c3_54, %c4_55, %c0_56], %39 {strides = array<i32>} : memref<6x6x128xf32, #tpu.memory_space<vmem>>, vector<1x1x128xf32>,
    %41 = vector.extract_strided_slice %12 {offsets = [1, 1, 256], sizes = [1, 1, 128], strides = [1, 1, 1]} : vector<2x2x512xf32> to vector<1x1x128xf32>
    %c4_57 = arith.constant 4 : index
    %c3_58 = arith.constant 3 : index
    %c0_59 = arith.constant 0 : index
    %42 = vector.load %arg10[%c4_57, %c3_58, %c0_59] : memref<6x6x128xf32, #tpu.memory_space<vmem>>, vector<1x1x128xf32>
    tpu.vector_store %arg10[%c4_57, %c3_58, %c0_59], %41 {strides = array<i32>} : memref<6x6x128xf32, #tpu.memory_space<vmem>>, vector<1x1x128xf32>,
    %43 = vector.extract_strided_slice %12 {offsets = [1, 1, 384], sizes = [1, 1, 128], strides = [1, 1, 1]} : vector<2x2x512xf32> to vector<1x1x128xf32>
    %c4_60 = arith.constant 4 : index
    %c4_61 = arith.constant 4 : index
    %c0_62 = arith.constant 0 : index
    %44 = vector.load %arg10[%c4_60, %c4_61, %c0_62] : memref<6x6x128xf32, #tpu.memory_space<vmem>>, vector<1x1x128xf32>
    tpu.vector_store %arg10[%c4_60, %c4_61, %c0_62], %43 {strides = array<i32>} : memref<6x6x128xf32, #tpu.memory_space<vmem>>, vector<1x1x128xf32>,
    %c1_63 = arith.constant 1 : index
    %c1_64 = arith.constant 1 : index
    %c0_65 = arith.constant 0 : index
    %45 = vector.load %arg10[%c1_63, %c1_64, %c0_65] : memref<6x6x128xf32, #tpu.memory_space<vmem>>, vector<4x4x128xf32>
    %c1_66 = arith.constant 1 : index
    %c0_67 = arith.constant 0 : index
    %c0_68 = arith.constant 0 : index
    %46 = vector.load %arg10[%c1_66, %c0_67, %c0_68] : memref<6x6x128xf32, #tpu.memory_space<vmem>>, vector<4x4x128xf32>
    %c0_69 = arith.constant 0 : index
    %c1_70 = arith.constant 1 : index
    %c0_71 = arith.constant 0 : index
    %47 = vector.load %arg10[%c0_69, %c1_70, %c0_71] : memref<6x6x128xf32, #tpu.memory_space<vmem>>, vector<4x4x128xf32>
    %c0_72 = arith.constant 0 : index
    %c0_73 = arith.constant 0 : index
    %c0_74 = arith.constant 0 : index
    %48 = vector.load %arg10[%c0_72, %c0_73, %c0_74] : memref<6x6x128xf32, #tpu.memory_space<vmem>>, vector<4x4x128xf32>
    %49 = tpu.concatenate %45, %46, %47, %48 in 2 : vector<4x4x128xf32>, vector<4x4x128xf32>, vector<4x4x128xf32>, vector<4x4x128xf32> -> vector<4x4x512xf32>
    %c0_75 = arith.constant 0 : index
    %c0_76 = arith.constant 0 : index
    %c0_77 = arith.constant 0 : index
    %c0_78 = arith.constant 0 : index
    %50 = vector.load %arg3[%c0_75, %c0_76, %c0_77, %c0_78] : memref<2x2x512x128xf32, #tpu.memory_space<vmem>>, vector<1x1x512x128xf32>
    %51 = vector.shape_cast %50 : vector<1x1x512x128xf32> to vector<512x128xf32>
    %cst_79 = arith.constant dense<0.000000e+00> : vector<4x4x128xf32>
    %52 = tpu.matmul %49, %51, %cst_79 {dimension_numbers = #tpu.dot_dimension_numbers<[2], [0], [0, 1], [1], [0, 0, 0, 1, 1, 1], [], []>} : vector<4x4x512xf32>, vector<512x128xf32>, vector<4x4x128xf32> -> vector<4x4x128xf32>
    %c0_80 = arith.constant 0 : index
    %c0_81 = arith.constant 0 : index
    %c0_82 = arith.constant 0 : index
    %53 = vector.load %arg6[%c0_80, %c0_81, %c0_82] : memref<1x1x128xf32, #tpu.memory_space<vmem>>, vector<1x1x128xf32>
    %54 = vector.broadcast %53 : vector<1x1x128xf32> to vector<4x4x128xf32>
    %55 = arith.addf %52, %54 : vector<4x4x128xf32>
    %cst_83 = arith.constant 0.000000e+00 : f32
    %56 = vector.broadcast %cst_83 : f32 to vector<4x4x128xf32>
    %57 = arith.maximumf %55, %56 : vector<4x4x128xf32>
    %58 = vector.extract_strided_slice %57 {offsets = [0, 0, 0], sizes = [1, 1, 128], strides = [1, 1, 1]} : vector<4x4x128xf32> to vector<1x1x128xf32>
    %c0_84 = arith.constant 0 : index
    %c0_85 = arith.constant 0 : index
    %c0_86 = arith.constant 0 : index
    %59 = vector.load %arg11[%c0_84, %c0_85, %c0_86] : memref<8x8x128xf32, #tpu.memory_space<vmem>>, vector<1x1x128xf32>
    tpu.vector_store %arg11[%c0_84, %c0_85, %c0_86], %58 {strides = array<i32>} : memref<8x8x128xf32, #tpu.memory_space<vmem>>, vector<1x1x128xf32>,
    %60 = vector.extract_strided_slice %57 {offsets = [0, 1, 0], sizes = [1, 1, 128], strides = [1, 1, 1]} : vector<4x4x128xf32> to vector<1x1x128xf32>
    %c0_87 = arith.constant 0 : index
    %c2_88 = arith.constant 2 : index
    %c0_89 = arith.constant 0 : index
    %61 = vector.load %arg11[%c0_87, %c2_88, %c0_89] : memref<8x8x128xf32, #tpu.memory_space<vmem>>, vector<1x1x128xf32>
    tpu.vector_store %arg11[%c0_87, %c2_88, %c0_89], %60 {strides = array<i32>} : memref<8x8x128xf32, #tpu.memory_space<vmem>>, vector<1x1x128xf32>,
    %62 = vector.extract_strided_slice %57 {offsets = [0, 2, 0], sizes = [1, 1, 128], strides = [1, 1, 1]} : vector<4x4x128xf32> to vector<1x1x128xf32>
    %c0_90 = arith.constant 0 : index
    %c4_91 = arith.constant 4 : index
    %c0_92 = arith.constant 0 : index
    %63 = vector.load %arg11[%c0_90, %c4_91, %c0_92] : memref<8x8x128xf32, #tpu.memory_space<vmem>>, vector<1x1x128xf32>
    tpu.vector_store %arg11[%c0_90, %c4_91, %c0_92], %62 {strides = array<i32>} : memref<8x8x128xf32, #tpu.memory_space<vmem>>, vector<1x1x128xf32>,
    %64 = vector.extract_strided_slice %57 {offsets = [0, 3, 0], sizes = [1, 1, 128], strides = [1, 1, 1]} : vector<4x4x128xf32> to vector<1x1x128xf32>
    %c0_93 = arith.constant 0 : index
    %c6 = arith.constant 6 : index
    %c0_94 = arith.constant 0 : index
    %65 = vector.load %arg11[%c0_93, %c6, %c0_94] : memref<8x8x128xf32, #tpu.memory_space<vmem>>, vector<1x1x128xf32>
    tpu.vector_store %arg11[%c0_93, %c6, %c0_94], %64 {strides = array<i32>} : memref<8x8x128xf32, #tpu.memory_space<vmem>>, vector<1x1x128xf32>,
    %66 = vector.extract_strided_slice %57 {offsets = [1, 0, 0], sizes = [1, 1, 128], strides = [1, 1, 1]} : vector<4x4x128xf32> to vector<1x1x128xf32>
    %c2_95 = arith.constant 2 : index
    %c0_96 = arith.constant 0 : index
    %c0_97 = arith.constant 0 : index
    %67 = vector.load %arg11[%c2_95, %c0_96, %c0_97] : memref<8x8x128xf32, #tpu.memory_space<vmem>>, vector<1x1x128xf32>
    tpu.vector_store %arg11[%c2_95, %c0_96, %c0_97], %66 {strides = array<i32>} : memref<8x8x128xf32, #tpu.memory_space<vmem>>, vector<1x1x128xf32>,
    %68 = vector.extract_strided_slice %57 {offsets = [1, 1, 0], sizes = [1, 1, 128], strides = [1, 1, 1]} : vector<4x4x128xf32> to vector<1x1x128xf32>
    %c2_98 = arith.constant 2 : index
    %c2_99 = arith.constant 2 : index
    %c0_100 = arith.constant 0 : index
    %69 = vector.load %arg11[%c2_98, %c2_99, %c0_100] : memref<8x8x128xf32, #tpu.memory_space<vmem>>, vector<1x1x128xf32>
    tpu.vector_store %arg11[%c2_98, %c2_99, %c0_100], %68 {strides = array<i32>} : memref<8x8x128xf32, #tpu.memory_space<vmem>>, vector<1x1x128xf32>,
    %70 = vector.extract_strided_slice %57 {offsets = [1, 2, 0], sizes = [1, 1, 128], strides = [1, 1, 1]} : vector<4x4x128xf32> to vector<1x1x128xf32>
    %c2_101 = arith.constant 2 : index
    %c4_102 = arith.constant 4 : index
    %c0_103 = arith.constant 0 : index
    %71 = vector.load %arg11[%c2_101, %c4_102, %c0_103] : memref<8x8x128xf32, #tpu.memory_space<vmem>>, vector<1x1x128xf32>
    tpu.vector_store %arg11[%c2_101, %c4_102, %c0_103], %70 {strides = array<i32>} : memref<8x8x128xf32, #tpu.memory_space<vmem>>, vector<1x1x128xf32>,
    %72 = vector.extract_strided_slice %57 {offsets = [1, 3, 0], sizes = [1, 1, 128], strides = [1, 1, 1]} : vector<4x4x128xf32> to vector<1x1x128xf32>
    %c2_104 = arith.constant 2 : index
    %c6_105 = arith.constant 6 : index
    %c0_106 = arith.constant 0 : index
    %73 = vector.load %arg11[%c2_104, %c6_105, %c0_106] : memref<8x8x128xf32, #tpu.memory_space<vmem>>, vector<1x1x128xf32>
    tpu.vector_store %arg11[%c2_104, %c6_105, %c0_106], %72 {strides = array<i32>} : memref<8x8x128xf32, #tpu.memory_space<vmem>>, vector<1x1x128xf32>,
    %74 = vector.extract_strided_slice %57 {offsets = [2, 0, 0], sizes = [1, 1, 128], strides = [1, 1, 1]} : vector<4x4x128xf32> to vector<1x1x128xf32>
    %c4_107 = arith.constant 4 : index
    %c0_108 = arith.constant 0 : index
    %c0_109 = arith.constant 0 : index
    %75 = vector.load %arg11[%c4_107, %c0_108, %c0_109] : memref<8x8x128xf32, #tpu.memory_space<vmem>>, vector<1x1x128xf32>
    tpu.vector_store %arg11[%c4_107, %c0_108, %c0_109], %74 {strides = array<i32>} : memref<8x8x128xf32, #tpu.memory_space<vmem>>, vector<1x1x128xf32>,
    %76 = vector.extract_strided_slice %57 {offsets = [2, 1, 0], sizes = [1, 1, 128], strides = [1, 1, 1]} : vector<4x4x128xf32> to vector<1x1x128xf32>
    %c4_110 = arith.constant 4 : index
    %c2_111 = arith.constant 2 : index
    %c0_112 = arith.constant 0 : index
    %77 = vector.load %arg11[%c4_110, %c2_111, %c0_112] : memref<8x8x128xf32, #tpu.memory_space<vmem>>, vector<1x1x128xf32>
    tpu.vector_store %arg11[%c4_110, %c2_111, %c0_112], %76 {strides = array<i32>} : memref<8x8x128xf32, #tpu.memory_space<vmem>>, vector<1x1x128xf32>,
    %78 = vector.extract_strided_slice %57 {offsets = [2, 2, 0], sizes = [1, 1, 128], strides = [1, 1, 1]} : vector<4x4x128xf32> to vector<1x1x128xf32>
    %c4_113 = arith.constant 4 : index
    %c4_114 = arith.constant 4 : index
    %c0_115 = arith.constant 0 : index
    %79 = vector.load %arg11[%c4_113, %c4_114, %c0_115] : memref<8x8x128xf32, #tpu.memory_space<vmem>>, vector<1x1x128xf32>
    tpu.vector_store %arg11[%c4_113, %c4_114, %c0_115], %78 {strides = array<i32>} : memref<8x8x128xf32, #tpu.memory_space<vmem>>, vector<1x1x128xf32>,
    %80 = vector.extract_strided_slice %57 {offsets = [2, 3, 0], sizes = [1, 1, 128], strides = [1, 1, 1]} : vector<4x4x128xf32> to vector<1x1x128xf32>
    %c4_116 = arith.constant 4 : index
    %c6_117 = arith.constant 6 : index
    %c0_118 = arith.constant 0 : index
    %81 = vector.load %arg11[%c4_116, %c6_117, %c0_118] : memref<8x8x128xf32, #tpu.memory_space<vmem>>, vector<1x1x128xf32>
    tpu.vector_store %arg11[%c4_116, %c6_117, %c0_118], %80 {strides = array<i32>} : memref<8x8x128xf32, #tpu.memory_space<vmem>>, vector<1x1x128xf32>,
    %82 = vector.extract_strided_slice %57 {offsets = [3, 0, 0], sizes = [1, 1, 128], strides = [1, 1, 1]} : vector<4x4x128xf32> to vector<1x1x128xf32>
    %c6_119 = arith.constant 6 : index
    %c0_120 = arith.constant 0 : index
    %c0_121 = arith.constant 0 : index
    %83 = vector.load %arg11[%c6_119, %c0_120, %c0_121] : memref<8x8x128xf32, #tpu.memory_space<vmem>>, vector<1x1x128xf32>
    tpu.vector_store %arg11[%c6_119, %c0_120, %c0_121], %82 {strides = array<i32>} : memref<8x8x128xf32, #tpu.memory_space<vmem>>, vector<1x1x128xf32>,
    %84 = vector.extract_strided_slice %57 {offsets = [3, 1, 0], sizes = [1, 1, 128], strides = [1, 1, 1]} : vector<4x4x128xf32> to vector<1x1x128xf32>
    %c6_122 = arith.constant 6 : index
    %c2_123 = arith.constant 2 : index
    %c0_124 = arith.constant 0 : index
    %85 = vector.load %arg11[%c6_122, %c2_123, %c0_124] : memref<8x8x128xf32, #tpu.memory_space<vmem>>, vector<1x1x128xf32>
    tpu.vector_store %arg11[%c6_122, %c2_123, %c0_124], %84 {strides = array<i32>} : memref<8x8x128xf32, #tpu.memory_space<vmem>>, vector<1x1x128xf32>,
    %86 = vector.extract_strided_slice %57 {offsets = [3, 2, 0], sizes = [1, 1, 128], strides = [1, 1, 1]} : vector<4x4x128xf32> to vector<1x1x128xf32>
    %c6_125 = arith.constant 6 : index
    %c4_126 = arith.constant 4 : index
    %c0_127 = arith.constant 0 : index
    %87 = vector.load %arg11[%c6_125, %c4_126, %c0_127] : memref<8x8x128xf32, #tpu.memory_space<vmem>>, vector<1x1x128xf32>
    tpu.vector_store %arg11[%c6_125, %c4_126, %c0_127], %86 {strides = array<i32>} : memref<8x8x128xf32, #tpu.memory_space<vmem>>, vector<1x1x128xf32>,
    %88 = vector.extract_strided_slice %57 {offsets = [3, 3, 0], sizes = [1, 1, 128], strides = [1, 1, 1]} : vector<4x4x128xf32> to vector<1x1x128xf32>
    %c6_128 = arith.constant 6 : index
    %c6_129 = arith.constant 6 : index
    %c0_130 = arith.constant 0 : index
    %89 = vector.load %arg11[%c6_128, %c6_129, %c0_130] : memref<8x8x128xf32, #tpu.memory_space<vmem>>, vector<1x1x128xf32>
    tpu.vector_store %arg11[%c6_128, %c6_129, %c0_130], %88 {strides = array<i32>} : memref<8x8x128xf32, #tpu.memory_space<vmem>>, vector<1x1x128xf32>,
    %c1_131 = arith.constant 1 : index
    %c2_132 = arith.constant 2 : index
    %c0_133 = arith.constant 0 : index
    %90 = vector.load %arg10[%c1_131, %c2_132, %c0_133] : memref<6x6x128xf32, #tpu.memory_space<vmem>>, vector<4x4x128xf32>
    %c1_134 = arith.constant 1 : index
    %c1_135 = arith.constant 1 : index
    %c0_136 = arith.constant 0 : index
    %91 = vector.load %arg10[%c1_134, %c1_135, %c0_136] : memref<6x6x128xf32, #tpu.memory_space<vmem>>, vector<4x4x128xf32>
    %c0_137 = arith.constant 0 : index
    %c2_138 = arith.constant 2 : index
    %c0_139 = arith.constant 0 : index
    %92 = vector.load %arg10[%c0_137, %c2_138, %c0_139] : memref<6x6x128xf32, #tpu.memory_space<vmem>>, vector<4x4x128xf32>
    %c0_140 = arith.constant 0 : index
    %c1_141 = arith.constant 1 : index
    %c0_142 = arith.constant 0 : index
    %93 = vector.load %arg10[%c0_140, %c1_141, %c0_142] : memref<6x6x128xf32, #tpu.memory_space<vmem>>, vector<4x4x128xf32>
    %94 = tpu.concatenate %90, %91, %92, %93 in 2 : vector<4x4x128xf32>, vector<4x4x128xf32>, vector<4x4x128xf32>, vector<4x4x128xf32> -> vector<4x4x512xf32>
    %c0_143 = arith.constant 0 : index
    %c1_144 = arith.constant 1 : index
    %c0_145 = arith.constant 0 : index
    %c0_146 = arith.constant 0 : index
    %95 = vector.load %arg3[%c0_143, %c1_144, %c0_145, %c0_146] : memref<2x2x512x128xf32, #tpu.memory_space<vmem>>, vector<1x1x512x128xf32>
    %96 = vector.shape_cast %95 : vector<1x1x512x128xf32> to vector<512x128xf32>
    %cst_147 = arith.constant dense<0.000000e+00> : vector<4x4x128xf32>
    %97 = tpu.matmul %94, %96, %cst_147 {dimension_numbers = #tpu.dot_dimension_numbers<[2], [0], [0, 1], [1], [0, 0, 0, 1, 1, 1], [], []>} : vector<4x4x512xf32>, vector<512x128xf32>, vector<4x4x128xf32> -> vector<4x4x128xf32>
    %c0_148 = arith.constant 0 : index
    %c0_149 = arith.constant 0 : index
    %c0_150 = arith.constant 0 : index
    %98 = vector.load %arg6[%c0_148, %c0_149, %c0_150] : memref<1x1x128xf32, #tpu.memory_space<vmem>>, vector<1x1x128xf32>
    %99 = vector.broadcast %98 : vector<1x1x128xf32> to vector<4x4x128xf32>
    %100 = arith.addf %97, %99 : vector<4x4x128xf32>
    %cst_151 = arith.constant 0.000000e+00 : f32
    %101 = vector.broadcast %cst_151 : f32 to vector<4x4x128xf32>
    %102 = arith.maximumf %100, %101 : vector<4x4x128xf32>
    %103 = vector.extract_strided_slice %102 {offsets = [0, 0, 0], sizes = [1, 1, 128], strides = [1, 1, 1]} : vector<4x4x128xf32> to vector<1x1x128xf32>
    %c0_152 = arith.constant 0 : index
    %c1_153 = arith.constant 1 : index
    %c0_154 = arith.constant 0 : index
    %104 = vector.load %arg11[%c0_152, %c1_153, %c0_154] : memref<8x8x128xf32, #tpu.memory_space<vmem>>, vector<1x1x128xf32>
    tpu.vector_store %arg11[%c0_152, %c1_153, %c0_154], %103 {strides = array<i32>} : memref<8x8x128xf32, #tpu.memory_space<vmem>>, vector<1x1x128xf32>,
    %105 = vector.extract_strided_slice %102 {offsets = [0, 1, 0], sizes = [1, 1, 128], strides = [1, 1, 1]} : vector<4x4x128xf32> to vector<1x1x128xf32>
    %c0_155 = arith.constant 0 : index
    %c3_156 = arith.constant 3 : index
    %c0_157 = arith.constant 0 : index
    %106 = vector.load %arg11[%c0_155, %c3_156, %c0_157] : memref<8x8x128xf32, #tpu.memory_space<vmem>>, vector<1x1x128xf32>
    tpu.vector_store %arg11[%c0_155, %c3_156, %c0_157], %105 {strides = array<i32>} : memref<8x8x128xf32, #tpu.memory_space<vmem>>, vector<1x1x128xf32>,
    %107 = vector.extract_strided_slice %102 {offsets = [0, 2, 0], sizes = [1, 1, 128], strides = [1, 1, 1]} : vector<4x4x128xf32> to vector<1x1x128xf32>
    %c0_158 = arith.constant 0 : index
    %c5 = arith.constant 5 : index
    %c0_159 = arith.constant 0 : index
    %108 = vector.load %arg11[%c0_158, %c5, %c0_159] : memref<8x8x128xf32, #tpu.memory_space<vmem>>, vector<1x1x128xf32>
    tpu.vector_store %arg11[%c0_158, %c5, %c0_159], %107 {strides = array<i32>} : memref<8x8x128xf32, #tpu.memory_space<vmem>>, vector<1x1x128xf32>,
    %109 = vector.extract_strided_slice %102 {offsets = [0, 3, 0], sizes = [1, 1, 128], strides = [1, 1, 1]} : vector<4x4x128xf32> to vector<1x1x128xf32>
    %c0_160 = arith.constant 0 : index
    %c7 = arith.constant 7 : index
    %c0_161 = arith.constant 0 : index
    %110 = vector.load %arg11[%c0_160, %c7, %c0_161] : memref<8x8x128xf32, #tpu.memory_space<vmem>>, vector<1x1x128xf32>
    tpu.vector_store %arg11[%c0_160, %c7, %c0_161], %109 {strides = array<i32>} : memref<8x8x128xf32, #tpu.memory_space<vmem>>, vector<1x1x128xf32>,
    %111 = vector.extract_strided_slice %102 {offsets = [1, 0, 0], sizes = [1, 1, 128], strides = [1, 1, 1]} : vector<4x4x128xf32> to vector<1x1x128xf32>
    %c2_162 = arith.constant 2 : index
    %c1_163 = arith.constant 1 : index
    %c0_164 = arith.constant 0 : index
    %112 = vector.load %arg11[%c2_162, %c1_163, %c0_164] : memref<8x8x128xf32, #tpu.memory_space<vmem>>, vector<1x1x128xf32>
    tpu.vector_store %arg11[%c2_162, %c1_163, %c0_164], %111 {strides = array<i32>} : memref<8x8x128xf32, #tpu.memory_space<vmem>>, vector<1x1x128xf32>,
    %113 = vector.extract_strided_slice %102 {offsets = [1, 1, 0], sizes = [1, 1, 128], strides = [1, 1, 1]} : vector<4x4x128xf32> to vector<1x1x128xf32>
    %c2_165 = arith.constant 2 : index
    %c3_166 = arith.constant 3 : index
    %c0_167 = arith.constant 0 : index
    %114 = vector.load %arg11[%c2_165, %c3_166, %c0_167] : memref<8x8x128xf32, #tpu.memory_space<vmem>>, vector<1x1x128xf32>
    tpu.vector_store %arg11[%c2_165, %c3_166, %c0_167], %113 {strides = array<i32>} : memref<8x8x128xf32, #tpu.memory_space<vmem>>, vector<1x1x128xf32>,
    %115 = vector.extract_strided_slice %102 {offsets = [1, 2, 0], sizes = [1, 1, 128], strides = [1, 1, 1]} : vector<4x4x128xf32> to vector<1x1x128xf32>
    %c2_168 = arith.constant 2 : index
    %c5_169 = arith.constant 5 : index
    %c0_170 = arith.constant 0 : index
    %116 = vector.load %arg11[%c2_168, %c5_169, %c0_170] : memref<8x8x128xf32, #tpu.memory_space<vmem>>, vector<1x1x128xf32>
    tpu.vector_store %arg11[%c2_168, %c5_169, %c0_170], %115 {strides = array<i32>} : memref<8x8x128xf32, #tpu.memory_space<vmem>>, vector<1x1x128xf32>,
    %117 = vector.extract_strided_slice %102 {offsets = [1, 3, 0], sizes = [1, 1, 128], strides = [1, 1, 1]} : vector<4x4x128xf32> to vector<1x1x128xf32>
    %c2_171 = arith.constant 2 : index
    %c7_172 = arith.constant 7 : index
    %c0_173 = arith.constant 0 : index
    %118 = vector.load %arg11[%c2_171, %c7_172, %c0_173] : memref<8x8x128xf32, #tpu.memory_space<vmem>>, vector<1x1x128xf32>
    tpu.vector_store %arg11[%c2_171, %c7_172, %c0_173], %117 {strides = array<i32>} : memref<8x8x128xf32, #tpu.memory_space<vmem>>, vector<1x1x128xf32>,
    %119 = vector.extract_strided_slice %102 {offsets = [2, 0, 0], sizes = [1, 1, 128], strides = [1, 1, 1]} : vector<4x4x128xf32> to vector<1x1x128xf32>
    %c4_174 = arith.constant 4 : index
    %c1_175 = arith.constant 1 : index
    %c0_176 = arith.constant 0 : index
    %120 = vector.load %arg11[%c4_174, %c1_175, %c0_176] : memref<8x8x128xf32, #tpu.memory_space<vmem>>, vector<1x1x128xf32>
    tpu.vector_store %arg11[%c4_174, %c1_175, %c0_176], %119 {strides = array<i32>} : memref<8x8x128xf32, #tpu.memory_space<vmem>>, vector<1x1x128xf32>,
    %121 = vector.extract_strided_slice %102 {offsets = [2, 1, 0], sizes = [1, 1, 128], strides = [1, 1, 1]} : vector<4x4x128xf32> to vector<1x1x128xf32>
    %c4_177 = arith.constant 4 : index
    %c3_178 = arith.constant 3 : index
    %c0_179 = arith.constant 0 : index
    %122 = vector.load %arg11[%c4_177, %c3_178, %c0_179] : memref<8x8x128xf32, #tpu.memory_space<vmem>>, vector<1x1x128xf32>
    tpu.vector_store %arg11[%c4_177, %c3_178, %c0_179], %121 {strides = array<i32>} : memref<8x8x128xf32, #tpu.memory_space<vmem>>, vector<1x1x128xf32>,
    %123 = vector.extract_strided_slice %102 {offsets = [2, 2, 0], sizes = [1, 1, 128], strides = [1, 1, 1]} : vector<4x4x128xf32> to vector<1x1x128xf32>
    %c4_180 = arith.constant 4 : index
    %c5_181 = arith.constant 5 : index
    %c0_182 = arith.constant 0 : index
    %124 = vector.load %arg11[%c4_180, %c5_181, %c0_182] : memref<8x8x128xf32, #tpu.memory_space<vmem>>, vector<1x1x128xf32>
    tpu.vector_store %arg11[%c4_180, %c5_181, %c0_182], %123 {strides = array<i32>} : memref<8x8x128xf32, #tpu.memory_space<vmem>>, vector<1x1x128xf32>,
    %125 = vector.extract_strided_slice %102 {offsets = [2, 3, 0], sizes = [1, 1, 128], strides = [1, 1, 1]} : vector<4x4x128xf32> to vector<1x1x128xf32>
    %c4_183 = arith.constant 4 : index
    %c7_184 = arith.constant 7 : index
    %c0_185 = arith.constant 0 : index
    %126 = vector.load %arg11[%c4_183, %c7_184, %c0_185] : memref<8x8x128xf32, #tpu.memory_space<vmem>>, vector<1x1x128xf32>
    tpu.vector_store %arg11[%c4_183, %c7_184, %c0_185], %125 {strides = array<i32>} : memref<8x8x128xf32, #tpu.memory_space<vmem>>, vector<1x1x128xf32>,
    %127 = vector.extract_strided_slice %102 {offsets = [3, 0, 0], sizes = [1, 1, 128], strides = [1, 1, 1]} : vector<4x4x128xf32> to vector<1x1x128xf32>
    %c6_186 = arith.constant 6 : index
    %c1_187 = arith.constant 1 : index
    %c0_188 = arith.constant 0 : index
    %128 = vector.load %arg11[%c6_186, %c1_187, %c0_188] : memref<8x8x128xf32, #tpu.memory_space<vmem>>, vector<1x1x128xf32>
    tpu.vector_store %arg11[%c6_186, %c1_187, %c0_188], %127 {strides = array<i32>} : memref<8x8x128xf32, #tpu.memory_space<vmem>>, vector<1x1x128xf32>,
    %129 = vector.extract_strided_slice %102 {offsets = [3, 1, 0], sizes = [1, 1, 128], strides = [1, 1, 1]} : vector<4x4x128xf32> to vector<1x1x128xf32>
    %c6_189 = arith.constant 6 : index
    %c3_190 = arith.constant 3 : index
    %c0_191 = arith.constant 0 : index
    %130 = vector.load %arg11[%c6_189, %c3_190, %c0_191] : memref<8x8x128xf32, #tpu.memory_space<vmem>>, vector<1x1x128xf32>
    tpu.vector_store %arg11[%c6_189, %c3_190, %c0_191], %129 {strides = array<i32>} : memref<8x8x128xf32, #tpu.memory_space<vmem>>, vector<1x1x128xf32>,
    %131 = vector.extract_strided_slice %102 {offsets = [3, 2, 0], sizes = [1, 1, 128], strides = [1, 1, 1]} : vector<4x4x128xf32> to vector<1x1x128xf32>
    %c6_192 = arith.constant 6 : index
    %c5_193 = arith.constant 5 : index
    %c0_194 = arith.constant 0 : index
    %132 = vector.load %arg11[%c6_192, %c5_193, %c0_194] : memref<8x8x128xf32, #tpu.memory_space<vmem>>, vector<1x1x128xf32>
    tpu.vector_store %arg11[%c6_192, %c5_193, %c0_194], %131 {strides = array<i32>} : memref<8x8x128xf32, #tpu.memory_space<vmem>>, vector<1x1x128xf32>,
    %133 = vector.extract_strided_slice %102 {offsets = [3, 3, 0], sizes = [1, 1, 128], strides = [1, 1, 1]} : vector<4x4x128xf32> to vector<1x1x128xf32>
    %c6_195 = arith.constant 6 : index
    %c7_196 = arith.constant 7 : index
    %c0_197 = arith.constant 0 : index
    %134 = vector.load %arg11[%c6_195, %c7_196, %c0_197] : memref<8x8x128xf32, #tpu.memory_space<vmem>>, vector<1x1x128xf32>
    tpu.vector_store %arg11[%c6_195, %c7_196, %c0_197], %133 {strides = array<i32>} : memref<8x8x128xf32, #tpu.memory_space<vmem>>, vector<1x1x128xf32>,
    %c2_198 = arith.constant 2 : index
    %c1_199 = arith.constant 1 : index
    %c0_200 = arith.constant 0 : index
    %135 = vector.load %arg10[%c2_198, %c1_199, %c0_200] : memref<6x6x128xf32, #tpu.memory_space<vmem>>, vector<4x4x128xf32>
    %c2_201 = arith.constant 2 : index
    %c0_202 = arith.constant 0 : index
    %c0_203 = arith.constant 0 : index
    %136 = vector.load %arg10[%c2_201, %c0_202, %c0_203] : memref<6x6x128xf32, #tpu.memory_space<vmem>>, vector<4x4x128xf32>
    %c1_204 = arith.constant 1 : index
    %c1_205 = arith.constant 1 : index
    %c0_206 = arith.constant 0 : index
    %137 = vector.load %arg10[%c1_204, %c1_205, %c0_206] : memref<6x6x128xf32, #tpu.memory_space<vmem>>, vector<4x4x128xf32>
    %c1_207 = arith.constant 1 : index
    %c0_208 = arith.constant 0 : index
    %c0_209 = arith.constant 0 : index
    %138 = vector.load %arg10[%c1_207, %c0_208, %c0_209] : memref<6x6x128xf32, #tpu.memory_space<vmem>>, vector<4x4x128xf32>
    %139 = tpu.concatenate %135, %136, %137, %138 in 2 : vector<4x4x128xf32>, vector<4x4x128xf32>, vector<4x4x128xf32>, vector<4x4x128xf32> -> vector<4x4x512xf32>
    %c1_210 = arith.constant 1 : index
    %c0_211 = arith.constant 0 : index
    %c0_212 = arith.constant 0 : index
    %c0_213 = arith.constant 0 : index
    %140 = vector.load %arg3[%c1_210, %c0_211, %c0_212, %c0_213] : memref<2x2x512x128xf32, #tpu.memory_space<vmem>>, vector<1x1x512x128xf32>
    %141 = vector.shape_cast %140 : vector<1x1x512x128xf32> to vector<512x128xf32>
    %cst_214 = arith.constant dense<0.000000e+00> : vector<4x4x128xf32>
    %142 = tpu.matmul %139, %141, %cst_214 {dimension_numbers = #tpu.dot_dimension_numbers<[2], [0], [0, 1], [1], [0, 0, 0, 1, 1, 1], [], []>} : vector<4x4x512xf32>, vector<512x128xf32>, vector<4x4x128xf32> -> vector<4x4x128xf32>
    %c0_215 = arith.constant 0 : index
    %c0_216 = arith.constant 0 : index
    %c0_217 = arith.constant 0 : index
    %143 = vector.load %arg6[%c0_215, %c0_216, %c0_217] : memref<1x1x128xf32, #tpu.memory_space<vmem>>, vector<1x1x128xf32>
    %144 = vector.broadcast %143 : vector<1x1x128xf32> to vector<4x4x128xf32>
    %145 = arith.addf %142, %144 : vector<4x4x128xf32>
    %cst_218 = arith.constant 0.000000e+00 : f32
    %146 = vector.broadcast %cst_218 : f32 to vector<4x4x128xf32>
    %147 = arith.maximumf %145, %146 : vector<4x4x128xf32>
    %148 = vector.extract_strided_slice %147 {offsets = [0, 0, 0], sizes = [1, 1, 128], strides = [1, 1, 1]} : vector<4x4x128xf32> to vector<1x1x128xf32>
    %c1_219 = arith.constant 1 : index
    %c0_220 = arith.constant 0 : index
    %c0_221 = arith.constant 0 : index
    %149 = vector.load %arg11[%c1_219, %c0_220, %c0_221] : memref<8x8x128xf32, #tpu.memory_space<vmem>>, vector<1x1x128xf32>
    tpu.vector_store %arg11[%c1_219, %c0_220, %c0_221], %148 {strides = array<i32>} : memref<8x8x128xf32, #tpu.memory_space<vmem>>, vector<1x1x128xf32>,
    %150 = vector.extract_strided_slice %147 {offsets = [0, 1, 0], sizes = [1, 1, 128], strides = [1, 1, 1]} : vector<4x4x128xf32> to vector<1x1x128xf32>
    %c1_222 = arith.constant 1 : index
    %c2_223 = arith.constant 2 : index
    %c0_224 = arith.constant 0 : index
    %151 = vector.load %arg11[%c1_222, %c2_223, %c0_224] : memref<8x8x128xf32, #tpu.memory_space<vmem>>, vector<1x1x128xf32>
    tpu.vector_store %arg11[%c1_222, %c2_223, %c0_224], %150 {strides = array<i32>} : memref<8x8x128xf32, #tpu.memory_space<vmem>>, vector<1x1x128xf32>,
    %152 = vector.extract_strided_slice %147 {offsets = [0, 2, 0], sizes = [1, 1, 128], strides = [1, 1, 1]} : vector<4x4x128xf32> to vector<1x1x128xf32>
    %c1_225 = arith.constant 1 : index
    %c4_226 = arith.constant 4 : index
    %c0_227 = arith.constant 0 : index
    %153 = vector.load %arg11[%c1_225, %c4_226, %c0_227] : memref<8x8x128xf32, #tpu.memory_space<vmem>>, vector<1x1x128xf32>
    tpu.vector_store %arg11[%c1_225, %c4_226, %c0_227], %152 {strides = array<i32>} : memref<8x8x128xf32, #tpu.memory_space<vmem>>, vector<1x1x128xf32>,
    %154 = vector.extract_strided_slice %147 {offsets = [0, 3, 0], sizes = [1, 1, 128], strides = [1, 1, 1]} : vector<4x4x128xf32> to vector<1x1x128xf32>
    %c1_228 = arith.constant 1 : index
    %c6_229 = arith.constant 6 : index
    %c0_230 = arith.constant 0 : index
    %155 = vector.load %arg11[%c1_228, %c6_229, %c0_230] : memref<8x8x128xf32, #tpu.memory_space<vmem>>, vector<1x1x128xf32>
    tpu.vector_store %arg11[%c1_228, %c6_229, %c0_230], %154 {strides = array<i32>} : memref<8x8x128xf32, #tpu.memory_space<vmem>>, vector<1x1x128xf32>,
    %156 = vector.extract_strided_slice %147 {offsets = [1, 0, 0], sizes = [1, 1, 128], strides = [1, 1, 1]} : vector<4x4x128xf32> to vector<1x1x128xf32>
    %c3_231 = arith.constant 3 : index
    %c0_232 = arith.constant 0 : index
    %c0_233 = arith.constant 0 : index
    %157 = vector.load %arg11[%c3_231, %c0_232, %c0_233] : memref<8x8x128xf32, #tpu.memory_space<vmem>>, vector<1x1x128xf32>
    tpu.vector_store %arg11[%c3_231, %c0_232, %c0_233], %156 {strides = array<i32>} : memref<8x8x128xf32, #tpu.memory_space<vmem>>, vector<1x1x128xf32>,
    %158 = vector.extract_strided_slice %147 {offsets = [1, 1, 0], sizes = [1, 1, 128], strides = [1, 1, 1]} : vector<4x4x128xf32> to vector<1x1x128xf32>
    %c3_234 = arith.constant 3 : index
    %c2_235 = arith.constant 2 : index
    %c0_236 = arith.constant 0 : index
    %159 = vector.load %arg11[%c3_234, %c2_235, %c0_236] : memref<8x8x128xf32, #tpu.memory_space<vmem>>, vector<1x1x128xf32>
    tpu.vector_store %arg11[%c3_234, %c2_235, %c0_236], %158 {strides = array<i32>} : memref<8x8x128xf32, #tpu.memory_space<vmem>>, vector<1x1x128xf32>,
    %160 = vector.extract_strided_slice %147 {offsets = [1, 2, 0], sizes = [1, 1, 128], strides = [1, 1, 1]} : vector<4x4x128xf32> to vector<1x1x128xf32>
    %c3_237 = arith.constant 3 : index
    %c4_238 = arith.constant 4 : index
    %c0_239 = arith.constant 0 : index
    %161 = vector.load %arg11[%c3_237, %c4_238, %c0_239] : memref<8x8x128xf32, #tpu.memory_space<vmem>>, vector<1x1x128xf32>
    tpu.vector_store %arg11[%c3_237, %c4_238, %c0_239], %160 {strides = array<i32>} : memref<8x8x128xf32, #tpu.memory_space<vmem>>, vector<1x1x128xf32>,
    %162 = vector.extract_strided_slice %147 {offsets = [1, 3, 0], sizes = [1, 1, 128], strides = [1, 1, 1]} : vector<4x4x128xf32> to vector<1x1x128xf32>
    %c3_240 = arith.constant 3 : index
    %c6_241 = arith.constant 6 : index
    %c0_242 = arith.constant 0 : index
    %163 = vector.load %arg11[%c3_240, %c6_241, %c0_242] : memref<8x8x128xf32, #tpu.memory_space<vmem>>, vector<1x1x128xf32>
    tpu.vector_store %arg11[%c3_240, %c6_241, %c0_242], %162 {strides = array<i32>} : memref<8x8x128xf32, #tpu.memory_space<vmem>>, vector<1x1x128xf32>,
    %164 = vector.extract_strided_slice %147 {offsets = [2, 0, 0], sizes = [1, 1, 128], strides = [1, 1, 1]} : vector<4x4x128xf32> to vector<1x1x128xf32>
    %c5_243 = arith.constant 5 : index
    %c0_244 = arith.constant 0 : index
    %c0_245 = arith.constant 0 : index
    %165 = vector.load %arg11[%c5_243, %c0_244, %c0_245] : memref<8x8x128xf32, #tpu.memory_space<vmem>>, vector<1x1x128xf32>
    tpu.vector_store %arg11[%c5_243, %c0_244, %c0_245], %164 {strides = array<i32>} : memref<8x8x128xf32, #tpu.memory_space<vmem>>, vector<1x1x128xf32>,
    %166 = vector.extract_strided_slice %147 {offsets = [2, 1, 0], sizes = [1, 1, 128], strides = [1, 1, 1]} : vector<4x4x128xf32> to vector<1x1x128xf32>
    %c5_246 = arith.constant 5 : index
    %c2_247 = arith.constant 2 : index
    %c0_248 = arith.constant 0 : index
    %167 = vector.load %arg11[%c5_246, %c2_247, %c0_248] : memref<8x8x128xf32, #tpu.memory_space<vmem>>, vector<1x1x128xf32>
    tpu.vector_store %arg11[%c5_246, %c2_247, %c0_248], %166 {strides = array<i32>} : memref<8x8x128xf32, #tpu.memory_space<vmem>>, vector<1x1x128xf32>,
    %168 = vector.extract_strided_slice %147 {offsets = [2, 2, 0], sizes = [1, 1, 128], strides = [1, 1, 1]} : vector<4x4x128xf32> to vector<1x1x128xf32>
    %c5_249 = arith.constant 5 : index
    %c4_250 = arith.constant 4 : index
    %c0_251 = arith.constant 0 : index
    %169 = vector.load %arg11[%c5_249, %c4_250, %c0_251] : memref<8x8x128xf32, #tpu.memory_space<vmem>>, vector<1x1x128xf32>
    tpu.vector_store %arg11[%c5_249, %c4_250, %c0_251], %168 {strides = array<i32>} : memref<8x8x128xf32, #tpu.memory_space<vmem>>, vector<1x1x128xf32>,
    %170 = vector.extract_strided_slice %147 {offsets = [2, 3, 0], sizes = [1, 1, 128], strides = [1, 1, 1]} : vector<4x4x128xf32> to vector<1x1x128xf32>
    %c5_252 = arith.constant 5 : index
    %c6_253 = arith.constant 6 : index
    %c0_254 = arith.constant 0 : index
    %171 = vector.load %arg11[%c5_252, %c6_253, %c0_254] : memref<8x8x128xf32, #tpu.memory_space<vmem>>, vector<1x1x128xf32>
    tpu.vector_store %arg11[%c5_252, %c6_253, %c0_254], %170 {strides = array<i32>} : memref<8x8x128xf32, #tpu.memory_space<vmem>>, vector<1x1x128xf32>,
    %172 = vector.extract_strided_slice %147 {offsets = [3, 0, 0], sizes = [1, 1, 128], strides = [1, 1, 1]} : vector<4x4x128xf32> to vector<1x1x128xf32>
    %c7_255 = arith.constant 7 : index
    %c0_256 = arith.constant 0 : index
    %c0_257 = arith.constant 0 : index
    %173 = vector.load %arg11[%c7_255, %c0_256, %c0_257] : memref<8x8x128xf32, #tpu.memory_space<vmem>>, vector<1x1x128xf32>
    tpu.vector_store %arg11[%c7_255, %c0_256, %c0_257], %172 {strides = array<i32>} : memref<8x8x128xf32, #tpu.memory_space<vmem>>, vector<1x1x128xf32>,
    %174 = vector.extract_strided_slice %147 {offsets = [3, 1, 0], sizes = [1, 1, 128], strides = [1, 1, 1]} : vector<4x4x128xf32> to vector<1x1x128xf32>
    %c7_258 = arith.constant 7 : index
    %c2_259 = arith.constant 2 : index
    %c0_260 = arith.constant 0 : index
    %175 = vector.load %arg11[%c7_258, %c2_259, %c0_260] : memref<8x8x128xf32, #tpu.memory_space<vmem>>, vector<1x1x128xf32>
    tpu.vector_store %arg11[%c7_258, %c2_259, %c0_260], %174 {strides = array<i32>} : memref<8x8x128xf32, #tpu.memory_space<vmem>>, vector<1x1x128xf32>,
    %176 = vector.extract_strided_slice %147 {offsets = [3, 2, 0], sizes = [1, 1, 128], strides = [1, 1, 1]} : vector<4x4x128xf32> to vector<1x1x128xf32>
    %c7_261 = arith.constant 7 : index
    %c4_262 = arith.constant 4 : index
    %c0_263 = arith.constant 0 : index
    %177 = vector.load %arg11[%c7_261, %c4_262, %c0_263] : memref<8x8x128xf32, #tpu.memory_space<vmem>>, vector<1x1x128xf32>
    tpu.vector_store %arg11[%c7_261, %c4_262, %c0_263], %176 {strides = array<i32>} : memref<8x8x128xf32, #tpu.memory_space<vmem>>, vector<1x1x128xf32>,
    %178 = vector.extract_strided_slice %147 {offsets = [3, 3, 0], sizes = [1, 1, 128], strides = [1, 1, 1]} : vector<4x4x128xf32> to vector<1x1x128xf32>
    %c7_264 = arith.constant 7 : index
    %c6_265 = arith.constant 6 : index
    %c0_266 = arith.constant 0 : index
    %179 = vector.load %arg11[%c7_264, %c6_265, %c0_266] : memref<8x8x128xf32, #tpu.memory_space<vmem>>, vector<1x1x128xf32>
    tpu.vector_store %arg11[%c7_264, %c6_265, %c0_266], %178 {strides = array<i32>} : memref<8x8x128xf32, #tpu.memory_space<vmem>>, vector<1x1x128xf32>,
    %c2_267 = arith.constant 2 : index
    %c2_268 = arith.constant 2 : index
    %c0_269 = arith.constant 0 : index
    %180 = vector.load %arg10[%c2_267, %c2_268, %c0_269] : memref<6x6x128xf32, #tpu.memory_space<vmem>>, vector<4x4x128xf32>
    %c2_270 = arith.constant 2 : index
    %c1_271 = arith.constant 1 : index
    %c0_272 = arith.constant 0 : index
    %181 = vector.load %arg10[%c2_270, %c1_271, %c0_272] : memref<6x6x128xf32, #tpu.memory_space<vmem>>, vector<4x4x128xf32>
    %c1_273 = arith.constant 1 : index
    %c2_274 = arith.constant 2 : index
    %c0_275 = arith.constant 0 : index
    %182 = vector.load %arg10[%c1_273, %c2_274, %c0_275] : memref<6x6x128xf32, #tpu.memory_space<vmem>>, vector<4x4x128xf32>
    %c1_276 = arith.constant 1 : index
    %c1_277 = arith.constant 1 : index
    %c0_278 = arith.constant 0 : index
    %183 = vector.load %arg10[%c1_276, %c1_277, %c0_278] : memref<6x6x128xf32, #tpu.memory_space<vmem>>, vector<4x4x128xf32>
    %184 = tpu.concatenate %180, %181, %182, %183 in 2 : vector<4x4x128xf32>, vector<4x4x128xf32>, vector<4x4x128xf32>, vector<4x4x128xf32> -> vector<4x4x512xf32>
    %c1_279 = arith.constant 1 : index
    %c1_280 = arith.constant 1 : index
    %c0_281 = arith.constant 0 : index
    %c0_282 = arith.constant 0 : index
    %185 = vector.load %arg3[%c1_279, %c1_280, %c0_281, %c0_282] : memref<2x2x512x128xf32, #tpu.memory_space<vmem>>, vector<1x1x512x128xf32>
    %186 = vector.shape_cast %185 : vector<1x1x512x128xf32> to vector<512x128xf32>
    %cst_283 = arith.constant dense<0.000000e+00> : vector<4x4x128xf32>
    %187 = tpu.matmul %184, %186, %cst_283 {dimension_numbers = #tpu.dot_dimension_numbers<[2], [0], [0, 1], [1], [0, 0, 0, 1, 1, 1], [], []>} : vector<4x4x512xf32>, vector<512x128xf32>, vector<4x4x128xf32> -> vector<4x4x128xf32>
    %c0_284 = arith.constant 0 : index
    %c0_285 = arith.constant 0 : index
    %c0_286 = arith.constant 0 : index
    %188 = vector.load %arg6[%c0_284, %c0_285, %c0_286] : memref<1x1x128xf32, #tpu.memory_space<vmem>>, vector<1x1x128xf32>
    %189 = vector.broadcast %188 : vector<1x1x128xf32> to vector<4x4x128xf32>
    %190 = arith.addf %187, %189 : vector<4x4x128xf32>
    %cst_287 = arith.constant 0.000000e+00 : f32
    %191 = vector.broadcast %cst_287 : f32 to vector<4x4x128xf32>
    %192 = arith.maximumf %190, %191 : vector<4x4x128xf32>
    %193 = vector.extract_strided_slice %192 {offsets = [0, 0, 0], sizes = [1, 1, 128], strides = [1, 1, 1]} : vector<4x4x128xf32> to vector<1x1x128xf32>
    %c1_288 = arith.constant 1 : index
    %c1_289 = arith.constant 1 : index
    %c0_290 = arith.constant 0 : index
    %194 = vector.load %arg11[%c1_288, %c1_289, %c0_290] : memref<8x8x128xf32, #tpu.memory_space<vmem>>, vector<1x1x128xf32>
    tpu.vector_store %arg11[%c1_288, %c1_289, %c0_290], %193 {strides = array<i32>} : memref<8x8x128xf32, #tpu.memory_space<vmem>>, vector<1x1x128xf32>,
    %195 = vector.extract_strided_slice %192 {offsets = [0, 1, 0], sizes = [1, 1, 128], strides = [1, 1, 1]} : vector<4x4x128xf32> to vector<1x1x128xf32>
    %c1_291 = arith.constant 1 : index
    %c3_292 = arith.constant 3 : index
    %c0_293 = arith.constant 0 : index
    %196 = vector.load %arg11[%c1_291, %c3_292, %c0_293] : memref<8x8x128xf32, #tpu.memory_space<vmem>>, vector<1x1x128xf32>
    tpu.vector_store %arg11[%c1_291, %c3_292, %c0_293], %195 {strides = array<i32>} : memref<8x8x128xf32, #tpu.memory_space<vmem>>, vector<1x1x128xf32>,
    %197 = vector.extract_strided_slice %192 {offsets = [0, 2, 0], sizes = [1, 1, 128], strides = [1, 1, 1]} : vector<4x4x128xf32> to vector<1x1x128xf32>
    %c1_294 = arith.constant 1 : index
    %c5_295 = arith.constant 5 : index
    %c0_296 = arith.constant 0 : index
    %198 = vector.load %arg11[%c1_294, %c5_295, %c0_296] : memref<8x8x128xf32, #tpu.memory_space<vmem>>, vector<1x1x128xf32>
    tpu.vector_store %arg11[%c1_294, %c5_295, %c0_296], %197 {strides = array<i32>} : memref<8x8x128xf32, #tpu.memory_space<vmem>>, vector<1x1x128xf32>,
    %199 = vector.extract_strided_slice %192 {offsets = [0, 3, 0], sizes = [1, 1, 128], strides = [1, 1, 1]} : vector<4x4x128xf32> to vector<1x1x128xf32>
    %c1_297 = arith.constant 1 : index
    %c7_298 = arith.constant 7 : index
    %c0_299 = arith.constant 0 : index
    %200 = vector.load %arg11[%c1_297, %c7_298, %c0_299] : memref<8x8x128xf32, #tpu.memory_space<vmem>>, vector<1x1x128xf32>
    tpu.vector_store %arg11[%c1_297, %c7_298, %c0_299], %199 {strides = array<i32>} : memref<8x8x128xf32, #tpu.memory_space<vmem>>, vector<1x1x128xf32>,
    %201 = vector.extract_strided_slice %192 {offsets = [1, 0, 0], sizes = [1, 1, 128], strides = [1, 1, 1]} : vector<4x4x128xf32> to vector<1x1x128xf32>
    %c3_300 = arith.constant 3 : index
    %c1_301 = arith.constant 1 : index
    %c0_302 = arith.constant 0 : index
    %202 = vector.load %arg11[%c3_300, %c1_301, %c0_302] : memref<8x8x128xf32, #tpu.memory_space<vmem>>, vector<1x1x128xf32>
    tpu.vector_store %arg11[%c3_300, %c1_301, %c0_302], %201 {strides = array<i32>} : memref<8x8x128xf32, #tpu.memory_space<vmem>>, vector<1x1x128xf32>,
    %203 = vector.extract_strided_slice %192 {offsets = [1, 1, 0], sizes = [1, 1, 128], strides = [1, 1, 1]} : vector<4x4x128xf32> to vector<1x1x128xf32>
    %c3_303 = arith.constant 3 : index
    %c3_304 = arith.constant 3 : index
    %c0_305 = arith.constant 0 : index
    %204 = vector.load %arg11[%c3_303, %c3_304, %c0_305] : memref<8x8x128xf32, #tpu.memory_space<vmem>>, vector<1x1x128xf32>
    tpu.vector_store %arg11[%c3_303, %c3_304, %c0_305], %203 {strides = array<i32>} : memref<8x8x128xf32, #tpu.memory_space<vmem>>, vector<1x1x128xf32>,
    %205 = vector.extract_strided_slice %192 {offsets = [1, 2, 0], sizes = [1, 1, 128], strides = [1, 1, 1]} : vector<4x4x128xf32> to vector<1x1x128xf32>
    %c3_306 = arith.constant 3 : index
    %c5_307 = arith.constant 5 : index
    %c0_308 = arith.constant 0 : index
    %206 = vector.load %arg11[%c3_306, %c5_307, %c0_308] : memref<8x8x128xf32, #tpu.memory_space<vmem>>, vector<1x1x128xf32>
    tpu.vector_store %arg11[%c3_306, %c5_307, %c0_308], %205 {strides = array<i32>} : memref<8x8x128xf32, #tpu.memory_space<vmem>>, vector<1x1x128xf32>,
    %207 = vector.extract_strided_slice %192 {offsets = [1, 3, 0], sizes = [1, 1, 128], strides = [1, 1, 1]} : vector<4x4x128xf32> to vector<1x1x128xf32>
    %c3_309 = arith.constant 3 : index
    %c7_310 = arith.constant 7 : index
    %c0_311 = arith.constant 0 : index
    %208 = vector.load %arg11[%c3_309, %c7_310, %c0_311] : memref<8x8x128xf32, #tpu.memory_space<vmem>>, vector<1x1x128xf32>
    tpu.vector_store %arg11[%c3_309, %c7_310, %c0_311], %207 {strides = array<i32>} : memref<8x8x128xf32, #tpu.memory_space<vmem>>, vector<1x1x128xf32>,
    %209 = vector.extract_strided_slice %192 {offsets = [2, 0, 0], sizes = [1, 1, 128], strides = [1, 1, 1]} : vector<4x4x128xf32> to vector<1x1x128xf32>
    %c5_312 = arith.constant 5 : index
    %c1_313 = arith.constant 1 : index
    %c0_314 = arith.constant 0 : index
    %210 = vector.load %arg11[%c5_312, %c1_313, %c0_314] : memref<8x8x128xf32, #tpu.memory_space<vmem>>, vector<1x1x128xf32>
    tpu.vector_store %arg11[%c5_312, %c1_313, %c0_314], %209 {strides = array<i32>} : memref<8x8x128xf32, #tpu.memory_space<vmem>>, vector<1x1x128xf32>,
    %211 = vector.extract_strided_slice %192 {offsets = [2, 1, 0], sizes = [1, 1, 128], strides = [1, 1, 1]} : vector<4x4x128xf32> to vector<1x1x128xf32>
    %c5_315 = arith.constant 5 : index
    %c3_316 = arith.constant 3 : index
    %c0_317 = arith.constant 0 : index
    %212 = vector.load %arg11[%c5_315, %c3_316, %c0_317] : memref<8x8x128xf32, #tpu.memory_space<vmem>>, vector<1x1x128xf32>
    tpu.vector_store %arg11[%c5_315, %c3_316, %c0_317], %211 {strides = array<i32>} : memref<8x8x128xf32, #tpu.memory_space<vmem>>, vector<1x1x128xf32>,
    %213 = vector.extract_strided_slice %192 {offsets = [2, 2, 0], sizes = [1, 1, 128], strides = [1, 1, 1]} : vector<4x4x128xf32> to vector<1x1x128xf32>
    %c5_318 = arith.constant 5 : index
    %c5_319 = arith.constant 5 : index
    %c0_320 = arith.constant 0 : index
    %214 = vector.load %arg11[%c5_318, %c5_319, %c0_320] : memref<8x8x128xf32, #tpu.memory_space<vmem>>, vector<1x1x128xf32>
    tpu.vector_store %arg11[%c5_318, %c5_319, %c0_320], %213 {strides = array<i32>} : memref<8x8x128xf32, #tpu.memory_space<vmem>>, vector<1x1x128xf32>,
    %215 = vector.extract_strided_slice %192 {offsets = [2, 3, 0], sizes = [1, 1, 128], strides = [1, 1, 1]} : vector<4x4x128xf32> to vector<1x1x128xf32>
    %c5_321 = arith.constant 5 : index
    %c7_322 = arith.constant 7 : index
    %c0_323 = arith.constant 0 : index
    %216 = vector.load %arg11[%c5_321, %c7_322, %c0_323] : memref<8x8x128xf32, #tpu.memory_space<vmem>>, vector<1x1x128xf32>
    tpu.vector_store %arg11[%c5_321, %c7_322, %c0_323], %215 {strides = array<i32>} : memref<8x8x128xf32, #tpu.memory_space<vmem>>, vector<1x1x128xf32>,
    %217 = vector.extract_strided_slice %192 {offsets = [3, 0, 0], sizes = [1, 1, 128], strides = [1, 1, 1]} : vector<4x4x128xf32> to vector<1x1x128xf32>
    %c7_324 = arith.constant 7 : index
    %c1_325 = arith.constant 1 : index
    %c0_326 = arith.constant 0 : index
    %218 = vector.load %arg11[%c7_324, %c1_325, %c0_326] : memref<8x8x128xf32, #tpu.memory_space<vmem>>, vector<1x1x128xf32>
    tpu.vector_store %arg11[%c7_324, %c1_325, %c0_326], %217 {strides = array<i32>} : memref<8x8x128xf32, #tpu.memory_space<vmem>>, vector<1x1x128xf32>,
    %219 = vector.extract_strided_slice %192 {offsets = [3, 1, 0], sizes = [1, 1, 128], strides = [1, 1, 1]} : vector<4x4x128xf32> to vector<1x1x128xf32>
    %c7_327 = arith.constant 7 : index
    %c3_328 = arith.constant 3 : index
    %c0_329 = arith.constant 0 : index
    %220 = vector.load %arg11[%c7_327, %c3_328, %c0_329] : memref<8x8x128xf32, #tpu.memory_space<vmem>>, vector<1x1x128xf32>
    tpu.vector_store %arg11[%c7_327, %c3_328, %c0_329], %219 {strides = array<i32>} : memref<8x8x128xf32, #tpu.memory_space<vmem>>, vector<1x1x128xf32>,
    %221 = vector.extract_strided_slice %192 {offsets = [3, 2, 0], sizes = [1, 1, 128], strides = [1, 1, 1]} : vector<4x4x128xf32> to vector<1x1x128xf32>
    %c7_330 = arith.constant 7 : index
    %c5_331 = arith.constant 5 : index
    %c0_332 = arith.constant 0 : index
    %222 = vector.load %arg11[%c7_330, %c5_331, %c0_332] : memref<8x8x128xf32, #tpu.memory_space<vmem>>, vector<1x1x128xf32>
    tpu.vector_store %arg11[%c7_330, %c5_331, %c0_332], %221 {strides = array<i32>} : memref<8x8x128xf32, #tpu.memory_space<vmem>>, vector<1x1x128xf32>,
    %223 = vector.extract_strided_slice %192 {offsets = [3, 3, 0], sizes = [1, 1, 128], strides = [1, 1, 1]} : vector<4x4x128xf32> to vector<1x1x128xf32>
    %c7_333 = arith.constant 7 : index
    %c7_334 = arith.constant 7 : index
    %c0_335 = arith.constant 0 : index
    %224 = vector.load %arg11[%c7_333, %c7_334, %c0_335] : memref<8x8x128xf32, #tpu.memory_space<vmem>>, vector<1x1x128xf32>
    tpu.vector_store %arg11[%c7_333, %c7_334, %c0_335], %223 {strides = array<i32>} : memref<8x8x128xf32, #tpu.memory_space<vmem>>, vector<1x1x128xf32>,
    %c0_336 = arith.constant 0 : index
    %c0_337 = arith.constant 0 : index
    %c0_338 = arith.constant 0 : index
    %225 = vector.load %arg11[%c0_336, %c0_337, %c0_338] : memref<8x8x128xf32, #tpu.memory_space<vmem>>, vector<8x8x128xf32>
    %c0_339 = arith.constant 0 : index
    %c0_340 = arith.constant 0 : index
    %226 = vector.load %arg4[%c0_339, %c0_340] : memref<128x512xf32, #tpu.memory_space<vmem>>, vector<128x512xf32>
    %cst_341 = arith.constant dense<0.000000e+00> : vector<8x8x512xf32>
    %227 = tpu.matmul %225, %226, %cst_341 {dimension_numbers = #tpu.dot_dimension_numbers<[2], [0], [0, 1], [1], [0, 0, 0, 1, 1, 1], [], []>} : vector<8x8x128xf32>, vector<128x512xf32>, vector<8x8x512xf32> -> vector<8x8x512xf32>
    %c0_342 = arith.constant 0 : index
    %c0_343 = arith.constant 0 : index
    %c0_344 = arith.constant 0 : index
    %228 = vector.load %arg7[%c0_342, %c0_343, %c0_344] : memref<1x1x512xf32, #tpu.memory_space<vmem>>, vector<1x1x512xf32>
    %229 = vector.broadcast %228 : vector<1x1x512xf32> to vector<8x8x512xf32>
    %230 = arith.addf %227, %229 : vector<8x8x512xf32>
    %231 = math.tanh %230 : vector<8x8x512xf32>
    %c0_345 = arith.constant 0 : index
    %c0_346 = arith.constant 0 : index
    %c0_347 = arith.constant 0 : index
    %c0_348 = arith.constant 0 : index
    %232 = vector.load %arg8[%c0_345, %c0_346, %c0_347, %c0_348] : memref<1x8x8x512xf32, #tpu.memory_space<vmem>>, vector<1x8x8x512xf32>
    %233 = vector.shape_cast %232 : vector<1x8x8x512xf32> to vector<8x8x512xf32>
    %234 = vector.shape_cast %231 : vector<8x8x512xf32> to vector<1x8x8x512xf32>
    tpu.vector_store %arg8[%c0_345, %c0_346, %c0_347, %c0_348], %234 {strides = array<i32>} : memref<1x8x8x512xf32, #tpu.memory_space<vmem>>, vector<1x8x8x512xf32>,
    return
  }
  func.func @transform_0(%arg0: i32) -> (i32, i32, i32, i32) {
    %c0_i32 = arith.constant 0 : i32
    %c0_i32_0 = arith.constant 0 : i32
    %c0_i32_1 = arith.constant 0 : i32
    %c0_i32_2 = arith.constant 0 : i32
    return %arg0, %c0_i32, %c0_i32_0, %c0_i32_1 : i32, i32, i32, i32
  }
  func.func @transform_1(%arg0: i32) -> (i32, i32) {
    %c0_i32 = arith.constant 0 : i32
    %c0_i32_0 = arith.constant 0 : i32
    %c0_i32_1 = arith.constant 0 : i32
    return %c0_i32, %c0_i32_0 : i32, i32
  }
  func.func @transform_2(%arg0: i32) -> (i32, i32, i32, i32) {
    %c0_i32 = arith.constant 0 : i32
    %c0_i32_0 = arith.constant 0 : i32
    %c0_i32_1 = arith.constant 0 : i32
    %c0_i32_2 = arith.constant 0 : i32
    %c0_i32_3 = arith.constant 0 : i32
    return %c0_i32, %c0_i32_0, %c0_i32_1, %c0_i32_2 : i32, i32, i32, i32
  }
  func.func @transform_3(%arg0: i32) -> (i32, i32) {
    %c0_i32 = arith.constant 0 : i32
    %c0_i32_0 = arith.constant 0 : i32
    %c0_i32_1 = arith.constant 0 : i32
    return %c0_i32, %c0_i32_0 : i32, i32
  }
  func.func @transform_4(%arg0: i32) -> (i32, i32, i32) {
    %c0_i32 = arith.constant 0 : i32
    %c0_i32_0 = arith.constant 0 : i32
    %c0_i32_1 = arith.constant 0 : i32
    %c0_i32_2 = arith.constant 0 : i32
    return %c0_i32, %c0_i32_0, %c0_i32_1 : i32, i32, i32
  }
  func.func @transform_5(%arg0: i32) -> (i32, i32, i32) {
    %c0_i32 = arith.constant 0 : i32
    %c0_i32_0 = arith.constant 0 : i32
    %c0_i32_1 = arith.constant 0 : i32
    %c0_i32_2 = arith.constant 0 : i32
    return %c0_i32, %c0_i32_0, %c0_i32_1 : i32, i32, i32
  }
  func.func @transform_6(%arg0: i32) -> (i32, i32, i32) {
    %c0_i32 = arith.constant 0 : i32
    %c0_i32_0 = arith.constant 0 : i32
    %c0_i32_1 = arith.constant 0 : i32
    %c0_i32_2 = arith.constant 0 : i32
    return %c0_i32, %c0_i32_0, %c0_i32_1 : i32, i32, i32
  }
  func.func @transform_7(%arg0: i32) -> (i32, i32, i32, i32) {
    %c0_i32 = arith.constant 0 : i32
    %c0_i32_0 = arith.constant 0 : i32
    %c0_i32_1 = arith.constant 0 : i32
    %c0_i32_2 = arith.constant 0 : i32
    return %arg0, %c0_i32, %c0_i32_0, %c0_i32_1 : i32, i32, i32, i32
  }
}

</mosaic_0001>

<bundles_post_ra>
// kernel: forward.1
= control target key start
LH: loop header
LB: loop body
LE: loop exit
PB: predicated region body
PF: predicated region fallthrough
CT: control target
= control target key end

     0   :  { %12 = vsyncpa [#allocation6], 0  ;;  %s2636_s0 = inlined_call_operand.vmem [shape: f32[2,2,2,128], index: 0, kind: input, shape index: {}]   ;;  %s2637_s1 = inlined_call_operand.hbm [shape: f32[128,512], index: 1, kind: input, shape index: {}]   ;;  %s2638_s2 = inlined_call_operand.hbm [shape: f32[2,2,512,128], index: 2, kind: input, shape index: {}]   ;;  %s2639_s3 = inlined_call_operand.hbm [shape: f32[128,512], index: 3, kind: input, shape index: {}]   ;;  %s2640_s4 = inlined_call_operand.vmem [shape: f32[1,1,512], index: 4, kind: input, shape index: {}]   ;;  %s2641_s5 = inlined_call_operand.vmem [shape: f32[1,1,128], index: 5, kind: input, shape index: {}]   ;;  %s2642_s6 = inlined_call_operand.vmem [shape: f32[1,1,512], index: 6, kind: input, shape index: {}]   ;;  %s2643_s7 = inlined_call_operand.vmem [shape: f32[2,8,8,512], index: 7, kind: output, shape index: {}]  }
   0x1   :  { %13 = vsyncpa [#allocation8], 0  ;;  %s2376_s24 = smov 0  }
   0x2 LB: > { %s227_s27 = sshll.u32 %s2638_s2, 4  ;;  %s2385_s28 = sadd.s32 4294967295, %s2326_s24   ;;  %s2326_s24 = sphi %s2376_s24, %s19_s24   ;;  %s228_s27 = int_to_ptr.hbm [resolvable:$true] %s227_s27 }
   0x3   : > { %p2093_p0 = scmp.ge.s32.totalorder %s2326_s24, 1  ;;  %p202_p1 = scmp.lt.s32.totalorder %s2326_s24, 3 }
   0x4   : > { %p2132_p2 = scmp.eq.s32.totalorder %s2385_s28, 0  ;;  %s2328_s30 = smov [#allocation7]  }
   0x5   : > { %p2390_p3 = pnand %p2093_p0, %p202_p1  ;;  %s229_s8 = sshll.u32 %s2328_s30, 4  ;;  %s230_s8 = int_to_ptr.vmem [resolvable:$true] %s229_s8 }
   0x6   : > { %s213_s11 = sshll.u32 %s2637_s1, 4  ;;  %s2329_s13 = smov [#allocation5]   ;;  %s214_s11 = int_to_ptr.hbm [resolvable:$true] %s213_s11 }
   0x7   : > { %p2122_p4 = pneg %p2390_p3  ;;  %s215_s14 = sshll.u32 %s2329_s13, 4  ;;  %s216_s14 = int_to_ptr.vmem [resolvable:$true] %s215_s14 }
   0x8   : > { %s2330_s15 = smov 128   ;;  %s2331_s16 = smov 8  }
   0x9   : > { %p2401_p5 = pnand %p2132_p2, %p2122_p4  ;;  %s241_s19 = sshll.u32 %s2639_s3, 4  ;;  %s242_s19 = int_to_ptr.hbm [resolvable:$true] %s241_s19 }
   0xa   : > { %s2332_s20 = smov 512   ;;  %s2333_s21 = smov 32  }
   0xb   : > { %2128 = dma.hbm_to_vmem [thread:$0]  (!%p2401_p5), %s228_s27, 32768, %s230_s8, [#allocation8], %s2330_s15, %s2330_s15, %s2331_s16  }
   0xc   : > { %2125 = dma.hbm_to_vmem [thread:$0]  (!%p2401_p5), %s214_s11, 8192, %s216_s14, [#allocation6], %s2332_s20, %s2332_s20, %s2333_s21  }
   0xd   : > { %s2334_s22 = smov [#allocation9]   ;;  %276 = sbr.rel (%p2390_p3) target bundleno = 641 (0x281), region = 48 }
   0xe   : > { %s243_s23 = sshll.u32 %s2334_s22, 4  ;;  %s244_s23 = int_to_ptr.vmem [resolvable:$true] %s243_s23 }
   0xf   : > { %2131 = dma.hbm_to_vmem [thread:$0]  (!%p2401_p5), %s242_s19, 8192, %s244_s23, [#allocation8], %s2332_s20, %s2332_s20, %s2333_s21  }
  0x12   : > { %2317 = dma.done.wait (%p2132_p2), [#allocation6], 8192  }
  0x13   : > { %2319 = vsyncadd (%p2132_p2), [#allocation6], 4294959104 }
  0x14   : > { %2321 = dma.done.wait (%p2132_p2), [#allocation8], 40960  }
  0x15   : > { %2323 = vsyncadd (%p2132_p2), [#allocation8], 4294926336  ;;  %v403_v0 = vld [vmem:[#allocation5 + $0x1f0] sm:$0xff]  ;;  %v404_v1 = vld [vmem:[#allocation5 + $0x1f8] sm:$0xff]  ;;  %p319_p6 = scmp.lt.s32.totalorder %s2385_s28, 1  ;;  %vm414_vm0 = vcmask 1041408  }
  0x16   : > { %v399_v2 = vld [vmem:[#allocation5 + $0x1d0] sm:$0xff]  ;;  %478 = vmatpush.msra.mxu2 %v403_v0  ;;  %498 = vmatpush.msra.mxu3 %v404_v1  ;;  %v400_v3 = vld [vmem:[#allocation5 + $0x1d8] sm:$0xff]  ;;  %v402_v6 = vld [vmem:[#allocation5 + $0x1e8] sm:$0xff]  ;;  %vm416_vm1 = vcmask 1045508   ;;  %vm418_vm2 = vcmask 1043456   ;;  %vm528_vm3 = vcmask 1043458  }
  0x17   : > { %v395_v4 = vld [vmem:[#allocation5 + $0x1b0] sm:$0xff]  ;;  %v396_v5 = vld [vmem:[#allocation5 + $0x1b8] sm:$0xff]  ;;  %v401_v7 = vld [vmem:[#allocation5 + $0x1e0] sm:$0xff]  ;;  %458 = vmatpush.msra.mxu1 %v402_v6  ;;  %s2647_s28 = smov (!%p319_p6, %s2385_s28), 1  ;;  %vm530_vm4 = vcmask 1045504   ;;  %vm532_vm5 = vcmask 1045506  }
  0x18   : > { %479 = vmatpush.msra.mxu2 %v399_v2  ;;  %499 = vmatpush.msra.mxu3 %v400_v3  ;;  %v398_v8 = vld [vmem:[#allocation5 + $0x1c8] sm:$0xff]  ;;  %v391_v9 = vld [vmem:[#allocation5 + $0x190] sm:$0xff]  ;;  %v392_v10 = vld [vmem:[#allocation5 + $0x198] sm:$0xff]  ;;  %s2108_s25 = sshll.u32 %s2647_s28, 2  ;;  %s2109_s19 = sshll.u32 %s2647_s28, 8 }
  0x19   : > { %438 = vmatpush.msra.mxu0 %v401_v7  ;;  %v397_v11 = vld [vmem:[#allocation5 + $0x1c0] sm:$0xff]  ;;  %v394_v12 = vld [vmem:[#allocation5 + $0x1a8] sm:$0xff]  ;;  %459 = vmatpush.msra.mxu1 %v398_v8  ;;  %v387_v14 = vld [vmem:[#allocation5 + $0x170] sm:$0xff]  ;;  %s323_s29 = scalar_lea.vmem %s2636_s0, %s2108_s25  ;;  %s2569_s22 = scalar_lea.vmem %s2643_s7, %s2109_s19 }
  0x1a   : > { %480 = vmatpush.msra.mxu2 %v395_v4  ;;  %500 = vmatpush.msra.mxu3 %v396_v5  ;;  %v393_v13 = vld [vmem:[#allocation5 + $0x1a0] sm:$0xff]  ;;  %v388_v15 = vld [vmem:[#allocation5 + $0x178] sm:$0xff]  ;;  %v390_v16 = vld [vmem:[#allocation5 + $0x188] sm:$0xff] }
  0x1b   : > { %439 = vmatpush.msra.mxu0 %v397_v11  ;;  %v389_v17 = vld [vmem:[#allocation5 + $0x180] sm:$0xff]  ;;  %460 = vmatpush.msra.mxu1 %v394_v12  ;;  %v383_v18 = vld [vmem:[#allocation5 + $0x150] sm:$0xff]  ;;  %v384_v19 = vld [vmem:[#allocation5 + $0x158] sm:$0xff] }
  0x1c   : > { %481 = vmatpush.msra.mxu2 %v391_v9  ;;  %501 = vmatpush.msra.mxu3 %v392_v10  ;;  %v386_v20 = vld [vmem:[#allocation5 + $0x168] sm:$0xff]  ;;  %v385_v21 = vld [vmem:[#allocation5 + $0x160] sm:$0xff]  ;;  %v379_v22 = vld [vmem:[#allocation5 + $0x130] sm:$0xff] }
  0x1d   : > { %440 = vmatpush.msra.mxu0 %v393_v13  ;;  %461 = vmatpush.msra.mxu1 %v390_v16  ;;  %v380_v23 = vld [vmem:[#allocation5 + $0x138] sm:$0xff]  ;;  %v382_v24 = vld [vmem:[#allocation5 + $0x148] sm:$0xff]  ;;  %v381_v25 = vld [vmem:[#allocation5 + $0x140] sm:$0xff] }
  0x1e   : > { %482 = vmatpush.msra.mxu2 %v387_v14  ;;  %502 = vmatpush.msra.mxu3 %v388_v15  ;;  %v375_v26 = vld [vmem:[#allocation5 + $0x110] sm:$0xff]  ;;  %v376_v27 = vld [vmem:[#allocation5 + $0x118] sm:$0xff]  ;;  %v378_v28 = vld [vmem:[#allocation5 + $0x128] sm:$0xff] }
  0x1f   : > { %441 = vmatpush.msra.mxu0 %v389_v17  ;;  %462 = vmatpush.msra.mxu1 %v386_v20  ;;  %v377_v29 = vld [vmem:[#allocation5 + $0x120] sm:$0xff]  ;;  %v371_v30 = vld [vmem:[#allocation5 + $0xf0] sm:$0xff]  ;;  %v372_v31 = vld [vmem:[#allocation5 + $0xf8] sm:$0xff] }
  0x20   : > { %483 = vmatpush.msra.mxu2 %v383_v18  ;;  %503 = vmatpush.msra.mxu3 %v384_v19  ;;  %v374_v32 = vld [vmem:[#allocation5 + $0x108] sm:$0xff]  ;;  %v373_v33 = vld [vmem:[#allocation5 + $0x100] sm:$0xff]  ;;  %v367_v34 = vld [vmem:[#allocation5 + $0xd0] sm:$0xff] }
  0x21   : > { %442 = vmatpush.msra.mxu0 %v385_v21  ;;  %463 = vmatpush.msra.mxu1 %v382_v24  ;;  %v368_v35 = vld [vmem:[#allocation5 + $0xd8] sm:$0xff]  ;;  %v370_v36 = vld [vmem:[#allocation5 + $0xe8] sm:$0xff]  ;;  %v369_v37 = vld [vmem:[#allocation5 + $0xe0] sm:$0xff] }
  0x22   : > { %484 = vmatpush.msra.mxu2 %v379_v22  ;;  %504 = vmatpush.msra.mxu3 %v380_v23  ;;  %v363_v38 = vld [vmem:[#allocation5 + $0xb0] sm:$0xff]  ;;  %v364_v39 = vld [vmem:[#allocation5 + $0xb8] sm:$0xff]  ;;  %v366_v40 = vld [vmem:[#allocation5 + $0xc8] sm:$0xff] }
  0x23   : > { %443 = vmatpush.msra.mxu0 %v381_v25  ;;  %464 = vmatpush.msra.mxu1 %v378_v28  ;;  %v365_v41 = vld [vmem:[#allocation5 + $0xc0] sm:$0xff]  ;;  %v359_v43 = vld [vmem:[#allocation5 + $0x90] sm:$0xff]  ;;  %v360_v44 = vld [vmem:[#allocation5 + $0x98] sm:$0xff] }
  0x24   : > { %485 = vmatpush.msra.mxu2 %v375_v26  ;;  %505 = vmatpush.msra.mxu3 %v376_v27  ;;  %v329_v42 = vld [vmem:[%s323_s29] sm:$0xf]   ;;  %v362_v45 = vld [vmem:[#allocation5 + $0xa8] sm:$0xff]  ;;  %v355_v47 = vld [vmem:[#allocation5 + $0x70] sm:$0xff] }
  0x25   : > { %444 = vmatpush.msra.mxu0 %v377_v29  ;;  %465 = vmatpush.msra.mxu1 %v374_v32  ;;  %331 = vst [vmem:[#allocation2] sm:$0xf] %v329_v42   ;;  %v361_v46 = vld [vmem:[#allocation5 + $0xa0] sm:$0xff]  ;;  %v356_v48 = vld [vmem:[#allocation5 + $0x78] sm:$0xff]  ;;  %v358_v49 = vld [vmem:[#allocation5 + $0x88] sm:$0xff] }
  0x26   : > { %486 = vmatpush.msra.mxu2 %v371_v30  ;;  %506 = vmatpush.msra.mxu3 %v372_v31  ;;  %v357_v50 = vld [vmem:[#allocation5 + $0x80] sm:$0xff]  ;;  %v351_v51 = vld [vmem:[#allocation5 + $0x50] sm:$0xff]  ;;  %v352_v52 = vld [vmem:[#allocation5 + $0x58] sm:$0xff] }
  0x27   : > { %445 = vmatpush.msra.mxu0 %v373_v33  ;;  %466 = vmatpush.msra.mxu1 %v370_v36  ;;  %v354_v53 = vld [vmem:[#allocation5 + $0x68] sm:$0xff]  ;;  %v353_v54 = vld [vmem:[#allocation5 + $0x60] sm:$0xff]  ;;  %v347_v55 = vld [vmem:[#allocation5 + $0x30] sm:$0xff] }
  0x28   : > { %487 = vmatpush.msra.mxu2 %v367_v34  ;;  %507 = vmatpush.msra.mxu3 %v368_v35  ;;  %v348_v56 = vld [vmem:[#allocation5 + $0x38] sm:$0xff]  ;;  %v350_v57 = vld [vmem:[#allocation5 + $0x48] sm:$0xff]  ;;  %v349_v60 = vld [vmem:[#allocation5 + $0x40] sm:$0xff] }
  0x29   : > { %446 = vmatpush.msra.mxu0 %v369_v37  ;;  %467 = vmatpush.msra.mxu1 %v366_v40  ;;  %v343_v61 = vld [vmem:[#allocation5 + $0x10] sm:$0xff]  ;;  %v344_v62 = vld [vmem:[#allocation5 + $0x18] sm:$0xff]  ;;  %v346_v63 = vld [vmem:[#allocation5 + $0x28] sm:$0xff] }
  0x2a   : > { %488 = vmatpush.msra.mxu2 %v363_v38  ;;  %508 = vmatpush.msra.mxu3 %v364_v39  ;;  %v345_v0 = vld [vmem:[#allocation5 + $0x20] sm:$0xff]  ;;  %v648_v1 = vld [vmem:[#allocation7 + $0x178] sm:$0xff]  ;;  %v342_v3 = vld [vmem:[#allocation5 + $0x8] sm:$0xff] }
  0x2b   : > { %447 = vmatpush.msra.mxu0 %v365_v41  ;;  %468 = vmatpush.msra.mxu1 %v362_v45  ;;  %v664_v2 = vld [vmem:[#allocation7 + $0x1f8] sm:$0xff]  ;;  %v341_v4 = vld [vmem:[#allocation5] sm:$0xff]  ;;  %v647_v7 = vld [vmem:[#allocation7 + $0x170] sm:$0xff] }
  0x2c   : > { %489 = vmatpush.msra.mxu2 %v359_v43  ;;  %509 = vmatpush.msra.mxu3 %v360_v44  ;;  %v339_v58 = vld [vmem:[#allocation2] sm:$0x3]  ;;  %v340_v59 = vld [vmem:[#allocation2 + $0x2] sm:$0x3]  ;;  %v616_v5 = vld [vmem:[#allocation7 + $0x78] sm:$0xff] }
  0x2d   : > { %448 = vmatpush.msra.mxu0 %v361_v46  ;;  %469 = vmatpush.msra.mxu1 %v358_v49  ;;  %422 = vst [vmem:[#allocation1] ss:$4 sm:$0xff] %v339_v58  ;;  %v632_v6 = vld [vmem:[#allocation7 + $0xf8] sm:$0xff]  ;;  %v663_v8 = vld [vmem:[#allocation7 + $0x1f0] sm:$0xff]  ;;  %v646_v12 = vld [vmem:[#allocation7 + $0x168] sm:$0xff] }
  0x2e   : > { %490 = vmatpush.msra.mxu2 %v355_v47  ;;  %510 = vmatpush.msra.mxu3 %v356_v48  ;;  %424 = vst [vmem:[#allocation1 + $0x1] ss:$4 sm:$0xff] %v340_v59  ;;  %v615_v10 = vld [vmem:[#allocation7 + $0x70] sm:$0xff]  ;;  %v662_v13 = vld [vmem:[#allocation7 + $0x1e8] sm:$0xff]  ;;  %v645_v16 = vld [vmem:[#allocation7 + $0x160] sm:$0xff] }
  0x2f   : > { %449 = vmatpush.msra.mxu0 %v357_v50  ;;  %470 = vmatpush.msra.mxu1 %v354_v53  ;;  %v631_v11 = vld [vmem:[#allocation7 + $0xf0] sm:$0xff]  ;;  %v614_v14 = vld [vmem:[#allocation7 + $0x68] sm:$0xff]  ;;  %v661_v17 = vld [vmem:[#allocation7 + $0x1e0] sm:$0xff] }
  0x30   : > { %491 = vmatpush.msra.mxu2 %v351_v51  ;;  %511 = vmatpush.msra.mxu3 %v352_v52  ;;  %v630_v15 = vld [vmem:[#allocation7 + $0xe8] sm:$0xff]  ;;  %v613_v18 = vld [vmem:[#allocation7 + $0x60] sm:$0xff]  ;;  %v644_v20 = vld [vmem:[#allocation7 + $0x158] sm:$0xff] }
  0x31   : > { %450 = vmatpush.msra.mxu0 %v353_v54  ;;  %471 = vmatpush.msra.mxu1 %v350_v57  ;;  %v629_v19 = vld [vmem:[#allocation7 + $0xe0] sm:$0xff]  ;;  %v660_v21 = vld [vmem:[#allocation7 + $0x1d8] sm:$0xff]  ;;  %v611_v24 = vld [vmem:[#allocation7 + $0x50] sm:$0xff] }
  0x32   : > { %492 = vmatpush.msra.mxu2 %v347_v55  ;;  %512 = vmatpush.msra.mxu3 %v348_v56  ;;  %v612_v22 = vld [vmem:[#allocation7 + $0x58] sm:$0xff]  ;;  %v627_v25 = vld [vmem:[#allocation7 + $0xd0] sm:$0xff]  ;;  %v610_v28 = vld [vmem:[#allocation7 + $0x48] sm:$0xff] }
  0x33   : > { %451 = vmatpush.msra.mxu0 %v349_v60  ;;  %472 = vmatpush.msra.mxu1 %v346_v63  ;;  %v628_v23 = vld [vmem:[#allocation7 + $0xd8] sm:$0xff]  ;;  %v643_v26 = vld [vmem:[#allocation7 + $0x150] sm:$0xff]  ;;  %v626_v29 = vld [vmem:[#allocation7 + $0xc8] sm:$0xff] }
  0x34   : > { %493 = vmatpush.msra.mxu2 %v343_v61  ;;  %513 = vmatpush.msra.mxu3 %v344_v62  ;;  %v659_v27 = vld [vmem:[#allocation7 + $0x1d0] sm:$0xff]  ;;  %v642_v30 = vld [vmem:[#allocation7 + $0x148] sm:$0xff]  ;;  %v641_v32 = vld [vmem:[#allocation7 + $0x140] sm:$0xff] }
  0x35   : > { %452 = vmatpush.msra.mxu0 %v345_v0  ;;  %473 = vmatpush.msra.mxu1 %v342_v3  ;;  %v425_v9 = vld.sshfl [vmem:[#allocation1] sm:$0xff pattern:$0x73625140]  ;;  %v640_v44 = vld [vmem:[#allocation7 + $0x138] sm:$0xff]  ;;  %v639_v50 = vld [vmem:[#allocation7 + $0x130] sm:$0xff] }
  0x36   : > { %788 = vmatpush.msrb.mxu2 %v648_v1  ;;  %811 = vmatpush.msrb.mxu3 %v664_v2  ;;  %v658_v31 = vld [vmem:[#allocation7 + $0x1c8] sm:$0xff]  ;;  %v657_v33 = vld [vmem:[#allocation7 + $0x1c0] sm:$0xff]  ;;  %v656_v45 = vld [vmem:[#allocation7 + $0x1b8] sm:$0xff] }
  0x37   : > { %453 = vmatpush.msra.mxu0 %v341_v4  ;;  %765 = vmatpush.msrb.mxu1 %v632_v6  ;;  %v405_v34 = vld [vmem:[%s2640_s4] sm:$0xf]  ;;  %v608_v46 = vld [vmem:[#allocation7 + $0x38] sm:$0xff]  ;;  %v655_v51 = vld [vmem:[#allocation7 + $0x1b0] sm:$0xff] }
  0x38   : > { %789 = vmatpush.msrb.mxu2 %v647_v7  ;;  %812 = vmatpush.msrb.mxu3 %v663_v8  ;;  %v407_v35 = vperm.slane %v405_v34, 0  ;;  %v408_v36 = vperm.slane %v405_v34, 1  ;;  %v409_v37 = vperm.slane %v405_v34, 2  ;;  %v410_v38 = vperm.slane %v405_v34, 3  ;;  %v609_v39 = vld [vmem:[#allocation7 + $0x40] sm:$0xff]  ;;  %v624_v47 = vld [vmem:[#allocation7 + $0xb8] sm:$0xff] }
  0x39   : > { %742 = vmatpush.msrb.mxu0 %v616_v5  ;;  %494 = vmatmul.f32.vlgmr.msra.gmra.mxu2 %v425_v9  ;;  %v625_v40 = vld [vmem:[#allocation7 + $0xc0] sm:$0xff]  ;;  %v607_v53 = vld [vmem:[#allocation7 + $0x30] sm:$0xff]  ;;  %v638_v55 = vld [vmem:[#allocation7 + $0x128] sm:$0xff] }
  0x3a   : > { %514 = vmatmul.f32.vlgmr.msra.gmra.mxu3 %v425_v9  ;;  %474 = vmatmul.f32.vlgmr.msra.gmra.mxu1 %v425_v9  ;;  %v411_v41 = vrot.slane %v408_v36, 6  ;;  %v412_v42 = vrot.slane %v409_v37, 4  ;;  %v413_v43 = vrot.slane %v410_v38, 2  ;;  %v623_v54 = vld [vmem:[#allocation7 + $0xb0] sm:$0xff]  ;;  %v654_v56 = vld [vmem:[#allocation7 + $0x1a8] sm:$0xff]  ;;  %v637_v59 = vld [vmem:[#allocation7 + $0x120] sm:$0xff] }
  0x3b   : > { %454 = vmatmul.f32.vlgmr.msra.gmra.mxu0 %v425_v9  ;;  %766 = vmatpush.msrb.mxu1 %v631_v11  ;;  %v606_v57 = vld [vmem:[#allocation7 + $0x28] sm:$0xff]  ;;  %v653_v60 = vld [vmem:[#allocation7 + $0x1a0] sm:$0xff]  ;;  %v636_v63 = vld [vmem:[#allocation7 + $0x118] sm:$0xff] }
  0x3c   : > { %743 = vmatpush.msrb.mxu0 %v615_v10  ;;  %790 = vmatpush.msrb.mxu2 %v646_v12  ;;  %v415_v48 = vsel %vm414_vm0, %v407_v35, %v411_v41  ;;  %v417_v49 = vsel %vm416_vm1, %v412_v42, %v413_v43  ;;  %v622_v58 = vld [vmem:[#allocation7 + $0xa8] sm:$0xff]  ;;  %v605_v61 = vld [vmem:[#allocation7 + $0x20] sm:$0xff]  ;;  %v652_v0 = vld [vmem:[#allocation7 + $0x198] sm:$0xff] }
  0x3d   : > { %813 = vmatpush.msrb.mxu3 %v662_v13  ;;  %767 = vmatpush.msrb.mxu1 %v630_v15  ;;  %v419_v52 = vsel %vm418_vm2, %v415_v48, %v417_v49  ;;  %v621_v62 = vld [vmem:[#allocation7 + $0xa0] sm:$0xff]  ;;  %v604_v1 = vld [vmem:[#allocation7 + $0x18] sm:$0xff]  ;;  %v635_v3 = vld [vmem:[#allocation7 + $0x110] sm:$0xff] }
  0x3e   : > { %744 = vmatpush.msrb.mxu0 %v614_v14  ;;  %791 = vmatpush.msrb.mxu2 %v645_v16  ;;  %427 = vst [vmem:[#allocation1] ss:$4 sm:$0xff] %v419_v52  ;;  %v620_v2 = vld [vmem:[#allocation7 + $0x98] sm:$0xff]  ;;  %v651_v4 = vld [vmem:[#allocation7 + $0x190] sm:$0xff]  ;;  %v634_v7 = vld [vmem:[#allocation7 + $0x108] sm:$0xff] }
  0x3f   : > { %814 = vmatpush.msrb.mxu3 %v661_v17  ;;  %768 = vmatpush.msrb.mxu1 %v629_v19  ;;  %429 = vst [vmem:[#allocation1 + $0x1] ss:$4 sm:$0xff] %v419_v52  ;;  %v603_v5 = vld [vmem:[#allocation7 + $0x10] sm:$0xff]  ;;  %v650_v8 = vld [vmem:[#allocation7 + $0x188] sm:$0xff]  ;;  %v633_v11 = vld [vmem:[#allocation7 + $0x100] sm:$0xff] }
  0x40   : > { %745 = vmatpush.msrb.mxu0 %v613_v18  ;;  %792 = vmatpush.msrb.mxu2 %v644_v20  ;;  %v619_v6 = vld [vmem:[#allocation7 + $0x90] sm:$0xff]  ;;  %v602_v9 = vld [vmem:[#allocation7 + $0x8] sm:$0xff]  ;;  %v649_v12 = vld [vmem:[#allocation7 + $0x180] sm:$0xff] }
  0x41   : > { %815 = vmatpush.msrb.mxu3 %v660_v21  ;;  %769 = vmatpush.msrb.mxu1 %v628_v23  ;;  %v618_v10 = vld [vmem:[#allocation7 + $0x88] sm:$0xff]  ;;  %v601_v13 = vld [vmem:[#allocation7] sm:$0xff]  ;;  %v895_v15 = vld [vmem:[#allocation7 + $0x278] sm:$0xff]  ;;  %v2335_v23 = vmov 0.0  }
  0x42   : > { %746 = vmatpush.msrb.mxu0 %v612_v22  ;;  %793 = vmatpush.msrb.mxu2 %v643_v26  ;;  %v617_v14 = vld [vmem:[#allocation7 + $0x80] sm:$0xff]  ;;  %v911_v16 = vld [vmem:[#allocation7 + $0x2f8] sm:$0xff]  ;;  %v894_v19 = vld [vmem:[#allocation7 + $0x270] sm:$0xff]  ;;  %333 = vst [vmem:[#allocation3] sm:$0x3f] %v2335_v23 }
  0x43   : > { %816 = vmatpush.msrb.mxu3 %v659_v27  ;;  %770 = vmatpush.msrb.mxu1 %v627_v25  ;;  %v927_v17 = vld [vmem:[#allocation7 + $0x378] sm:$0xff]  ;;  %v910_v20 = vld [vmem:[#allocation7 + $0x2f0] sm:$0xff]  ;;  %334 = vst [vmem:[#allocation3 + $0x8] sm:$0x3f] %v2335_v23  ;;  %v909_v25 = vld [vmem:[#allocation7 + $0x2e8] sm:$0xff] }
  0x44   : > { %747 = vmatpush.msrb.mxu0 %v611_v24  ;;  %794 = vmatpush.msrb.mxu2 %v642_v30  ;;  %v943_v18 = vld [vmem:[#allocation7 + $0x3f8] sm:$0xff]  ;;  %v926_v21 = vld [vmem:[#allocation7 + $0x370] sm:$0xff]  ;;  %335 = vst [vmem:[#allocation3 + $0x10] sm:$0x3f] %v2335_v23  ;;  %v893_v24 = vld [vmem:[#allocation7 + $0x268] sm:$0xff] }
  0x45   : > { %817 = vmatpush.msrb.mxu3 %v658_v31  ;;  %771 = vmatpush.msrb.mxu1 %v626_v29  ;;  %v942_v22 = vld [vmem:[#allocation7 + $0x3f0] sm:$0xff]  ;;  %336 = vst [vmem:[#allocation3 + $0x18] sm:$0x3f] %v2335_v23  ;;  %v925_v26 = vld [vmem:[#allocation7 + $0x368] sm:$0xff]  ;;  %v908_v29 = vld [vmem:[#allocation7 + $0x2e0] sm:$0xff] }
  0x46   : > { %748 = vmatpush.msrb.mxu0 %v610_v28  ;;  %795 = vmatpush.msrb.mxu2 %v641_v32  ;;  %337 = vst [vmem:[#allocation3 + $0x20] sm:$0x3f] %v2335_v23  ;;  %v941_v27 = vld [vmem:[#allocation7 + $0x3e8] sm:$0xff]  ;;  %v892_v28 = vld [vmem:[#allocation7 + $0x260] sm:$0xff]  ;;  %v891_v32 = vld [vmem:[#allocation7 + $0x258] sm:$0xff] }
  0x47   : > { %818 = vmatpush.msrb.mxu3 %v657_v33  ;;  %772 = vmatpush.msrb.mxu1 %v625_v40  ;;  %338 = vst [vmem:[#allocation3 + $0x28] sm:$0x3f] %v2335_v23  ;;  %v924_v30 = vld [vmem:[#allocation7 + $0x360] sm:$0xff]  ;;  %v907_v33 = vld [vmem:[#allocation7 + $0x2d8] sm:$0xff]  ;;  %v890_v36 = vld [vmem:[#allocation7 + $0x250] sm:$0xff] }
  0x48   : > { %749 = vmatpush.msrb.mxu0 %v609_v39  ;;  %796 = vmatpush.msrb.mxu2 %v640_v44  ;;  %v940_v31 = vld [vmem:[#allocation7 + $0x3e0] sm:$0xff]  ;;  %v923_v34 = vld [vmem:[#allocation7 + $0x358] sm:$0xff]  ;;  %v906_v37 = vld [vmem:[#allocation7 + $0x2d0] sm:$0xff] }
  0x49   : > { %819 = vmatpush.msrb.mxu3 %v656_v45  ;;  %773 = vmatpush.msrb.mxu1 %v624_v47  ;;  %v939_v35 = vld [vmem:[#allocation7 + $0x3d8] sm:$0xff]  ;;  %v922_v38 = vld [vmem:[#allocation7 + $0x350] sm:$0xff]  ;;  %v889_v41 = vld [vmem:[#allocation7 + $0x248] sm:$0xff] }
  0x4a   : > { %750 = vmatpush.msrb.mxu0 %v608_v46  ;;  %797 = vmatpush.msrb.mxu2 %v639_v50  ;;  %v431_v39 = vld.sshfl [vmem:[#allocation1 + $0x8] sm:$0xff pattern:$0x73625140]  ;;  %v888_v46 = vld [vmem:[#allocation7 + $0x240] sm:$0xff] }
  0x4b   : > { %820 = vmatpush.msrb.mxu3 %v655_v51  ;;  %774 = vmatpush.msrb.mxu1 %v623_v54  ;;  %v938_v40 = vld [vmem:[#allocation7 + $0x3d0] sm:$0xff]  ;;  %v905_v42 = vld [vmem:[#allocation7 + $0x2c8] sm:$0xff]  ;;  %v904_v47 = vld [vmem:[#allocation7 + $0x2c0] sm:$0xff] }
  0x4c   : > { %751 = vmatpush.msrb.mxu0 %v607_v53  ;;  %798 = vmatpush.msrb.mxu2 %v638_v55  ;;  %v921_v43 = vld [vmem:[#allocation7 + $0x348] sm:$0xff]  ;;  %v920_v48 = vld [vmem:[#allocation7 + $0x340] sm:$0xff]  ;;  %v432_v50 = vld.sshfl [vmem:[#allocation1 + $0x10] sm:$0xff pattern:$0x73625140] }
  0x4d   : > { %821 = vmatpush.msrb.mxu3 %v654_v56  ;;  %775 = vmatpush.msrb.mxu1 %v622_v58  ;;  %v937_v44 = vld [vmem:[#allocation7 + $0x3c8] sm:$0xff]  ;;  %v936_v53 = vld [vmem:[#allocation7 + $0x3c0] sm:$0xff]  ;;  %v887_v54 = vld [vmem:[#allocation7 + $0x238] sm:$0xff] }
  0x4e   : > { %752 = vmatpush.msrb.mxu0 %v606_v57  ;;  %799 = vmatpush.msrb.mxu2 %v637_v59  ;;  %v430_v51 = vld.sshfl [vmem:[#allocation1] sm:$0xff pattern:$0x73625140]  ;;  %v903_v55 = vld [vmem:[#allocation7 + $0x2b8] sm:$0xff]  ;;  %v882_v23 = vld [vmem:[#allocation7 + $0x210] sm:$0xff] }
  0x4f   : > { %822 = vmatpush.msrb.mxu3 %v653_v60  ;;  %776 = vmatpush.msrb.mxu1 %v621_v62  ;;  %v919_v56 = vld [vmem:[#allocation7 + $0x338] sm:$0xff]  ;;  %v902_v62 = vld [vmem:[#allocation7 + $0x2b0] sm:$0xff] }
  0x50   : > { %753 = vmatpush.msrb.mxu0 %v605_v61  ;;  %800 = vmatpush.msrb.mxu2 %v636_v63  ;;  %v433_v57 = vld.sshfl [vmem:[#allocation1 + $0x18] sm:$0xff pattern:$0x73625140]  ;;  %v886_v61 = vld [vmem:[#allocation7 + $0x230] sm:$0xff] }
  0x51   : > { %823 = vmatpush.msrb.mxu3 %v652_v0  ;;  %777 = vmatpush.msrb.mxu1 %v620_v2  ;;  %v935_v58 = vld [vmem:[#allocation7 + $0x3b8] sm:$0xff]  ;;  %v918_v63 = vld [vmem:[#allocation7 + $0x330] sm:$0xff] }
  0x52   : > { %754 = vmatpush.msrb.mxu0 %v604_v1  ;;  %801 = vmatpush.msrb.mxu2 %v635_v3  ;;  %v934_v2 = vld [vmem:[#allocation7 + $0x3b0] sm:$0xff] }
  0x53   : > { %824 = vmatpush.msrb.mxu3 %v651_v4  ;;  %778 = vmatpush.msrb.mxu1 %v619_v6  ;;  %v901_v6 = vld [vmem:[#allocation7 + $0x2a8] sm:$0xff] }
  0x54   : > { %755 = vmatpush.msrb.mxu0 %v603_v5  ;;  %802 = vmatpush.msrb.mxu2 %v634_v7  ;;  %v885_v5 = vld [vmem:[#allocation7 + $0x228] sm:$0xff] }
  0x55   : > { %825 = vmatpush.msrb.mxu3 %v650_v8  ;;  %779 = vmatpush.msrb.mxu1 %v618_v10  ;;  %v917_v7 = vld [vmem:[#allocation7 + $0x328] sm:$0xff] }
  0x56   : > { %756 = vmatpush.msrb.mxu0 %v602_v9  ;;  %803 = vmatpush.msrb.mxu2 %v633_v11  ;;  %v933_v8 = vld [vmem:[#allocation7 + $0x3a8] sm:$0xff] }
  0x57   : > { %826 = vmatpush.msrb.mxu3 %v649_v12  ;;  %780 = vmatpush.msrb.mxu1 %v617_v14  ;;  %v900_v14 = vld [vmem:[#allocation7 + $0x2a0] sm:$0xff] }
  0x58   : > { %757 = vmatpush.msrb.mxu0 %v601_v13  ;;  %1067 = vmatpush.msra.mxu2 %v927_v17  ;;  %v884_v13 = vld [vmem:[#allocation7 + $0x220] sm:$0xff]  ;;  %v883_v17 = vld [vmem:[#allocation7 + $0x218] sm:$0xff] }
  0x59   : > { %1044 = vmatpush.msra.mxu1 %v911_v16  ;;  %1090 = vmatpush.msra.mxu3 %v943_v18  ;;  %v932_v16 = vld [vmem:[#allocation7 + $0x3a0] sm:$0xff]  ;;  %v899_v18 = vld [vmem:[#allocation7 + $0x298] sm:$0xff] }
  0x5a   : > { %1021 = vmatpush.msra.mxu0 %v895_v15  ;;  %1068 = vmatpush.msra.mxu2 %v926_v21  ;;  %v916_v15 = vld [vmem:[#allocation7 + $0x320] sm:$0xff]  ;;  %v915_v21 = vld [vmem:[#allocation7 + $0x318] sm:$0xff] }
  0x5b   : > { %1045 = vmatpush.msra.mxu1 %v910_v20  ;;  %1091 = vmatpush.msra.mxu3 %v942_v22  ;;  %v931_v22 = vld [vmem:[#allocation7 + $0x398] sm:$0xff] }
  0x5c   : > { %1022 = vmatpush.msra.mxu0 %v894_v19  ;;  %1069 = vmatpush.msra.mxu2 %v925_v26  ;;  %v898_v26 = vld [vmem:[#allocation7 + $0x290] sm:$0xff] }
  0x5d   : > { %1046 = vmatpush.msra.mxu1 %v909_v25  ;;  %1092 = vmatpush.msra.mxu3 %v941_v27  ;;  %v914_v27 = vld [vmem:[#allocation7 + $0x310] sm:$0xff] }
  0x5e   : > { %1023 = vmatpush.msra.mxu0 %v893_v24  ;;  %1070 = vmatpush.msra.mxu2 %v924_v30 }
  0x5f   : > { %1047 = vmatpush.msra.mxu1 %v908_v29  ;;  %1093 = vmatpush.msra.mxu3 %v940_v31  ;;  %v881_v31 = vld [vmem:[#allocation7 + $0x208] sm:$0xff] }
  0x60   : > { %1024 = vmatpush.msra.mxu0 %v892_v28  ;;  %1071 = vmatpush.msra.mxu2 %v923_v34  ;;  %v930_v28 = vld [vmem:[#allocation7 + $0x390] sm:$0xff]  ;;  %v929_v34 = vld [vmem:[#allocation7 + $0x388] sm:$0xff] }
  0x61   : > { %1048 = vmatpush.msra.mxu1 %v907_v33  ;;  %1094 = vmatpush.msra.mxu3 %v939_v35  ;;  %v913_v33 = vld [vmem:[#allocation7 + $0x308] sm:$0xff]  ;;  %v880_v35 = vld [vmem:[#allocation7 + $0x200] sm:$0xff] }
  0x62   : > { %1025 = vmatpush.msra.mxu0 %v891_v32  ;;  %1072 = vmatpush.msra.mxu2 %v922_v38  ;;  %v897_v32 = vld [vmem:[#allocation7 + $0x288] sm:$0xff] }
  0x63   : > { %1049 = vmatpush.msra.mxu1 %v906_v37  ;;  %1095 = vmatpush.msra.mxu3 %v938_v40 }
  0x64   : > { %1026 = vmatpush.msra.mxu0 %v890_v36  ;;  %1073 = vmatpush.msra.mxu2 %v921_v43 }
  0x65   : > { %1050 = vmatpush.msra.mxu1 %v905_v42  ;;  %1096 = vmatpush.msra.mxu3 %v937_v44  ;;  %v912_v42 = vld [vmem:[#allocation7 + $0x300] sm:$0xff] }
  0x66   : > { %1027 = vmatpush.msra.mxu0 %v889_v41  ;;  %1074 = vmatpush.msra.mxu2 %v920_v48 }
  0x67   : > { %1051 = vmatpush.msra.mxu1 %v904_v47  ;;  %1097 = vmatpush.msra.mxu3 %v936_v53 }
  0x68   : > { %1028 = vmatpush.msra.mxu0 %v888_v46  ;;  %1075 = vmatpush.msra.mxu2 %v919_v56 }
  0x69   : > { %1052 = vmatpush.msra.mxu1 %v903_v55  ;;  %1098 = vmatpush.msra.mxu3 %v935_v58 }
  0x6a   : > { %1029 = vmatpush.msra.mxu0 %v887_v54  ;;  %1076 = vmatpush.msra.mxu2 %v918_v63  ;;  %v597_v63 = vld [vmem:[#allocation3] sm:$0xf] }
  0x6b   : > { %1053 = vmatpush.msra.mxu1 %v902_v62  ;;  %1099 = vmatpush.msra.mxu3 %v934_v2  ;;  %v593_v2 = vld [vmem:[#allocation3 + $0x1] sm:$0xf] }
  0x6c   : > { %1030 = vmatpush.msra.mxu0 %v886_v61  ;;  %1077 = vmatpush.msra.mxu2 %v917_v7 }
  0x6d   : > { %1054 = vmatpush.msra.mxu1 %v901_v6  ;;  %1100 = vmatpush.msra.mxu3 %v933_v8  ;;  %v1187_v6 = vld [vmem:[#allocation7 + $0x4f8] sm:$0xff]  ;;  %v1170_v8 = vld [vmem:[#allocation7 + $0x470] sm:$0xff] }
  0x6e   : > { %1031 = vmatpush.msra.mxu0 %v885_v5  ;;  %1078 = vmatpush.msra.mxu2 %v916_v15  ;;  %v1203_v15 = vld [vmem:[#allocation7 + $0x578] sm:$0xff] }
  0x6f   : > { %1055 = vmatpush.msra.mxu1 %v900_v14  ;;  %1101 = vmatpush.msra.mxu3 %v932_v16  ;;  %v1219_v16 = vld [vmem:[#allocation7 + $0x5f8] sm:$0xff] }
  0x70   : > { %1032 = vmatpush.msra.mxu0 %v884_v13  ;;  %1079 = vmatpush.msra.mxu2 %v915_v21 }
  0x71   : > { %1056 = vmatpush.msra.mxu1 %v899_v18  ;;  %1102 = vmatpush.msra.mxu3 %v931_v22 }
  0x72   : > { %1033 = vmatpush.msra.mxu0 %v883_v17  ;;  %1080 = vmatpush.msra.mxu2 %v914_v27  ;;  %v1185_v17 = vld [vmem:[#allocation7 + $0x4e8] sm:$0xff]  ;;  %v1218_v27 = vld [vmem:[#allocation7 + $0x5f0] sm:$0xff] }
  0x73   : > { %1057 = vmatpush.msra.mxu1 %v898_v26  ;;  %1103 = vmatpush.msra.mxu3 %v930_v28  ;;  %v1202_v26 = vld [vmem:[#allocation7 + $0x570] sm:$0xff]  ;;  %v1184_v28 = vld [vmem:[#allocation7 + $0x4e0] sm:$0xff] }
  0x74   : > { %1034 = vmatpush.msra.mxu0 %v882_v23  ;;  %1081 = vmatpush.msra.mxu2 %v913_v33  ;;  %v1201_v33 = vld [vmem:[#allocation7 + $0x568] sm:$0xff] }
  0x75   : > { %1058 = vmatpush.msra.mxu1 %v897_v32  ;;  %1104 = vmatpush.msra.mxu3 %v929_v34 }
  0x76   : > { %1035 = vmatpush.msra.mxu0 %v881_v31  ;;  %1082 = vmatpush.msra.mxu2 %v912_v42 }
  0x78   : > { %1036 = vmatpush.msra.mxu0 %v880_v35 }
  0xb7   : > { %v475_v45 = vpop.f32.mrf.mxu1 }
  0xb8   : > { %v476_v49 = vadd.f32 %v475_v45, %v431_v39  ;;  %v455_v52 = vpop.f32.mrf.mxu0  ;;  %v896_v39 = vld [vmem:[#allocation7 + $0x280] sm:$0xff] }
  0xb9   : > { %v456_v60 = vadd.f32 %v455_v52, %v430_v51  ;;  %1059 = vmatpush.msra.mxu1 %v896_v39  ;;  %v928_v45 = vld [vmem:[#allocation7 + $0x380] sm:$0xff] }
  0xba   : > { %v522_v59 = vrot.slane %v476_v49, 6  ;;  %1105 = vmatpush.msra.mxu3 %v928_v45 }
  0xbc   : > { %v495_v0 = vpop.f32.mrf.mxu2  ;;  %v525_v11 = vsel %vm414_vm0, %v456_v60, %v522_v59  ;;  %v529_v12 = vsel %vm528_vm3, %v456_v60, %v522_v59 }
  0xbd   : > { %v515_v1 = vpop.f32.mrf.mxu3  ;;  %v496_v3 = vadd.f32 %v495_v0, %v432_v50 }
  0xbe   : > { %v516_v4 = vadd.f32 %v515_v1, %v433_v57  ;;  %v685_v1 = vrot.slane %v597_v63, 4  ;;  %v1198_v63 = vld [vmem:[#allocation7 + $0x550] sm:$0xff] }
  0xbf   : > { %v523_v9 = vrot.slane %v496_v3, 4 }
  0xc0   : > { %v524_v10 = vrot.slane %v516_v4, 2  ;;  %v693_v3 = vsel %vm418_vm2, %v593_v2, %v685_v1  ;;  %v1171_v4 = vld [vmem:[#allocation7 + $0x478] sm:$0xff]  ;;  %v1214_v2 = vld [vmem:[#allocation7 + $0x5d0] sm:$0xff] }
  0xc1   : > { %704 = vst [vmem:[#allocation1 + $0x10] ss:$2 sm:$0xff] %v693_v3  ;;  %v1164_v3 = vld [vmem:[#allocation7 + $0x440] sm:$0xff] }
  0xc2   : > { %v526_v19 = vsel %vm416_vm1, %v523_v9, %v524_v10  ;;  %v531_v20 = vsel %vm530_vm4, %v524_v10, %v523_v9  ;;  %v1186_v9 = vld [vmem:[#allocation7 + $0x4f0] sm:$0xff] }
  0xc3   : > { %v527_v24 = vsel %vm418_vm2, %v525_v11, %v526_v19  ;;  %v533_v25 = vsel %vm532_vm5, %v529_v12, %v531_v20  ;;  %v1169_v12 = vld [vmem:[#allocation7 + $0x468] sm:$0xff]  ;;  %v1168_v20 = vld [vmem:[#allocation7 + $0x460] sm:$0xff] }
  0xc4   : > { %v534_v29 = vrot.slane %v533_v25, 2  ;;  %v537_v30 = vmax.f32 %v527_v24, 0.0 }
  0xc6   : > { %540 = vst [vmem:[#allocation3 + $0x9] sm:$0x1] %v537_v30  ;;  %v542_v36 = vperm.slane %v537_v30, 2  ;;  %v545_v37 = vperm.slane %v537_v30, 4  ;;  %v549_v38 = vperm.slane %v537_v30, 6  ;;  %v538_v40 = vmax.f32 %v534_v29, 0.0 }
  0xc7   : > { %552 = vst [vmem:[#allocation3 + $0xa] sm:$0x2] %v537_v30  ;;  %v553_v41 = vperm.slane %v537_v30, 3  ;;  %v556_v43 = vperm.slane %v537_v30, 5  ;;  %v559_v44 = vperm.slane %v537_v30, 7 }
  0xc8   : > { %544 = vst [vmem:[#allocation3 + $0xa] sm:$0x1] %v542_v36  ;;  %v565_v46 = vperm.slane %v538_v40, 2  ;;  %v568_v47 = vperm.slane %v538_v40, 4  ;;  %v572_v48 = vperm.slane %v538_v40, 6  ;;  %v576_v49 = vperm.slane %v538_v40, 3 }
  0xc9   : > { %548 = vst [vmem:[#allocation3 + $0x11] sm:$0x1] %v545_v37  ;;  %v579_v52 = vperm.slane %v538_v40, 5  ;;  %v582_v54 = vperm.slane %v538_v40, 7  ;;  %v1167_v36 = vld [vmem:[#allocation7 + $0x458] sm:$0xff] }
  0xca   : > { %551 = vst [vmem:[#allocation3 + $0x12] sm:$0x1] %v549_v38  ;;  %v1183_v37 = vld [vmem:[#allocation7 + $0x4d8] sm:$0xff] }
  0xcb   : > { %555 = vst [vmem:[#allocation3 + $0xb] sm:$0x2] %v553_v41 }
  0xcc   : > { %558 = vst [vmem:[#allocation3 + $0x12] sm:$0x2] %v556_v43  ;;  %v1166_v43 = vld [vmem:[#allocation7 + $0x450] sm:$0xff] }
  0xcd   : > { %561 = vst [vmem:[#allocation3 + $0x13] sm:$0x2] %v559_v44  ;;  %v1182_v44 = vld [vmem:[#allocation7 + $0x4d0] sm:$0xff] }
  0xce   : > { %563 = vst [vmem:[#allocation3 + $0x19] sm:$0x1] %v538_v40 }
  0xcf   : > { %567 = vst [vmem:[#allocation3 + $0x1a] sm:$0x1] %v565_v46  ;;  %v589_v50 = vld [vmem:[#allocation3 + $0x8] sm:$0xf] }
  0xd0   : > { %v598_v51 = vld [vmem:[#allocation3 + $0x8] sm:$0xf]  ;;  %571 = vst [vmem:[#allocation3 + $0x21] sm:$0x1] %v568_v47  ;;  %v684_v53 = vrot.slane %v589_v50, 4  ;;  %v1200_v47 = vld [vmem:[#allocation7 + $0x560] sm:$0xff] }
  0xd1   : > { %574 = vst [vmem:[#allocation3 + $0x22] sm:$0x1] %v572_v48  ;;  %v687_v55 = vrot.slane %v598_v51, 4  ;;  %v1216_v48 = vld [vmem:[#allocation7 + $0x5e0] sm:$0xff]  ;;  %v1199_v51 = vld [vmem:[#allocation7 + $0x558] sm:$0xff] }
  0xd2   : > { %575 = vst [vmem:[#allocation3 + $0x1a] sm:$0x2] %v538_v40  ;;  %v585_v56 = vld [vmem:[#allocation3 + $0x9] sm:$0xf]  ;;  %v1217_v40 = vld [vmem:[#allocation7 + $0x5e8] sm:$0xff] }
  0xd3   : > { %578 = vst [vmem:[#allocation3 + $0x1b] sm:$0x2] %v576_v49  ;;  %v590_v57 = vld [vmem:[#allocation3 + $0x10] sm:$0xf]  ;;  %v692_v58 = vsel %vm418_vm2, %v585_v56, %v684_v53  ;;  %v594_v59 = vld [vmem:[#allocation3 + $0x9] sm:$0xf] }
  0xd4   : > { %581 = vst [vmem:[#allocation3 + $0x22] sm:$0x2] %v579_v52  ;;  %v686_v60 = vrot.slane %v590_v57, 4  ;;  %v586_v61 = vld [vmem:[#allocation3 + $0x11] sm:$0xf]  ;;  %v695_v62 = vsel %vm418_vm2, %v594_v59, %v687_v55  ;;  %v1215_v52 = vld [vmem:[#allocation7 + $0x5d8] sm:$0xff] }
  0xd5   : > { %584 = vst [vmem:[#allocation3 + $0x23] sm:$0x2] %v582_v54  ;;  %v595_v24 = vld [vmem:[#allocation3 + $0x11] sm:$0xf]  ;;  %v1165_v56 = vld [vmem:[#allocation7 + $0x448] sm:$0xff] }
  0xd6   : > { %v694_v0 = vsel %vm418_vm2, %v586_v61, %v686_v60  ;;  %700 = vst [vmem:[#allocation1] ss:$2 sm:$0xff] %v692_v58  ;;  %v599_v25 = vld [vmem:[#allocation3 + $0x10] sm:$0xf]  ;;  %v1181_v57 = vld [vmem:[#allocation7 + $0x4c8] sm:$0xff] }
  0xd7   : > { %702 = vst [vmem:[#allocation1 + $0x1] ss:$2 sm:$0xff] %v694_v0  ;;  %v689_v30 = vrot.slane %v599_v25, 4  ;;  %v877_v45 = vld [vmem:[#allocation3 + $0x11] sm:$0xf]  ;;  %v1177_v25 = vld [vmem:[#allocation7 + $0x4a8] sm:$0xff] }
  0xd8   : > { %706 = vst [vmem:[#allocation1 + $0x11] ss:$2 sm:$0xff] %v695_v62  ;;  %v968_v54 = vrot.slane %v877_v45, 4  ;;  %v2454_v58 = vld [vmem:[#allocation3 + $0x9] sm:$0xf]  ;;  %v1193_v45 = vld [vmem:[#allocation7 + $0x528] sm:$0xff] }
  0xd9   : > { %v591_v10 = vld [vmem:[#allocation3 + $0x18] sm:$0xf]  ;;  %v697_v35 = vsel %vm418_vm2, %v595_v24, %v689_v30  ;;  %v873_v62 = vld [vmem:[#allocation3 + $0x12] sm:$0xf] }
  0xda   : > { %v688_v13 = vrot.slane %v591_v10, 4  ;;  %v587_v18 = vld [vmem:[#allocation3 + $0x19] sm:$0xf]  ;;  %712 = vst [vmem:[#allocation1 + $0x30] ss:$2 sm:$0xff] %v697_v35 }
  0xdb   : > { %v592_v11 = vld [vmem:[#allocation3 + $0x20] sm:$0xf]  ;;  %v869_v23 = vld [vmem:[#allocation3 + $0x19] sm:$0xf] }
  0xdc   : > { %v690_v14 = vrot.slane %v592_v11, 4  ;;  %v588_v19 = vld [vmem:[#allocation3 + $0x21] sm:$0xf]  ;;  %v696_v21 = vsel %vm418_vm2, %v587_v18, %v688_v13  ;;  %v600_v29 = vld [vmem:[#allocation3 + $0x18] sm:$0xf]  ;;  %v967_v41 = vrot.slane %v869_v23, 4 }
  0xdd   : > { %708 = vst [vmem:[#allocation1 + $0x20] ss:$2 sm:$0xff] %v696_v21  ;;  %v691_v34 = vrot.slane %v600_v29, 4  ;;  %v870_v38 = vld [vmem:[#allocation3 + $0x21] sm:$0xf]  ;;  %v1197_v11 = vld [vmem:[#allocation7 + $0x548] sm:$0xff] }
  0xde   : > { %v715_v5 = vld.sshfl [vmem:[#allocation1] sm:$0xff pattern:$0x75316420]  ;;  %v716_v7 = vld.sshfl [vmem:[#allocation1 + $0x8] sm:$0xff pattern:$0x75316420]  ;;  %v698_v22 = vsel %vm418_vm2, %v588_v19, %v690_v14 }
  0xdf   : > { %758 = vmatmul.f32.vlgmr.msrb.gmra.mxu0 %v715_v5  ;;  %781 = vmatmul.f32.vlgmr.msrb.gmra.mxu1 %v716_v7  ;;  %v717_v31 = vld.sshfl [vmem:[#allocation1 + $0x10] sm:$0xff pattern:$0x75316420]  ;;  %v718_v32 = vld.sshfl [vmem:[#allocation1 + $0x18] sm:$0xff pattern:$0x75316420] }
  0xe0   : > { %1297 = vmatpush.msrb.mxu0 %v1171_v4  ;;  %1320 = vmatpush.msrb.mxu1 %v1187_v6  ;;  %710 = vst [vmem:[#allocation1 + $0x21] ss:$2 sm:$0xff] %v698_v22  ;;  %v596_v39 = vld [vmem:[#allocation3 + $0x19] sm:$0xf]  ;;  %v969_v49 = vrot.slane %v870_v38, 4  ;;  %v1180_v4 = vld [vmem:[#allocation7 + $0x4c0] sm:$0xff] }
  0xe1   : > { %804 = vmatmul.f32.vlgmr.msrb.gmra.mxu2 %v717_v31  ;;  %827 = vmatmul.f32.vlgmr.msrb.gmra.mxu3 %v718_v32  ;;  %v699_v42 = vsel %vm418_vm2, %v596_v39, %v691_v34  ;;  %v878_v46 = vld [vmem:[#allocation3 + $0x19] sm:$0xf]  ;;  %v866_v53 = vld [vmem:[#allocation3 + $0x22] sm:$0xf]  ;;  %v2154_v5 = vld [vmem:[%s2641_s5] ss:$0 sm:$0xff] }
  0xe2   : > { %1298 = vmatpush.msrb.mxu0 %v1170_v8  ;;  %1321 = vmatpush.msrb.mxu1 %v1186_v9  ;;  %714 = vst [vmem:[#allocation1 + $0x31] ss:$2 sm:$0xff] %v699_v42  ;;  %v865_v50 = vld [vmem:[#allocation3 + $0x1a] sm:$0xf]  ;;  %v970_v55 = vrot.slane %v878_v46, 4  ;;  %v977_v0 = vsel %vm418_vm2, %v866_v53, %v969_v49  ;;  %v976_v9 = vsel %vm418_vm2, %v873_v62, %v968_v54  ;;  %v1196_v13 = vld [vmem:[#allocation7 + $0x540] sm:$0xff] }
  0xe3   : > { %1343 = vmatpush.msrb.mxu2 %v1203_v15  ;;  %1366 = vmatpush.msrb.mxu3 %v1219_v16  ;;  %v975_v61 = vsel %vm418_vm2, %v865_v50, %v967_v41  ;;  %v874_v1 = vld [vmem:[#allocation3 + $0x1a] sm:$0xf]  ;;  %v2461_v6 = vld [vmem:[#allocation3 + $0x1] sm:$0xf]  ;;  %v963_v14 = vrot.slane %v2454_v58, 4  ;;  %v1212_v15 = vld [vmem:[#allocation7 + $0x5c0] sm:$0xff] }
  0xe4   : > { %1299 = vmatpush.msrb.mxu0 %v1169_v12  ;;  %1322 = vmatpush.msrb.mxu1 %v1185_v17  ;;  %v978_v10 = vsel %vm418_vm2, %v874_v1, %v970_v55  ;;  %v1213_v12 = vld [vmem:[#allocation7 + $0x5c8] sm:$0xff]  ;;  %v1163_v16 = vld [vmem:[#allocation7 + $0x438] sm:$0xff]  ;;  %v2466_v18 = vld [vmem:[#allocation3 + $0x11] sm:$0xf]  ;;  %731 = vst [vmem:[#allocation1] ss:$2 sm:$0xff] %v2154_v5 }
  0xe5   : > { %1344 = vmatpush.msrb.mxu2 %v1202_v26  ;;  %1367 = vmatpush.msrb.mxu3 %v1218_v27  ;;  %v1179_v17 = vld [vmem:[#allocation7 + $0x4b8] sm:$0xff]  ;;  %v964_v19 = vrot.slane %v2461_v6, 4  ;;  %v1162_v22 = vld [vmem:[#allocation7 + $0x430] sm:$0xff]  ;;  %733 = vst [vmem:[#allocation1 + $0x1] ss:$2 sm:$0xff] %v2154_v5  ;;  %v1161_v24 = vld [vmem:[#allocation7 + $0x428] sm:$0xff] }
  0xe6   : > { %1300 = vmatpush.msrb.mxu0 %v1168_v20  ;;  %1323 = vmatpush.msrb.mxu1 %v1184_v28  ;;  %v1195_v20 = vld [vmem:[#allocation7 + $0x538] sm:$0xff]  ;;  %v1178_v23 = vld [vmem:[#allocation7 + $0x4b0] sm:$0xff]  ;;  %735 = vst [vmem:[#allocation1 + $0x10] ss:$2 sm:$0xff] %v2154_v5  ;;  %v965_v39 = vrot.slane %v2466_v18, 4  ;;  %v1176_v41 = vld [vmem:[#allocation7 + $0x4a0] sm:$0xff] }
  0xe7   : > { %1345 = vmatpush.msrb.mxu2 %v1201_v33  ;;  %1368 = vmatpush.msrb.mxu3 %v1217_v40  ;;  %v719_v59 = vld.sshfl [vmem:[#allocation1 + $0x20] sm:$0xff pattern:$0x75316420]  ;;  %v720_v60 = vld.sshfl [vmem:[#allocation1 + $0x28] sm:$0xff pattern:$0x75316420] }
  0xe8   : > { %1301 = vmatpush.msrb.mxu0 %v1167_v36  ;;  %1324 = vmatpush.msrb.mxu1 %v1183_v37  ;;  %987 = vst [vmem:[#allocation1 + $0x20] ss:$2 sm:$0xff] %v975_v61  ;;  %v1211_v21 = vld [vmem:[#allocation7 + $0x5b8] sm:$0xff]  ;;  %v1194_v28 = vld [vmem:[#allocation7 + $0x530] sm:$0xff]  ;;  %v1160_v40 = vld [vmem:[#allocation7 + $0x420] sm:$0xff] }
  0xe9   : > { %1346 = vmatpush.msrb.mxu2 %v1200_v47  ;;  %1369 = vmatpush.msrb.mxu3 %v1216_v48  ;;  %989 = vst [vmem:[#allocation1 + $0x21] ss:$2 sm:$0xff] %v977_v0  ;;  %v721_v7 = vld.sshfl [vmem:[#allocation1 + $0x30] sm:$0xff pattern:$0x75316420]  ;;  %v1209_v46 = vld [vmem:[#allocation7 + $0x5a8] sm:$0xff] }
  0xea   : > { %1302 = vmatpush.msrb.mxu0 %v1166_v43  ;;  %1325 = vmatpush.msrb.mxu1 %v1182_v44  ;;  %v722_v8 = vld.sshfl [vmem:[#allocation1 + $0x38] sm:$0xff pattern:$0x75316420]  ;;  %v1210_v29 = vld [vmem:[#allocation7 + $0x5b0] sm:$0xff]  ;;  %v1146_v31 = vld [vmem:[#allocation3 + $0x28] sm:$0xf] }
  0xeb   : > { %761 = vmatmul.f32.gmra.mxu0 %v719_v59  ;;  %784 = vmatmul.f32.gmra.mxu1 %v720_v60  ;;  %991 = vst [vmem:[#allocation1 + $0x30] ss:$2 sm:$0xff] %v976_v9  ;;  %v1142_v26 = vld [vmem:[#allocation3 + $0x29] sm:$0xf]  ;;  %v1145_v30 = vld [vmem:[#allocation3 + $0x20] sm:$0xf] }
  0xec   : > { %1347 = vmatpush.msrb.mxu2 %v1199_v51  ;;  %1370 = vmatpush.msrb.mxu3 %v1215_v52  ;;  %993 = vst [vmem:[#allocation1 + $0x31] ss:$2 sm:$0xff] %v978_v10  ;;  %v2469_v27 = vld [vmem:[#allocation3 + $0x9] sm:$0xf]  ;;  %v871_v32 = vld [vmem:[#allocation3 + $0x2] sm:$0xf] }
  0xed   : > { %1303 = vmatpush.msrb.mxu0 %v1165_v56  ;;  %1326 = vmatpush.msrb.mxu1 %v1181_v57  ;;  %737 = vst [vmem:[#allocation1 + $0x11] ss:$2 sm:$0xff] %v2154_v5  ;;  %v1243_v34 = vrot.slane %v1145_v30, 4  ;;  %v1141_v36 = vld [vmem:[#allocation3 + $0x21] sm:$0xf]  ;;  %v1245_v37 = vrot.slane %v1146_v31, 4  ;;  %v972_v55 = vsel %vm418_vm2, %v871_v32, %v964_v19 }
  0xee   : > { %807 = vmatmul.f32.gmra.mxu2 %v721_v7  ;;  %830 = vmatmul.f32.gmra.mxu3 %v722_v8  ;;  %v863_v38 = vld [vmem:[#allocation3 + $0xa] sm:$0xf]  ;;  %v1153_v43 = vld [vmem:[#allocation3 + $0x18] sm:$0xf]  ;;  %v864_v44 = vld [vmem:[#allocation3 + $0x12] sm:$0xf] }
  0xef   : > { %1348 = vmatpush.msrb.mxu2 %v1198_v63  ;;  %1371 = vmatpush.msrb.mxu3 %v1214_v2  ;;  %v1251_v42 = vsel %vm418_vm2, %v1141_v36, %v1243_v34  ;;  %v1253_v47 = vsel %vm418_vm2, %v1142_v26, %v1245_v37  ;;  %v1154_v48 = vld [vmem:[#allocation3 + $0x20] sm:$0xf]  ;;  %v966_v49 = vrot.slane %v2469_v27, 4  ;;  %v1192_v50 = vld [vmem:[#allocation7 + $0x520] sm:$0xff]  ;;  %v872_v52 = vld [vmem:[#allocation3 + $0xa] sm:$0xf]  ;;  %v971_v53 = vsel %vm418_vm2, %v863_v38, %v963_v14 }
  0xf0   : > { %1304 = vmatpush.msrb.mxu0 %v1164_v3  ;;  %1327 = vmatpush.msrb.mxu1 %v1180_v4  ;;  %v2471_v33 = vld.sshfl [vmem:[#allocation1 + $0x20] sm:$0xff pattern:$0x75316420]  ;;  %v2473_v35 = vld.sshfl [vmem:[#allocation1 + $0x28] sm:$0xff pattern:$0x75316420]  ;;  %v973_v62 = vsel %vm418_vm2, %v864_v44, %v965_v39 }
  0xf1   : > { %1349 = vmatpush.msrb.mxu2 %v1197_v11  ;;  %1372 = vmatpush.msrb.mxu3 %v1213_v12  ;;  %1263 = vst [vmem:[#allocation1 + $0x20] ss:$2 sm:$0xff] %v1251_v42  ;;  %v1208_v51 = vld [vmem:[#allocation7 + $0x5a0] sm:$0xff]  ;;  %v1244_v59 = vrot.slane %v1153_v43, 4  ;;  %v1159_v60 = vld [vmem:[#allocation7 + $0x418] sm:$0xff]  ;;  %v1246_v63 = vrot.slane %v1154_v48, 4  ;;  %v974_v5 = vsel %vm418_vm2, %v872_v52, %v966_v49 }
  0xf2   : > { %1305 = vmatpush.msrb.mxu0 %v1163_v16  ;;  %1328 = vmatpush.msrb.mxu1 %v1179_v17  ;;  %1265 = vst [vmem:[#allocation1 + $0x21] ss:$2 sm:$0xff] %v1253_v47  ;;  %v2482_v54 = vld.sshfl [vmem:[#allocation1] sm:$0xff pattern:$0x75316420]  ;;  %v1175_v61 = vld [vmem:[#allocation7 + $0x498] sm:$0xff] }
  0xf3   : > { %1350 = vmatpush.msrb.mxu2 %v1196_v13  ;;  %1373 = vmatpush.msrb.mxu3 %v1212_v15  ;;  %v2485_v56 = vld.sshfl [vmem:[#allocation1 + $0x30] sm:$0xff pattern:$0x75316420]  ;;  %v2487_v57 = vld.sshfl [vmem:[#allocation1 + $0x38] sm:$0xff pattern:$0x75316420] }
  0xf4   : > { %1306 = vmatpush.msrb.mxu0 %v1162_v22  ;;  %1329 = vmatpush.msrb.mxu1 %v1178_v23  ;;  %979 = vst [vmem:[#allocation1] ss:$2 sm:$0xff] %v971_v53  ;;  %v1149_v58 = vld [vmem:[#allocation3 + $0x19] sm:$0xf]  ;;  %v1191_v0 = vld [vmem:[#allocation7 + $0x518] sm:$0xff]  ;;  %v1158_v2 = vld [vmem:[#allocation7 + $0x410] sm:$0xff] }
  0xf5   : > { %1351 = vmatpush.msrb.mxu2 %v1195_v20  ;;  %1374 = vmatpush.msrb.mxu3 %v1211_v21  ;;  %v1207_v1 = vld [vmem:[#allocation7 + $0x598] sm:$0xff]  ;;  %981 = vst [vmem:[#allocation1 + $0x1] ss:$2 sm:$0xff] %v973_v62  ;;  %v1174_v4 = vld [vmem:[#allocation7 + $0x490] sm:$0xff]  ;;  %v1157_v7 = vld [vmem:[#allocation7 + $0x408] sm:$0xff]  ;;  %v1252_v8 = vsel %vm418_vm2, %v1149_v58, %v1244_v59 }
  0xf6   : > { %1307 = vmatpush.msrb.mxu0 %v1161_v24  ;;  %1330 = vmatpush.msrb.mxu1 %v1177_v25  ;;  %v2490_v3 = vld.sshfl [vmem:[#allocation1 + $0x10] sm:$0xff pattern:$0x75316420]  ;;  %v1173_v11 = vld [vmem:[#allocation7 + $0x488] sm:$0xff]  ;;  %1267 = vst [vmem:[#allocation1 + $0x30] ss:$2 sm:$0xff] %v1252_v8 }
  0xf7   : > { %1352 = vmatpush.msrb.mxu2 %v1194_v28  ;;  %1375 = vmatpush.msrb.mxu3 %v1210_v29  ;;  %983 = vst [vmem:[#allocation1 + $0x10] ss:$2 sm:$0xff] %v972_v55  ;;  %v1150_v6 = vld [vmem:[#allocation3 + $0x21] sm:$0xf]  ;;  %v1156_v13 = vld [vmem:[#allocation7 + $0x400] sm:$0xff]  ;;  %v1189_v16 = vld [vmem:[#allocation7 + $0x508] sm:$0xff] }
  0xf8   : > { %1308 = vmatpush.msrb.mxu0 %v1160_v40  ;;  %1331 = vmatpush.msrb.mxu1 %v1176_v41  ;;  %985 = vst [vmem:[#allocation1 + $0x11] ss:$2 sm:$0xff] %v974_v5  ;;  %v1190_v9 = vld [vmem:[#allocation7 + $0x510] sm:$0xff]  ;;  %v1254_v12 = vsel %vm418_vm2, %v1150_v6, %v1246_v63  ;;  %v1172_v14 = vld [vmem:[#allocation7 + $0x480] sm:$0xff]  ;;  %v1205_v17 = vld [vmem:[#allocation7 + $0x588] sm:$0xff] }
  0xf9   : > { %1353 = vmatpush.msrb.mxu2 %v1193_v45  ;;  %1376 = vmatpush.msrb.mxu3 %v1209_v46  ;;  %v1206_v10 = vld [vmem:[#allocation7 + $0x590] sm:$0xff]  ;;  %v2155_v15 = vld [vmem:[%s2641_s5] ss:$0 sm:$0xff]  ;;  %1269 = vst [vmem:[#allocation1 + $0x31] ss:$2 sm:$0xff] %v1254_v12  ;;  %v1451_v20 = vld [vmem:[#allocation7 + $0x678] sm:$0xff] }
  0xfa   : > { %1309 = vmatpush.msrb.mxu0 %v1159_v60  ;;  %1332 = vmatpush.msrb.mxu1 %v1175_v61  ;;  %v1188_v18 = vld [vmem:[#allocation7 + $0x500] sm:$0xff]  ;;  %v1144_v24 = vld [vmem:[#allocation3 + $0x18] sm:$0xf]  ;;  %v2498_v25 = vld [vmem:[#allocation3 + $0x8] sm:$0xf] }
  0xfb   : > { %1354 = vmatpush.msrb.mxu2 %v1192_v50  ;;  %1377 = vmatpush.msrb.mxu3 %v1208_v51  ;;  %v1204_v19 = vld [vmem:[#allocation7 + $0x580] sm:$0xff]  ;;  %v1467_v27 = vld [vmem:[#allocation7 + $0x6f8] sm:$0xff]  ;;  %v1450_v32 = vld [vmem:[#allocation7 + $0x670] sm:$0xff]  ;;  %v1240_v42 = vrot.slane %v2498_v25, 4  ;;  %v1241_v43 = vrot.slane %v1144_v24, 4 }
  0xfc   : > { %1310 = vmatpush.msrb.mxu0 %v1158_v2  ;;  %1333 = vmatpush.msrb.mxu1 %v1174_v4  ;;  %v1143_v21 = vld [vmem:[#allocation3 + $0x10] sm:$0xf]  ;;  %v994_v22 = vld.sshfl [vmem:[#allocation1] sm:$0xff pattern:$0x75316420]  ;;  %v1483_v28 = vld [vmem:[#allocation7 + $0x778] sm:$0xff] }
  0xfd   : > { %1355 = vmatpush.msrb.mxu2 %v1191_v0  ;;  %1378 = vmatpush.msrb.mxu3 %v1207_v1  ;;  %v995_v23 = vld.sshfl [vmem:[#allocation1 + $0x8] sm:$0xff pattern:$0x75316420]  ;;  %v2500_v26 = vld [vmem:[#allocation3 + $0x10] sm:$0xf]  ;;  %v1499_v30 = vld [vmem:[#allocation7 + $0x7f8] sm:$0xff] }
  0xfe   : > { %1311 = vmatpush.msrb.mxu0 %v1157_v7  ;;  %1334 = vmatpush.msrb.mxu1 %v1173_v11  ;;  %1010 = vst [vmem:[#allocation1] ss:$2 sm:$0xff] %v2155_v15  ;;  %v1466_v34 = vld [vmem:[#allocation7 + $0x6f0] sm:$0xff]  ;;  %v1239_v38 = vrot.slane %v1143_v21, 4  ;;  %v1449_v39 = vld [vmem:[#allocation7 + $0x668] sm:$0xff]  ;;  %v1242_v44 = vrot.slane %v2500_v26, 4 }
  0xff   : > { %1356 = vmatpush.msrb.mxu2 %v1190_v9  ;;  %1379 = vmatpush.msrb.mxu3 %v1206_v10  ;;  %1012 = vst [vmem:[#allocation1 + $0x1] ss:$2 sm:$0xff] %v2155_v15  ;;  %v996_v29 = vld.sshfl [vmem:[#allocation1 + $0x10] sm:$0xff pattern:$0x75316420]  ;;  %v1465_v40 = vld [vmem:[#allocation7 + $0x6e8] sm:$0xff] }
 0x100   : > { %1312 = vmatpush.msrb.mxu0 %v1156_v13  ;;  %1335 = vmatpush.msrb.mxu1 %v1172_v14  ;;  %v997_v31 = vld.sshfl [vmem:[#allocation1 + $0x18] sm:$0xff pattern:$0x75316420]  ;;  %v1482_v36 = vld [vmem:[#allocation7 + $0x770] sm:$0xff]  ;;  %v1481_v45 = vld [vmem:[#allocation7 + $0x768] sm:$0xff] }
 0x101   : > { %1357 = vmatpush.msrb.mxu2 %v1189_v16  ;;  %1380 = vmatpush.msrb.mxu3 %v1205_v17  ;;  %1014 = vst [vmem:[#allocation1 + $0x10] ss:$2 sm:$0xff] %v2155_v15  ;;  %v1498_v37 = vld [vmem:[#allocation7 + $0x7f0] sm:$0xff]  ;;  %v1139_v41 = vld [vmem:[#allocation3 + $0x11] sm:$0xf]  ;;  %v1497_v46 = vld [vmem:[#allocation7 + $0x7e8] sm:$0xff] }
 0x102   : > { %1037 = vmatmul.f32.vlgmr.msra.gmra.mxu0 %v994_v22  ;;  %1060 = vmatmul.f32.vlgmr.msra.gmra.mxu1 %v995_v23  ;;  %1016 = vst [vmem:[#allocation1 + $0x11] ss:$2 sm:$0xff] %v2155_v15  ;;  %v1448_v47 = vld [vmem:[#allocation7 + $0x660] sm:$0xff]  ;;  %v1140_v48 = vld [vmem:[#allocation3 + $0x19] sm:$0xf]  ;;  %v1247_v59 = vsel %vm418_vm2, %v1139_v41, %v1239_v38  ;;  %v1479_v5 = vld [vmem:[#allocation7 + $0x758] sm:$0xff] }
 0x103   : > { %1358 = vmatpush.msrb.mxu2 %v1188_v18  ;;  %1381 = vmatpush.msrb.mxu3 %v1204_v19  ;;  %v2504_v49 = vld.sshfl [vmem:[#allocation1 + $0x20] sm:$0xff pattern:$0x75316420]  ;;  %v2506_v50 = vld.sshfl [vmem:[#allocation1 + $0x28] sm:$0xff pattern:$0x75316420]  ;;  %v1249_v0 = vsel %vm418_vm2, %v1140_v48, %v1241_v43 }
 0x104   : > { %1083 = vmatmul.f32.vlgmr.msra.gmra.mxu2 %v996_v29  ;;  %1577 = vmatpush.msra.mxu0 %v1451_v20  ;;  %v1422_v51 = vld [vmem:[#allocation3 + $0x2a] sm:$0xf]  ;;  %v1425_v52 = vld [vmem:[#allocation3 + $0x21] sm:$0xf]  ;;  %v1464_v61 = vld [vmem:[#allocation7 + $0x6e0] sm:$0xff] }
 0x105   : > { %1106 = vmatmul.f32.vlgmr.msra.gmra.mxu3 %v997_v31  ;;  %1600 = vmatpush.msra.mxu1 %v1467_v27  ;;  %v1426_v53 = vld [vmem:[#allocation3 + $0x29] sm:$0xf]  ;;  %v1523_v62 = vrot.slane %v1425_v52, 4  ;;  %v1148_v63 = vld [vmem:[#allocation3 + $0x11] sm:$0xf]  ;;  %v1446_v14 = vld [vmem:[#allocation7 + $0x650] sm:$0xff] }
 0x106   : > { %1623 = vmatpush.msra.mxu2 %v1483_v28  ;;  %1646 = vmatpush.msra.mxu3 %v1499_v30  ;;  %v1147_v55 = vld [vmem:[#allocation3 + $0x9] sm:$0xf]  ;;  %v2511_v60 = vld.sshfl [vmem:[#allocation1] sm:$0xff pattern:$0x75316420]  ;;  %v1525_v58 = vrot.slane %v1426_v53, 4  ;;  %v1250_v13 = vsel %vm418_vm2, %v1148_v63, %v1242_v44 }
 0x107   : > { %1578 = vmatpush.msra.mxu0 %v1450_v32  ;;  %1601 = vmatpush.msra.mxu1 %v1466_v34  ;;  %1255 = vst [vmem:[#allocation1] ss:$2 sm:$0xff] %v1247_v59  ;;  %v1480_v1 = vld [vmem:[#allocation7 + $0x760] sm:$0xff]  ;;  %v1421_v4 = vld [vmem:[#allocation3 + $0x22] sm:$0xf]  ;;  %v1248_v7 = vsel %vm418_vm2, %v1147_v55, %v1240_v42  ;;  %v1495_v9 = vld [vmem:[#allocation7 + $0x7d8] sm:$0xff] }
 0x108   : > { %1624 = vmatpush.msra.mxu2 %v1482_v36  ;;  %1647 = vmatpush.msra.mxu3 %v1498_v37  ;;  %v1496_v2 = vld [vmem:[#allocation7 + $0x7e0] sm:$0xff]  ;;  %1257 = vst [vmem:[#allocation1 + $0x1] ss:$2 sm:$0xff] %v1249_v0  ;;  %v1531_v6 = vsel %vm418_vm2, %v1421_v4, %v1523_v62  ;;  %v1533_v10 = vsel %vm418_vm2, %v1422_v51, %v1525_v58  ;;  %v2521_v11 = vld.sshfl [vmem:[#allocation1 + $0x30] sm:$0xff pattern:$0x75316420] }
 0x109   : > { %1579 = vmatpush.msra.mxu0 %v1449_v39  ;;  %1602 = vmatpush.msra.mxu1 %v1465_v40  ;;  %v2518_v8 = vld.sshfl [vmem:[#allocation1 + $0x10] sm:$0xff pattern:$0x75316420]  ;;  %1543 = vst [vmem:[#allocation1 + $0x20] ss:$2 sm:$0xff] %v1531_v6  ;;  %v1445_v20 = vld [vmem:[#allocation7 + $0x648] sm:$0xff] }
 0x10a   : > { %1040 = vmatmul.f32.gmra.mxu0 %v2471_v33  ;;  %1063 = vmatmul.f32.gmra.mxu1 %v2473_v35  ;;  %v1447_v33 = vld [vmem:[#allocation7 + $0x658] sm:$0xff]  ;;  %v2156_v12 = vld [vmem:[%s2641_s5] ss:$0 sm:$0xff]  ;;  %1259 = vst [vmem:[#allocation1 + $0x10] ss:$2 sm:$0xff] %v1248_v7  ;;  %v1462_v15 = vld [vmem:[#allocation7 + $0x6d0] sm:$0xff] }
 0x10b   : > { %1625 = vmatpush.msra.mxu2 %v1481_v45  ;;  %1648 = vmatpush.msra.mxu3 %v1497_v46  ;;  %v1463_v35 = vld [vmem:[#allocation7 + $0x6d8] sm:$0xff]  ;;  %1261 = vst [vmem:[#allocation1 + $0x11] ss:$2 sm:$0xff] %v1250_v13  ;;  %v1478_v17 = vld [vmem:[#allocation7 + $0x750] sm:$0xff]  ;;  %v1429_v19 = vld [vmem:[#allocation3 + $0x1a] sm:$0xf] }
 0x10c   : > { %1086 = vmatmul.f32.gmra.mxu2 %v2485_v56  ;;  %1580 = vmatpush.msra.mxu0 %v1448_v47  ;;  %v2523_v56 = vld.sshfl [vmem:[#allocation1 + $0x38] sm:$0xff pattern:$0x75316420]  ;;  %v1494_v18 = vld [vmem:[#allocation7 + $0x7d0] sm:$0xff]  ;;  %1545 = vst [vmem:[#allocation1 + $0x21] ss:$2 sm:$0xff] %v1533_v10 }
 0x10d   : > { %1109 = vmatmul.f32.gmra.mxu3 %v2487_v57  ;;  %1603 = vmatpush.msra.mxu1 %v1464_v61  ;;  %v1433_v57 = vld [vmem:[#allocation3 + $0x19] sm:$0xf]  ;;  %v1434_v22 = vld [vmem:[#allocation3 + $0x21] sm:$0xf]  ;;  %v1444_v26 = vld [vmem:[#allocation7 + $0x640] sm:$0xff] }
 0x10e   : > { %1626 = vmatpush.msra.mxu2 %v1480_v1  ;;  %1649 = vmatpush.msra.mxu3 %v1496_v2  ;;  %v1524_v16 = vrot.slane %v1433_v57, 4  ;;  %v1461_v21 = vld [vmem:[#allocation7 + $0x6c8] sm:$0xff]  ;;  %v1460_v27 = vld [vmem:[#allocation7 + $0x6c0] sm:$0xff]  ;;  %v1526_v30 = vrot.slane %v1434_v22, 4  ;;  %v1443_v36 = vld [vmem:[#allocation7 + $0x638] sm:$0xff] }
 0x10f   : > { %1581 = vmatpush.msra.mxu0 %v1447_v33  ;;  %1604 = vmatpush.msra.mxu1 %v1463_v35  ;;  %v1477_v24 = vld [vmem:[#allocation7 + $0x748] sm:$0xff]  ;;  %v1476_v31 = vld [vmem:[#allocation7 + $0x740] sm:$0xff]  ;;  %v1459_v37 = vld [vmem:[#allocation7 + $0x6b8] sm:$0xff] }
 0x110   : > { %1627 = vmatpush.msra.mxu2 %v1479_v5  ;;  %1650 = vmatpush.msra.mxu3 %v1495_v9  ;;  %v1532_v23 = vsel %vm418_vm2, %v1429_v19, %v1524_v16  ;;  %v1493_v25 = vld [vmem:[#allocation7 + $0x7c8] sm:$0xff]  ;;  %v1423_v32 = vld [vmem:[#allocation3 + $0x11] sm:$0xf]  ;;  %v1430_v40 = vld [vmem:[#allocation3 + $0x22] sm:$0xf] }
 0x111   : > { %1582 = vmatpush.msra.mxu0 %v1446_v14  ;;  %1605 = vmatpush.msra.mxu1 %v1462_v15  ;;  %1547 = vst [vmem:[#allocation1 + $0x30] ss:$2 sm:$0xff] %v1532_v23  ;;  %v1270_v28 = vld.sshfl [vmem:[#allocation1] sm:$0xff pattern:$0x75316420]  ;;  %v1475_v41 = vld [vmem:[#allocation7 + $0x738] sm:$0xff]  ;;  %v1534_v44 = vsel %vm418_vm2, %v1430_v40, %v1526_v30 }
 0x112   : > { %1628 = vmatpush.msra.mxu2 %v1478_v17  ;;  %1651 = vmatpush.msra.mxu3 %v1494_v18  ;;  %v1271_v29 = vld.sshfl [vmem:[#allocation1 + $0x8] sm:$0xff pattern:$0x75316420]  ;;  %v1492_v34 = vld [vmem:[#allocation7 + $0x7c0] sm:$0xff]  ;;  %v1491_v42 = vld [vmem:[#allocation7 + $0x7b8] sm:$0xff]  ;;  %v1519_v51 = vrot.slane %v1423_v32, 4 }
 0x113   : > { %1583 = vmatpush.msra.mxu0 %v1445_v20  ;;  %1606 = vmatpush.msra.mxu1 %v1461_v21  ;;  %1286 = vst [vmem:[#allocation1] ss:$2 sm:$0xff] %v2156_v12  ;;  %v1272_v38 = vld.sshfl [vmem:[#allocation1 + $0x10] sm:$0xff pattern:$0x75316420]  ;;  %v1441_v59 = vld [vmem:[#allocation7 + $0x628] sm:$0xff] }
 0x114   : > { %1313 = vmatmul.f32.vlgmr.msrb.gmra.mxu0 %v1270_v28  ;;  %1336 = vmatmul.f32.vlgmr.msrb.gmra.mxu1 %v1271_v29  ;;  %1288 = vst [vmem:[#allocation1 + $0x1] ss:$2 sm:$0xff] %v2156_v12  ;;  %v1273_v39 = vld.sshfl [vmem:[#allocation1 + $0x18] sm:$0xff pattern:$0x75316420]  ;;  %v1442_v45 = vld [vmem:[#allocation7 + $0x630] sm:$0xff] }
 0x115   : > { %1629 = vmatpush.msra.mxu2 %v1477_v24  ;;  %1652 = vmatpush.msra.mxu3 %v1493_v25  ;;  %1290 = vst [vmem:[#allocation1 + $0x10] ss:$2 sm:$0xff] %v2156_v12  ;;  %v1424_v43 = vld [vmem:[#allocation3 + $0x19] sm:$0xf]  ;;  %v1458_v46 = vld [vmem:[#allocation7 + $0x6b0] sm:$0xff]  ;;  %v1440_v33 = vld [vmem:[#allocation7 + $0x620] sm:$0xff] }
 0x116   : > { %1584 = vmatpush.msra.mxu0 %v1444_v26  ;;  %1607 = vmatpush.msra.mxu1 %v1460_v27  ;;  %1292 = vst [vmem:[#allocation1 + $0x11] ss:$2 sm:$0xff] %v2156_v12  ;;  %v1431_v47 = vld [vmem:[#allocation3 + $0x9] sm:$0xf]  ;;  %v1432_v48 = vld [vmem:[#allocation3 + $0x11] sm:$0xf] }
 0x117   : > { %1359 = vmatmul.f32.vlgmr.msrb.gmra.mxu2 %v1272_v38  ;;  %1382 = vmatmul.f32.vlgmr.msrb.gmra.mxu3 %v1273_v39  ;;  %1549 = vst [vmem:[#allocation1 + $0x31] ss:$2 sm:$0xff] %v1534_v44  ;;  %v1474_v52 = vld [vmem:[#allocation7 + $0x730] sm:$0xff]  ;;  %v1521_v55 = vrot.slane %v1424_v43, 4  ;;  %v1457_v61 = vld [vmem:[#allocation7 + $0x6a8] sm:$0xff]  ;;  %v1520_v63 = vrot.slane %v1431_v47, 4 }
 0x118   : > { %1630 = vmatpush.msra.mxu2 %v1476_v31  ;;  %1653 = vmatpush.msra.mxu3 %v1492_v34  ;;  %v1490_v53 = vld [vmem:[#allocation7 + $0x7b0] sm:$0xff]  ;;  %v1419_v62 = vld [vmem:[#allocation3 + $0x12] sm:$0xf]  ;;  %v1420_v58 = vld [vmem:[#allocation3 + $0x1a] sm:$0xf]  ;;  %v1522_v1 = vrot.slane %v1432_v48, 4 }
 0x119   : > { %1585 = vmatpush.msra.mxu0 %v1443_v36  ;;  %1608 = vmatpush.msra.mxu1 %v1459_v37  ;;  %v1427_v0 = vld [vmem:[#allocation3 + $0xa] sm:$0xf]  ;;  %v1473_v2 = vld [vmem:[#allocation7 + $0x728] sm:$0xff]  ;;  %v1527_v35 = vsel %vm418_vm2, %v1419_v62, %v1519_v51  ;;  %v1456_v5 = vld [vmem:[#allocation7 + $0x6a0] sm:$0xff]  ;;  %v1529_v9 = vsel %vm418_vm2, %v1420_v58, %v1521_v55 }
 0x11a   : > { %1631 = vmatpush.msra.mxu2 %v1475_v41  ;;  %1654 = vmatpush.msra.mxu3 %v1491_v42  ;;  %v1489_v4 = vld [vmem:[#allocation7 + $0x7a8] sm:$0xff]  ;;  %v1472_v6 = vld [vmem:[#allocation7 + $0x720] sm:$0xff]  ;;  %v1528_v12 = vsel %vm418_vm2, %v1427_v0, %v1520_v63  ;;  %v1439_v13 = vld [vmem:[#allocation7 + $0x618] sm:$0xff] }
 0x11b   : > { %1586 = vmatpush.msra.mxu0 %v1442_v45  ;;  %1609 = vmatpush.msra.mxu1 %v1458_v46  ;;  %v2534_v7 = vld.sshfl [vmem:[#allocation1] sm:$0xff pattern:$0x75316420]  ;;  %v1455_v57 = vld [vmem:[#allocation7 + $0x698] sm:$0xff]  ;;  %v1454_v16 = vld [vmem:[#allocation7 + $0x690] sm:$0xff] }
 0x11c   : > { %1316 = vmatmul.f32.gmra.mxu0 %v2504_v49  ;;  %1339 = vmatmul.f32.gmra.mxu1 %v2506_v50  ;;  %v1488_v49 = vld [vmem:[#allocation7 + $0x7a0] sm:$0xff]  ;;  %1535 = vst [vmem:[#allocation1] ss:$2 sm:$0xff] %v1527_v35  ;;  %v1471_v15 = vld [vmem:[#allocation7 + $0x718] sm:$0xff]  ;;  %v1470_v17 = vld [vmem:[#allocation7 + $0x710] sm:$0xff] }
 0x11d   : > { %1632 = vmatpush.msra.mxu2 %v1474_v52  ;;  %1655 = vmatpush.msra.mxu3 %v1490_v53  ;;  %v2539_v50 = vld.sshfl [vmem:[#allocation1 + $0x10] sm:$0xff pattern:$0x75316420]  ;;  %v1428_v10 = vld [vmem:[#allocation3 + $0x12] sm:$0xf]  ;;  %v1437_v19 = vld [vmem:[#allocation7 + $0x608] sm:$0xff] }
 0x11e   : > { %1587 = vmatpush.msra.mxu0 %v1441_v59  ;;  %1610 = vmatpush.msra.mxu1 %v1457_v61  ;;  %1537 = vst [vmem:[#allocation1 + $0x1] ss:$2 sm:$0xff] %v1529_v9  ;;  %v1530_v14 = vsel %vm418_vm2, %v1428_v10, %v1522_v1  ;;  %v1486_v18 = vld [vmem:[#allocation7 + $0x790] sm:$0xff]  ;;  %v1453_v20 = vld [vmem:[#allocation7 + $0x688] sm:$0xff]  ;;  %v1436_v23 = vld [vmem:[#allocation7 + $0x600] sm:$0xff] }
 0x11f   : > { %1362 = vmatmul.f32.gmra.mxu2 %v2521_v11  ;;  %1385 = vmatmul.f32.gmra.mxu3 %v2523_v56  ;;  %v1487_v11 = vld [vmem:[#allocation7 + $0x798] sm:$0xff]  ;;  %1539 = vst [vmem:[#allocation1 + $0x10] ss:$2 sm:$0xff] %v1528_v12  ;;  %v1438_v56 = vld [vmem:[#allocation7 + $0x610] sm:$0xff]  ;;  %v1469_v21 = vld [vmem:[#allocation7 + $0x708] sm:$0xff] }
 0x120   : > { %1633 = vmatpush.msra.mxu2 %v1473_v2  ;;  %1656 = vmatpush.msra.mxu3 %v1489_v4  ;;  %1541 = vst [vmem:[#allocation1 + $0x11] ss:$2 sm:$0xff] %v1530_v14  ;;  %v1485_v22 = vld [vmem:[#allocation7 + $0x788] sm:$0xff]  ;;  %v1452_v24 = vld [vmem:[#allocation7 + $0x680] sm:$0xff]  ;;  %v1765_v39 = vld [vmem:[#allocation9 + $0x1f0] sm:$0xff] }
 0x121   : > { %1588 = vmatpush.msra.mxu0 %v1440_v33  ;;  %1611 = vmatpush.msra.mxu1 %v1456_v5  ;;  %v1468_v25 = vld [vmem:[#allocation7 + $0x700] sm:$0xff]  ;;  %v1555_v32 = vld.sshfl [vmem:[#allocation1 + $0x28] sm:$0xff pattern:$0x75316420]  ;;  %v1766_v40 = vld [vmem:[#allocation9 + $0x1f8] sm:$0xff] }
 0x122   : > { %1634 = vmatpush.msra.mxu2 %v1472_v6  ;;  %1657 = vmatpush.msra.mxu3 %v1488_v49  ;;  %v1484_v26 = vld [vmem:[#allocation7 + $0x780] sm:$0xff]  ;;  %v1556_v34 = vld.sshfl [vmem:[#allocation1 + $0x30] sm:$0xff pattern:$0x75316420]  ;;  %v1764_v38 = vld [vmem:[#allocation9 + $0x1e8] sm:$0xff] }
 0x123   : > { %1589 = vmatpush.msra.mxu0 %v1439_v13  ;;  %1612 = vmatpush.msra.mxu1 %v1455_v57  ;;  %v1554_v31 = vld.sshfl [vmem:[#allocation1 + $0x20] sm:$0xff pattern:$0x75316420]  ;;  %v1557_v36 = vld.sshfl [vmem:[#allocation1 + $0x38] sm:$0xff pattern:$0x75316420] }
 0x124   : > { %1635 = vmatpush.msra.mxu2 %v1471_v15  ;;  %1658 = vmatpush.msra.mxu3 %v1487_v11  ;;  %v1763_v37 = vld [vmem:[#allocation9 + $0x1e0] sm:$0xff]  ;;  %v1760_v42 = vld [vmem:[#allocation9 + $0x1c8] sm:$0xff]  ;;  %v1761_v43 = vld [vmem:[#allocation9 + $0x1d0] sm:$0xff] }
 0x125   : > { %1590 = vmatpush.msra.mxu0 %v1438_v56  ;;  %1613 = vmatpush.msra.mxu1 %v1454_v16  ;;  %v1550_v27 = vld.sshfl [vmem:[#allocation1] sm:$0xff pattern:$0x75316420]  ;;  %v1551_v28 = vld.sshfl [vmem:[#allocation1 + $0x8] sm:$0xff pattern:$0x75316420] }
 0x126   : > { %1636 = vmatpush.msra.mxu2 %v1470_v17  ;;  %1659 = vmatpush.msra.mxu3 %v1486_v18  ;;  %v1759_v41 = vld [vmem:[#allocation9 + $0x1c0] sm:$0xff]  ;;  %v1762_v44 = vld [vmem:[#allocation9 + $0x1d8] sm:$0xff]  ;;  %v1756_v46 = vld [vmem:[#allocation9 + $0x1a8] sm:$0xff] }
 0x127   : > { %1591 = vmatpush.msra.mxu0 %v1437_v19  ;;  %1614 = vmatpush.msra.mxu1 %v1453_v20  ;;  %v1552_v29 = vld.sshfl [vmem:[#allocation1 + $0x10] sm:$0xff pattern:$0x75316420]  ;;  %v1553_v30 = vld.sshfl [vmem:[#allocation1 + $0x18] sm:$0xff pattern:$0x75316420] }
 0x128   : > { %1637 = vmatpush.msra.mxu2 %v1469_v21  ;;  %1660 = vmatpush.msra.mxu3 %v1485_v22  ;;  %v1755_v45 = vld [vmem:[#allocation9 + $0x1a0] sm:$0xff]  ;;  %v1757_v47 = vld [vmem:[#allocation9 + $0x1b0] sm:$0xff]  ;;  %v1758_v48 = vld [vmem:[#allocation9 + $0x1b8] sm:$0xff] }
 0x129   : > { %1592 = vmatpush.msra.mxu0 %v1436_v23  ;;  %1615 = vmatpush.msra.mxu1 %v1452_v24  ;;  %v1751_v51 = vld [vmem:[#allocation9 + $0x180] sm:$0xff]  ;;  %v1752_v52 = vld [vmem:[#allocation9 + $0x188] sm:$0xff]  ;;  %v1753_v53 = vld [vmem:[#allocation9 + $0x190] sm:$0xff] }
 0x12a   : > { %1638 = vmatpush.msra.mxu2 %v1468_v25  ;;  %1661 = vmatpush.msra.mxu3 %v1484_v26  ;;  %v1754_v55 = vld [vmem:[#allocation9 + $0x198] sm:$0xff]  ;;  %v1747_v61 = vld [vmem:[#allocation9 + $0x160] sm:$0xff]  ;;  %v1748_v62 = vld [vmem:[#allocation9 + $0x168] sm:$0xff] }
 0x12b   : > { %1593 = vmatmul.f32.vlgmr.msra.gmra.mxu0 %v1550_v27  ;;  %1616 = vmatmul.f32.vlgmr.msra.gmra.mxu1 %v1551_v28  ;;  %v1749_v58 = vld [vmem:[#allocation9 + $0x170] sm:$0xff]  ;;  %v1750_v63 = vld [vmem:[#allocation9 + $0x178] sm:$0xff]  ;;  %v1743_v1 = vld [vmem:[#allocation9 + $0x140] sm:$0xff] }
 0x12c   : > { %1639 = vmatmul.f32.vlgmr.msra.gmra.mxu2 %v1552_v29  ;;  %1662 = vmatmul.f32.vlgmr.msra.gmra.mxu3 %v1553_v30  ;;  %v1744_v2 = vld [vmem:[#allocation9 + $0x148] sm:$0xff]  ;;  %v1745_v4 = vld [vmem:[#allocation9 + $0x150] sm:$0xff]  ;;  %v1746_v33 = vld [vmem:[#allocation9 + $0x158] sm:$0xff] }
 0x12d   : > { %1777 = vmatpush.msrb.mxu0 %v1763_v37  ;;  %1818 = vmatpush.msrb.mxu1 %v1764_v38  ;;  %v1739_v35 = vld [vmem:[#allocation9 + $0x120] sm:$0xff]  ;;  %v1740_v5 = vld [vmem:[#allocation9 + $0x128] sm:$0xff]  ;;  %v1741_v9 = vld [vmem:[#allocation9 + $0x130] sm:$0xff] }
 0x12e   : > { %1859 = vmatpush.msrb.mxu2 %v1765_v39  ;;  %1900 = vmatpush.msrb.mxu3 %v1766_v40  ;;  %v1742_v49 = vld [vmem:[#allocation9 + $0x138] sm:$0xff]  ;;  %v1735_v10 = vld [vmem:[#allocation9 + $0x100] sm:$0xff]  ;;  %v1737_v13 = vld [vmem:[#allocation9 + $0x110] sm:$0xff] }
 0x12f   : > { %1778 = vmatpush.msrb.mxu0 %v1759_v41  ;;  %1819 = vmatpush.msrb.mxu1 %v1760_v42  ;;  %v1738_v57 = vld [vmem:[#allocation9 + $0x118] sm:$0xff]  ;;  %v1731_v27 = vld [vmem:[#allocation9 + $0xe0] sm:$0xff]  ;;  %v1732_v28 = vld [vmem:[#allocation9 + $0xe8] sm:$0xff] }
 0x130   : > { %1860 = vmatpush.msrb.mxu2 %v1761_v43  ;;  %1901 = vmatpush.msrb.mxu3 %v1762_v44  ;;  %v1733_v29 = vld [vmem:[#allocation9 + $0xf0] sm:$0xff]  ;;  %v1730_v37 = vld [vmem:[#allocation9 + $0xd8] sm:$0xff]  ;;  %v1723_v38 = vld [vmem:[#allocation9 + $0xa0] sm:$0xff] }
 0x131   : > { %1779 = vmatpush.msrb.mxu0 %v1755_v45  ;;  %1820 = vmatpush.msrb.mxu1 %v1756_v46  ;;  %v1724_v40 = vld [vmem:[#allocation9 + $0xa8] sm:$0xff]  ;;  %v1725_v41 = vld [vmem:[#allocation9 + $0xb0] sm:$0xff]  ;;  %v1726_v42 = vld [vmem:[#allocation9 + $0xb8] sm:$0xff] }
 0x132   : > { %1861 = vmatpush.msrb.mxu2 %v1757_v47  ;;  %1902 = vmatpush.msrb.mxu3 %v1758_v48  ;;  %v1719_v43 = vld [vmem:[#allocation9 + $0x80] sm:$0xff]  ;;  %v1720_v44 = vld [vmem:[#allocation9 + $0x88] sm:$0xff]  ;;  %v1721_v45 = vld [vmem:[#allocation9 + $0x90] sm:$0xff] }
 0x133   : > { %1596 = vmatmul.f32.gmra.mxu0 %v1554_v31  ;;  %1619 = vmatmul.f32.gmra.mxu1 %v1555_v32  ;;  %v1734_v31 = vld [vmem:[#allocation9 + $0xf8] sm:$0xff]  ;;  %v1727_v32 = vld [vmem:[#allocation9 + $0xc0] sm:$0xff]  ;;  %v1716_v48 = vld [vmem:[#allocation9 + $0x68] sm:$0xff] }
 0x134   : > { %1642 = vmatmul.f32.gmra.mxu2 %v1556_v34  ;;  %1665 = vmatmul.f32.gmra.mxu3 %v1557_v36  ;;  %v1728_v34 = vld [vmem:[#allocation9 + $0xc8] sm:$0xff]  ;;  %v1729_v36 = vld [vmem:[#allocation9 + $0xd0] sm:$0xff]  ;;  %v1722_v46 = vld [vmem:[#allocation9 + $0x98] sm:$0xff] }
 0x135   : > { %1780 = vmatpush.msrb.mxu0 %v1751_v51  ;;  %1821 = vmatpush.msrb.mxu1 %v1752_v52  ;;  %v1715_v47 = vld [vmem:[#allocation9 + $0x60] sm:$0xff]  ;;  %v1717_v51 = vld [vmem:[#allocation9 + $0x70] sm:$0xff]  ;;  %v1718_v52 = vld [vmem:[#allocation9 + $0x78] sm:$0xff] }
 0x136   : > { %1862 = vmatpush.msrb.mxu2 %v1753_v53  ;;  %1903 = vmatpush.msrb.mxu3 %v1754_v55  ;;  %v1711_v53 = vld [vmem:[#allocation9 + $0x40] sm:$0xff]  ;;  %v1712_v55 = vld [vmem:[#allocation9 + $0x48] sm:$0xff] }
 0x137   : > { %1781 = vmatpush.msrb.mxu0 %v1747_v61  ;;  %1822 = vmatpush.msrb.mxu1 %v1748_v62  ;;  %v1713_v61 = vld [vmem:[#allocation9 + $0x50] sm:$0xff]  ;;  %v1714_v62 = vld [vmem:[#allocation9 + $0x58] sm:$0xff] }
 0x138   : > { %1863 = vmatpush.msrb.mxu2 %v1749_v58  ;;  %1904 = vmatpush.msrb.mxu3 %v1750_v63  ;;  %v1707_v58 = vld [vmem:[#allocation9 + $0x20] sm:$0xff]  ;;  %v1708_v63 = vld [vmem:[#allocation9 + $0x28] sm:$0xff] }
 0x139   : > { %1782 = vmatpush.msrb.mxu0 %v1743_v1  ;;  %1823 = vmatpush.msrb.mxu1 %v1744_v2  ;;  %v1710_v1 = vld [vmem:[#allocation9 + $0x38] sm:$0xff]  ;;  %v1703_v2 = vld [vmem:[#allocation9] sm:$0xff] }
 0x13a   : > { %1864 = vmatpush.msrb.mxu2 %v1745_v4  ;;  %1905 = vmatpush.msrb.mxu3 %v1746_v33  ;;  %v1704_v4 = vld [vmem:[#allocation9 + $0x8] sm:$0xff] }
 0x13b   : > { %1783 = vmatpush.msrb.mxu0 %v1739_v35  ;;  %1824 = vmatpush.msrb.mxu1 %v1740_v5  ;;  %v1705_v5 = vld [vmem:[#allocation9 + $0x10] sm:$0xff] }
 0x13c   : > { %1865 = vmatpush.msrb.mxu2 %v1741_v9  ;;  %1906 = vmatpush.msrb.mxu3 %v1742_v49 }
 0x13d   : > { %1784 = vmatpush.msrb.mxu0 %v1735_v10 }
 0x13e   : > { %1866 = vmatpush.msrb.mxu2 %v1737_v13  ;;  %1907 = vmatpush.msrb.mxu3 %v1738_v57 }
 0x13f   : > { %1785 = vmatpush.msrb.mxu0 %v1731_v27 }
 0x140   : > { %1867 = vmatpush.msrb.mxu2 %v1733_v29  ;;  %1908 = vmatpush.msrb.mxu3 %v1734_v31 }
 0x141   : > { %1786 = vmatpush.msrb.mxu0 %v1727_v32 }
 0x142   : > { %1868 = vmatpush.msrb.mxu2 %v1729_v36  ;;  %1909 = vmatpush.msrb.mxu3 %v1730_v37 }
 0x143   : > { %1787 = vmatpush.msrb.mxu0 %v1723_v38 }
 0x144   : > { %1869 = vmatpush.msrb.mxu2 %v1725_v41  ;;  %1910 = vmatpush.msrb.mxu3 %v1726_v42 }
 0x145   : > { %1788 = vmatpush.msrb.mxu0 %v1719_v43 }
 0x146   : > { %1870 = vmatpush.msrb.mxu2 %v1721_v45  ;;  %1911 = vmatpush.msrb.mxu3 %v1722_v46 }
 0x147   : > { %1789 = vmatpush.msrb.mxu0 %v1715_v47 }
 0x148   : > { %1871 = vmatpush.msrb.mxu2 %v1717_v51  ;;  %1912 = vmatpush.msrb.mxu3 %v1718_v52 }
 0x149   : > { %1790 = vmatpush.msrb.mxu0 %v1711_v53 }
 0x14a   : > { %1872 = vmatpush.msrb.mxu2 %v1713_v61  ;;  %1913 = vmatpush.msrb.mxu3 %v1714_v62 }
 0x14b   : > { %1791 = vmatpush.msrb.mxu0 %v1707_v58 }
 0x14c   : > { %1914 = vmatpush.msrb.mxu3 %v1710_v1 }
 0x14d   : > { %1792 = vmatpush.msrb.mxu0 %v1703_v2 }
 0x15c   : > { %v759_v59 = vpop.f32.mrf.mxu0  ;;  %v782_v6 = vpop.f32.mrf.mxu1 }
 0x15d   : > { %v760_v0 = vadd.f32 %v759_v59, %v2482_v54  ;;  %v1736_v54 = vld [vmem:[#allocation9 + $0x108] sm:$0xff] }
 0x15e   : > { %1825 = vmatpush.msrb.mxu1 %v1736_v54 }
 0x15f   : > { %v783_v12 = vadd.f32 %v782_v6, %v760_v0  ;;  %v1709_v0 = vld [vmem:[#allocation9 + $0x30] sm:$0xff]  ;;  %v1706_v6 = vld [vmem:[#allocation9 + $0x18] sm:$0xff] }
 0x160   : > { %1826 = vmatpush.msrb.mxu1 %v1732_v28  ;;  %1873 = vmatpush.msrb.mxu2 %v1709_v0 }
 0x161   : > { %1915 = vmatpush.msrb.mxu3 %v1706_v6 }
 0x162   : > { %1827 = vmatpush.msrb.mxu1 %v1728_v34  ;;  %1874 = vmatpush.msrb.mxu2 %v1705_v5 }
 0x164   : > { %v805_v14 = vpop.f32.mrf.mxu2  ;;  %v828_v11 = vpop.f32.mrf.mxu3  ;;  %1828 = vmatpush.msrb.mxu1 %v1724_v40 }
 0x165   : > { %v806_v15 = vadd.f32 %v805_v14, %v783_v12 }
 0x166   : > { %1829 = vmatpush.msrb.mxu1 %v1720_v44 }
 0x167   : > { %v829_v56 = vadd.f32 %v828_v11, %v806_v15 }
 0x168   : > { %v762_v16 = vpop.f32.mrf.mxu0  ;;  %v785_v21 = vpop.f32.mrf.mxu1  ;;  %1830 = vmatpush.msrb.mxu1 %v1716_v48 }
 0x169   : > { %v836_v17 = vrot.slane %v829_v56, 4  ;;  %v840_v18 = vmax.f32 %v829_v56, 0.0  ;;  %v763_v19 = vadd.f32 %v762_v16, %v2490_v3 }
 0x16a   : > { %1831 = vmatpush.msrb.mxu1 %v1712_v55 }
 0x16b   : > { %v841_v20 = vmax.f32 %v836_v17, 0.0  ;;  %844 = vst [vmem:[#allocation4] sm:$0x1] %v840_v18  ;;  %v786_v22 = vadd.f32 %v785_v21, %v763_v19 }
 0x16c   : > { %845 = vst [vmem:[#allocation4 + $0x1] sm:$0x2] %v840_v18  ;;  %1832 = vmatpush.msrb.mxu1 %v1708_v63 }
 0x16d   : > { %846 = vst [vmem:[#allocation4 + $0x2] sm:$0x4] %v840_v18 }
 0x16e   : > { %847 = vst [vmem:[#allocation4 + $0x3] sm:$0x8] %v840_v18  ;;  %1833 = vmatpush.msrb.mxu1 %v1704_v4 }
 0x16f   : > { %849 = vst [vmem:[#allocation4 + $0x10] sm:$0x1] %v841_v20 }
 0x170   : > { %850 = vst [vmem:[#allocation4 + $0x11] sm:$0x2] %v841_v20 }
 0x171   : > { %v808_v23 = vpop.f32.mrf.mxu2  ;;  %851 = vst [vmem:[#allocation4 + $0x12] sm:$0x4] %v841_v20  ;;  %v831_v25 = vpop.f32.mrf.mxu3 }
 0x172   : > { %v809_v24 = vadd.f32 %v808_v23, %v786_v22  ;;  %852 = vst [vmem:[#allocation4 + $0x13] sm:$0x8] %v841_v20 }
 0x174   : > { %v832_v26 = vadd.f32 %v831_v25, %v809_v24 }
 0x176   : > { %v837_v30 = vrot.slane %v832_v26, 4  ;;  %v842_v3 = vmax.f32 %v832_v26, 0.0 }
 0x178   : > { %v843_v39 = vmax.f32 %v837_v30, 0.0  ;;  %854 = vst [vmem:[#allocation4 + $0x20] sm:$0x1] %v842_v3 }
 0x179   : > { %855 = vst [vmem:[#allocation4 + $0x21] sm:$0x2] %v842_v3 }
 0x17a   : > { %856 = vst [vmem:[#allocation4 + $0x22] sm:$0x4] %v842_v3 }
 0x17b   : > { %857 = vst [vmem:[#allocation4 + $0x23] sm:$0x8] %v842_v3 }
 0x17c   : > { %859 = vst [vmem:[#allocation4 + $0x30] sm:$0x1] %v843_v39 }
 0x17d   : > { %860 = vst [vmem:[#allocation4 + $0x31] sm:$0x2] %v843_v39 }
 0x17e   : > { %861 = vst [vmem:[#allocation4 + $0x32] sm:$0x4] %v843_v39 }
 0x17f   : > { %862 = vst [vmem:[#allocation4 + $0x33] sm:$0x8] %v843_v39  ;;  %v1038_v59 = vpop.f32.mrf.mxu0  ;;  %v1061_v35 = vpop.f32.mrf.mxu1 }
 0x180   : > { %v1039_v33 = vadd.f32 %v1038_v59, %v2511_v60 }
 0x182   : > { %v1062_v9 = vadd.f32 %v1061_v35, %v1039_v33 }
 0x187   : > { %v1084_v49 = vpop.f32.mrf.mxu2  ;;  %v1041_v10 = vpop.f32.mrf.mxu0 }
 0x188   : > { %v1085_v12 = vadd.f32 %v1084_v49, %v1062_v9  ;;  %v1107_v54 = vpop.f32.mrf.mxu3  ;;  %v1042_v57 = vadd.f32 %v1041_v10, %v2518_v8  ;;  %v1064_v15 = vpop.f32.mrf.mxu1 }
 0x18a   : > { %v1108_v13 = vadd.f32 %v1107_v54, %v1085_v12  ;;  %v1065_v56 = vadd.f32 %v1064_v15, %v1042_v57 }
 0x18c   : > { %v1115_v60 = vrot.slane %v1108_v13, 4  ;;  %v1119_v14 = vmax.f32 %v1108_v13, 0.0 }
 0x18e   : > { %v1120_v11 = vmax.f32 %v1115_v60, 0.0  ;;  %1123 = vst [vmem:[#allocation4 + $0x1] sm:$0x1] %v1119_v14 }
 0x18f   : > { %1124 = vst [vmem:[#allocation4 + $0x2] sm:$0x2] %v1119_v14  ;;  %v1087_v16 = vpop.f32.mrf.mxu2 }
 0x190   : > { %1125 = vst [vmem:[#allocation4 + $0x3] sm:$0x4] %v1119_v14  ;;  %v1088_v17 = vadd.f32 %v1087_v16, %v1065_v56  ;;  %v1110_v18 = vpop.f32.mrf.mxu3 }
 0x191   : > { %1126 = vst [vmem:[#allocation4 + $0x4] sm:$0x8] %v1119_v14  ;;  %v1314_v19 = vpop.f32.mrf.mxu0  ;;  %v1337_v24 = vpop.f32.mrf.mxu1 }
 0x192   : > { %1127 = vst [vmem:[#allocation4 + $0x11] sm:$0x1] %v1120_v11  ;;  %v1111_v20 = vadd.f32 %v1110_v18, %v1088_v17  ;;  %v1315_v8 = vadd.f32 %v1314_v19, %v2534_v7  ;;  %v2157_v7 = vld [vmem:[%s2641_s5] ss:$0 sm:$0xff] }
 0x193   : > { %1128 = vst [vmem:[#allocation4 + $0x12] sm:$0x2] %v1120_v11 }
 0x194   : > { %1129 = vst [vmem:[#allocation4 + $0x13] sm:$0x4] %v1120_v11  ;;  %v1116_v21 = vrot.slane %v1111_v20, 4  ;;  %v1121_v22 = vmax.f32 %v1111_v20, 0.0  ;;  %v1338_v26 = vadd.f32 %v1337_v24, %v1315_v8 }
 0x195   : > { %1130 = vst [vmem:[#allocation4 + $0x14] sm:$0x8] %v1120_v11  ;;  %v1767_v11 = vld [vmem:[%s2642_s6] sm:$0xf] }
 0x196   : > { %v1122_v23 = vmax.f32 %v1116_v21, 0.0  ;;  %1131 = vst [vmem:[#allocation4 + $0x21] sm:$0x1] %v1121_v22  ;;  %v2555_v56 = vperm.slane %v1767_v11, 0  ;;  %v2557_v16 = vperm.slane %v1767_v11, 1  ;;  %v2562_v21 = vperm.slane %v1767_v11, 2 }
 0x197   : > { %1132 = vst [vmem:[#allocation4 + $0x22] sm:$0x2] %v1121_v22 }
 0x198   : > { %1133 = vst [vmem:[#allocation4 + $0x23] sm:$0x4] %v1121_v22  ;;  %v1695_v25 = vld [vmem:[#allocation4] sm:$0xff] }
 0x199   : > { %1134 = vst [vmem:[#allocation4 + $0x24] sm:$0x8] %v1121_v22  ;;  %1793 = vmatmul.f32.vlgmr.msrb.gmra.mxu0 %v1695_v25  ;;  %1834 = vmatmul.f32.vlgmr.msrb.gmra.mxu1 %v1695_v25  ;;  %v1317_v27 = vpop.f32.mrf.mxu0  ;;  %v1340_v36 = vpop.f32.mrf.mxu1  ;;  %v2564_v22 = vperm.slane %v1767_v11, 3 }
 0x19a   : > { %1135 = vst [vmem:[#allocation4 + $0x31] sm:$0x1] %v1122_v23  ;;  %1875 = vmatmul.f32.vlgmr.msrb.gmra.mxu2 %v1695_v25  ;;  %1916 = vmatmul.f32.vlgmr.msrb.gmra.mxu3 %v1695_v25  ;;  %v1360_v28 = vpop.f32.mrf.mxu2  ;;  %v1383_v29 = vpop.f32.mrf.mxu3  ;;  %v1318_v31 = vadd.f32 %v1317_v27, %v2539_v50 }
 0x19b   : > { %1136 = vst [vmem:[#allocation4 + $0x32] sm:$0x2] %v1122_v23  ;;  %v1361_v30 = vadd.f32 %v1360_v28, %v1338_v26 }
 0x19c   : > { %1137 = vst [vmem:[#allocation4 + $0x33] sm:$0x4] %v1122_v23  ;;  %v1341_v38 = vadd.f32 %v1340_v36, %v1318_v31  ;;  %v1697_v54 = vld [vmem:[#allocation4 + $0x10] sm:$0xff] }
 0x19d   : > { %1138 = vst [vmem:[#allocation4 + $0x34] sm:$0x8] %v1122_v23  ;;  %v1384_v3 = vadd.f32 %v1383_v29, %v1361_v30 }
 0x19e   : > { %1566 = vst [vmem:[#allocation1] ss:$2 sm:$0xff] %v2157_v7 }
 0x19f   : > { %v1391_v32 = vrot.slane %v1384_v3, 4  ;;  %v1395_v34 = vmax.f32 %v1384_v3, 0.0  ;;  %1568 = vst [vmem:[#allocation1 + $0x1] ss:$2 sm:$0xff] %v2157_v7 }
 0x1a0   : > { %1570 = vst [vmem:[#allocation1 + $0x10] ss:$2 sm:$0xff] %v2157_v7  ;;  %v1699_v57 = vld [vmem:[#allocation4 + $0x20] sm:$0xff] }
 0x1a1   : > { %v1396_v37 = vmax.f32 %v1391_v32, 0.0  ;;  %1400 = vst [vmem:[#allocation4 + $0x8] sm:$0x1] %v1395_v34 }
 0x1a2   : > { %1401 = vst [vmem:[#allocation4 + $0x9] sm:$0x2] %v1395_v34  ;;  %v1363_v39 = vpop.f32.mrf.mxu2  ;;  %v1386_v41 = vpop.f32.mrf.mxu3 }
 0x1a3   : > { %1402 = vst [vmem:[#allocation4 + $0xa] sm:$0x4] %v1395_v34  ;;  %v1364_v40 = vadd.f32 %v1363_v39, %v1341_v38 }
 0x1a4   : > { %1403 = vst [vmem:[#allocation4 + $0xb] sm:$0x8] %v1395_v34  ;;  %v1701_v14 = vld [vmem:[#allocation4 + $0x30] sm:$0xff] }
 0x1a5   : > { %1405 = vst [vmem:[#allocation4 + $0x18] sm:$0x1] %v1396_v37  ;;  %v1387_v42 = vadd.f32 %v1386_v41, %v1364_v40 }
 0x1a6   : > { %1406 = vst [vmem:[#allocation4 + $0x19] sm:$0x2] %v1396_v37  ;;  %v1573_v43 = vld.sshfl [vmem:[#allocation1] sm:$0xff pattern:$0x75316420] }
 0x1a7   : > { %1407 = vst [vmem:[#allocation4 + $0x1a] sm:$0x4] %v1396_v37  ;;  %v1392_v50 = vrot.slane %v1387_v42, 4  ;;  %v1397_v44 = vmax.f32 %v1387_v42, 0.0 }
 0x1a8   : > { %1408 = vst [vmem:[#allocation4 + $0x1b] sm:$0x8] %v1396_v37  ;;  %v1594_v45 = vpop.f32.mrf.mxu0  ;;  %v1617_v48 = vpop.f32.mrf.mxu1 }
 0x1a9   : > { %v1398_v46 = vmax.f32 %v1392_v50, 0.0  ;;  %1410 = vst [vmem:[#allocation4 + $0x28] sm:$0x1] %v1397_v44  ;;  %v1595_v47 = vadd.f32 %v1594_v45, %v1573_v43 }
 0x1aa   : > { %1411 = vst [vmem:[#allocation4 + $0x29] sm:$0x2] %v1397_v44 }
 0x1ab   : > { %1412 = vst [vmem:[#allocation4 + $0x2a] sm:$0x4] %v1397_v44  ;;  %v1618_v51 = vadd.f32 %v1617_v48, %v1595_v47 }
 0x1ac   : > { %1413 = vst [vmem:[#allocation4 + $0x2b] sm:$0x8] %v1397_v44 }
 0x1ad   : > { %1415 = vst [vmem:[#allocation4 + $0x38] sm:$0x1] %v1398_v46 }
 0x1ae   : > { %1416 = vst [vmem:[#allocation4 + $0x39] sm:$0x2] %v1398_v46 }
 0x1af   : > { %1417 = vst [vmem:[#allocation4 + $0x3a] sm:$0x4] %v1398_v46  ;;  %v1640_v52 = vpop.f32.mrf.mxu2  ;;  %v1663_v55 = vpop.f32.mrf.mxu3 }
 0x1b0   : > { %1418 = vst [vmem:[#allocation4 + $0x3b] sm:$0x8] %v1398_v46  ;;  %v1641_v53 = vadd.f32 %v1640_v52, %v1618_v51  ;;  %v1597_v63 = vpop.f32.mrf.mxu0  ;;  %v1620_v2 = vpop.f32.mrf.mxu1 }
 0x1b1   : > { %1572 = vst [vmem:[#allocation1 + $0x11] ss:$2 sm:$0xff] %v2157_v7 }
 0x1b2   : > { %v1664_v59 = vadd.f32 %v1663_v55, %v1641_v53 }
 0x1b4   : > { %v1671_v61 = vrot.slane %v1664_v59, 4  ;;  %v1675_v62 = vmax.f32 %v1664_v59, 0.0 }
 0x1b6   : > { %v1676_v58 = vmax.f32 %v1671_v61, 0.0  ;;  %1679 = vst [vmem:[#allocation4 + $0x9] sm:$0x1] %v1675_v62 }
 0x1b7   : > { %1680 = vst [vmem:[#allocation4 + $0xa] sm:$0x2] %v1675_v62  ;;  %v1643_v4 = vpop.f32.mrf.mxu2  ;;  %v1666_v5 = vpop.f32.mrf.mxu3 }
 0x1b8   : > { %1681 = vst [vmem:[#allocation4 + $0xb] sm:$0x4] %v1675_v62  ;;  %v1574_v0 = vld.sshfl [vmem:[#allocation1 + $0x10] sm:$0xff pattern:$0x75316420] }
 0x1b9   : > { %1682 = vst [vmem:[#allocation4 + $0xc] sm:$0x8] %v1675_v62  ;;  %v1598_v1 = vadd.f32 %v1597_v63, %v1574_v0 }
 0x1ba   : > { %1683 = vst [vmem:[#allocation4 + $0x19] sm:$0x1] %v1676_v58 }
 0x1bb   : > { %1684 = vst [vmem:[#allocation4 + $0x1a] sm:$0x2] %v1676_v58  ;;  %v1621_v33 = vadd.f32 %v1620_v2, %v1598_v1 }
 0x1bc   : > { %1685 = vst [vmem:[#allocation4 + $0x1b] sm:$0x4] %v1676_v58 }
 0x1bd   : > { %1686 = vst [vmem:[#allocation4 + $0x1c] sm:$0x8] %v1676_v58  ;;  %v1644_v35 = vadd.f32 %v1643_v4, %v1621_v33 }
 0x1bf   : > { %v1667_v6 = vadd.f32 %v1666_v5, %v1644_v35 }
 0x1c0   : > { %v1696_v9 = vld [vmem:[#allocation4 + $0x8] sm:$0xff] }
 0x1c1   : > { %v1672_v49 = vrot.slane %v1667_v6, 4  ;;  %v1677_v10 = vmax.f32 %v1667_v6, 0.0  ;;  %1796 = vmatmul.f32.gmra.mxu0 %v1696_v9  ;;  %1837 = vmatmul.f32.gmra.mxu1 %v1696_v9 }
 0x1c2   : > { %1878 = vmatmul.f32.gmra.mxu2 %v1696_v9  ;;  %1919 = vmatmul.f32.gmra.mxu3 %v1696_v9 }
 0x1c3   : > { %v1678_v12 = vmax.f32 %v1672_v49, 0.0  ;;  %1687 = vst [vmem:[#allocation4 + $0x29] sm:$0x1] %v1677_v10 }
 0x1c4   : > { %1688 = vst [vmem:[#allocation4 + $0x2a] sm:$0x2] %v1677_v10  ;;  %v1698_v13 = vld [vmem:[#allocation4 + $0x18] sm:$0xff] }
 0x1c5   : > { %1689 = vst [vmem:[#allocation4 + $0x2b] sm:$0x4] %v1677_v10 }
 0x1c6   : > { %1690 = vst [vmem:[#allocation4 + $0x2c] sm:$0x8] %v1677_v10 }
 0x1c7   : > { %1691 = vst [vmem:[#allocation4 + $0x39] sm:$0x1] %v1678_v12 }
 0x1c8   : > { %1692 = vst [vmem:[#allocation4 + $0x3a] sm:$0x2] %v1678_v12 }
 0x1c9   : > { %1693 = vst [vmem:[#allocation4 + $0x3b] sm:$0x4] %v1678_v12  ;;  %1799 = vmatmul.f32.gmra.mxu0 %v1697_v54  ;;  %1840 = vmatmul.f32.gmra.mxu1 %v1697_v54 }
 0x1ca   : > { %1694 = vst [vmem:[#allocation4 + $0x3c] sm:$0x8] %v1678_v12  ;;  %1881 = vmatmul.f32.gmra.mxu2 %v1697_v54  ;;  %1922 = vmatmul.f32.gmra.mxu3 %v1697_v54 }
 0x1cd   : > { %v1700_v60 = vld [vmem:[#allocation4 + $0x28] sm:$0xff] }
 0x1d1   : > { %1802 = vmatmul.f32.gmra.mxu0 %v1698_v13  ;;  %1843 = vmatmul.f32.gmra.mxu1 %v1698_v13  ;;  %v1702_v15 = vld [vmem:[#allocation4 + $0x38] sm:$0xff] }
 0x1d2   : > { %1884 = vmatmul.f32.gmra.mxu2 %v1698_v13  ;;  %1925 = vmatmul.f32.gmra.mxu3 %v1698_v13 }
 0x1d9   : > { %1805 = vmatmul.f32.gmra.mxu0 %v1699_v57  ;;  %1846 = vmatmul.f32.gmra.mxu1 %v1699_v57 }
 0x1da   : > { %1887 = vmatmul.f32.gmra.mxu2 %v1699_v57  ;;  %1928 = vmatmul.f32.gmra.mxu3 %v1699_v57 }
 0x1e1   : > { %1808 = vmatmul.f32.gmra.mxu0 %v1700_v60  ;;  %1849 = vmatmul.f32.gmra.mxu1 %v1700_v60 }
 0x1e2   : > { %1890 = vmatmul.f32.gmra.mxu2 %v1700_v60  ;;  %1931 = vmatmul.f32.gmra.mxu3 %v1700_v60 }
 0x1e9   : > { %1811 = vmatmul.f32.gmra.mxu0 %v1701_v14  ;;  %1852 = vmatmul.f32.gmra.mxu1 %v1701_v14 }
 0x1ea   : > { %1893 = vmatmul.f32.gmra.mxu2 %v1701_v14  ;;  %1934 = vmatmul.f32.gmra.mxu3 %v1701_v14 }
 0x1f1   : > { %1814 = vmatmul.f32.gmra.mxu0 %v1702_v15  ;;  %1855 = vmatmul.f32.gmra.mxu1 %v1702_v15 }
 0x1f2   : > { %1896 = vmatmul.f32.gmra.mxu2 %v1702_v15  ;;  %1937 = vmatmul.f32.gmra.mxu3 %v1702_v15 }
 0x216   : > { %v1794_v17 = vpop.f32.mrf.mxu0  ;;  %v1835_v18 = vpop.f32.mrf.mxu1 }
 0x217   : > { %v1795_v19 = vadd.f32 %v1794_v17, %v2555_v56  ;;  %v1836_v20 = vadd.f32 %v1835_v18, %v2557_v16 }
 0x219   : > { %2158 = vtanh.f32 %v1795_v19 }
 0x21a   : > { %2160 = vtanh.f32 %v1836_v20 }
 0x21d   : > { %v1876_v8 = vpop.f32.mrf.mxu2  ;;  %v1917_v23 = vpop.f32.mrf.mxu3 }
 0x21e   : > { %v1877_v24 = vadd.f32 %v1876_v8, %v2562_v21  ;;  %v1918_v25 = vadd.f32 %v1917_v23, %v2564_v22 }
 0x21f   : > { %v2159_v26 = vpop.eup %2158 }
 0x220   : > { %v2161_v27 = vpop.eup %2160  ;;  %1973 = vst [vmem:[%s2569_s22] sm:$0xff] %v2159_v26  ;;  %2162 = vtanh.f32 %v1877_v24 }
 0x221   : > { %1974 = vst [vmem:[%s2569_s22 + $0x8] sm:$0xff] %v2161_v27  ;;  %2164 = vtanh.f32 %v1918_v25 }
 0x226   : > { %v2163_v28 = vpop.eup %2162 }
 0x227   : > { %v2165_v29 = vpop.eup %2164  ;;  %1975 = vst [vmem:[%s2569_s22 + $0x10] sm:$0xff] %v2163_v28 }
 0x228   : > { %1976 = vst [vmem:[%s2569_s22 + $0x18] sm:$0xff] %v2165_v29 }
 0x23e   : > { %v1797_v7 = vpop.f32.mrf.mxu0  ;;  %v1838_v30 = vpop.f32.mrf.mxu1 }
 0x23f   : > { %v1798_v3 = vadd.f32 %v1797_v7, %v2555_v56  ;;  %v1839_v31 = vadd.f32 %v1838_v30, %v2557_v16 }
 0x241   : > { %2166 = vtanh.f32 %v1798_v3 }
 0x242   : > { %2168 = vtanh.f32 %v1839_v31 }
 0x245   : > { %v1879_v32 = vpop.f32.mrf.mxu2  ;;  %v1920_v34 = vpop.f32.mrf.mxu3 }
 0x246   : > { %v1880_v36 = vadd.f32 %v1879_v32, %v2562_v21  ;;  %v1921_v37 = vadd.f32 %v1920_v34, %v2564_v22  ;;  %v1800_v38 = vpop.f32.mrf.mxu0  ;;  %v1841_v39 = vpop.f32.mrf.mxu1 }
 0x247   : > { %v2167_v40 = vpop.eup %2166  ;;  %v1801_v41 = vadd.f32 %v1800_v38, %v2555_v56  ;;  %v1842_v42 = vadd.f32 %v1841_v39, %v2557_v16 }
 0x248   : > { %v2169_v43 = vpop.eup %2168  ;;  %1977 = vst [vmem:[%s2569_s22 + $0x20] sm:$0xff] %v2167_v40  ;;  %2170 = vtanh.f32 %v1880_v36 }
 0x249   : > { %1978 = vst [vmem:[%s2569_s22 + $0x28] sm:$0xff] %v2169_v43  ;;  %2172 = vtanh.f32 %v1921_v37 }
 0x24a   : > { %2174 = vtanh.f32 %v1801_v41 }
 0x24b   : > { %2176 = vtanh.f32 %v1842_v42 }
 0x24d   : > { %v1882_v50 = vpop.f32.mrf.mxu2  ;;  %v1923_v44 = vpop.f32.mrf.mxu3 }
 0x24e   : > { %v2171_v45 = vpop.eup %2170  ;;  %v1883_v46 = vadd.f32 %v1882_v50, %v2562_v21  ;;  %v1924_v47 = vadd.f32 %v1923_v44, %v2564_v22  ;;  %v1803_v48 = vpop.f32.mrf.mxu0 }
 0x24f   : > { %v1844_v51 = vpop.f32.mrf.mxu1  ;;  %v2173_v52 = vpop.eup %2172  ;;  %1979 = vst [vmem:[%s2569_s22 + $0x30] sm:$0xff] %v2171_v45  ;;  %v1804_v53 = vadd.f32 %v1803_v48, %v2555_v56 }
 0x250   : > { %v1845_v55 = vadd.f32 %v1844_v51, %v2557_v16  ;;  %v2175_v59 = vpop.eup %2174  ;;  %1980 = vst [vmem:[%s2569_s22 + $0x38] sm:$0xff] %v2173_v52  ;;  %2178 = vtanh.f32 %v1883_v46 }
 0x251   : > { %v2177_v61 = vpop.eup %2176  ;;  %1981 = vst [vmem:[%s2569_s22 + $0x40] sm:$0xff] %v2175_v59  ;;  %2180 = vtanh.f32 %v1924_v47 }
 0x252   : > { %1982 = vst [vmem:[%s2569_s22 + $0x48] sm:$0xff] %v2177_v61  ;;  %2182 = vtanh.f32 %v1804_v53 }
 0x253   : > { %2184 = vtanh.f32 %v1845_v55 }
 0x255   : > { %v1885_v62 = vpop.f32.mrf.mxu2  ;;  %v1926_v58 = vpop.f32.mrf.mxu3 }
 0x256   : > { %v2179_v63 = vpop.eup %2178  ;;  %v1886_v0 = vadd.f32 %v1885_v62, %v2562_v21  ;;  %v1927_v1 = vadd.f32 %v1926_v58, %v2564_v22  ;;  %v1806_v2 = vpop.f32.mrf.mxu0 }
 0x257   : > { %v1847_v4 = vpop.f32.mrf.mxu1  ;;  %v2181_v33 = vpop.eup %2180  ;;  %1983 = vst [vmem:[%s2569_s22 + $0x50] sm:$0xff] %v2179_v63  ;;  %v1807_v35 = vadd.f32 %v1806_v2, %v2555_v56 }
 0x258   : > { %v1848_v5 = vadd.f32 %v1847_v4, %v2557_v16  ;;  %v2183_v6 = vpop.eup %2182  ;;  %1984 = vst [vmem:[%s2569_s22 + $0x58] sm:$0xff] %v2181_v33  ;;  %2186 = vtanh.f32 %v1886_v0 }
 0x259   : > { %v2185_v9 = vpop.eup %2184  ;;  %1985 = vst [vmem:[%s2569_s22 + $0x60] sm:$0xff] %v2183_v6  ;;  %2188 = vtanh.f32 %v1927_v1 }
 0x25a   : > { %1986 = vst [vmem:[%s2569_s22 + $0x68] sm:$0xff] %v2185_v9  ;;  %2190 = vtanh.f32 %v1807_v35 }
 0x25b   : > { %2192 = vtanh.f32 %v1848_v5 }
 0x25d   : > { %v1888_v49 = vpop.f32.mrf.mxu2  ;;  %v1929_v10 = vpop.f32.mrf.mxu3 }
 0x25e   : > { %v2187_v12 = vpop.eup %2186  ;;  %v1889_v54 = vadd.f32 %v1888_v49, %v2562_v21  ;;  %v1930_v13 = vadd.f32 %v1929_v10, %v2564_v22  ;;  %v1809_v57 = vpop.f32.mrf.mxu0 }
 0x25f   : > { %v1850_v60 = vpop.f32.mrf.mxu1  ;;  %v2189_v14 = vpop.eup %2188  ;;  %1987 = vst [vmem:[%s2569_s22 + $0x70] sm:$0xff] %v2187_v12  ;;  %v1810_v15 = vadd.f32 %v1809_v57, %v2555_v56 }
 0x260   : > { %v1851_v11 = vadd.f32 %v1850_v60, %v2557_v16  ;;  %v2191_v17 = vpop.eup %2190  ;;  %1988 = vst [vmem:[%s2569_s22 + $0x78] sm:$0xff] %v2189_v14  ;;  %2194 = vtanh.f32 %v1889_v54 }
 0x261   : > { %v2193_v18 = vpop.eup %2192  ;;  %1989 = vst [vmem:[%s2569_s22 + $0x80] sm:$0xff] %v2191_v17  ;;  %2196 = vtanh.f32 %v1930_v13 }
 0x262   : > { %1990 = vst [vmem:[%s2569_s22 + $0x88] sm:$0xff] %v2193_v18  ;;  %2198 = vtanh.f32 %v1810_v15 }
 0x263   : > { %2200 = vtanh.f32 %v1851_v11 }
 0x265   : > { %v1891_v19 = vpop.f32.mrf.mxu2  ;;  %v1932_v20 = vpop.f32.mrf.mxu3 }
 0x266   : > { %v2195_v8 = vpop.eup %2194  ;;  %v1892_v23 = vadd.f32 %v1891_v19, %v2562_v21  ;;  %v1933_v24 = vadd.f32 %v1932_v20, %v2564_v22  ;;  %v1812_v25 = vpop.f32.mrf.mxu0 }
 0x267   : > { %v1853_v26 = vpop.f32.mrf.mxu1  ;;  %v2197_v27 = vpop.eup %2196  ;;  %1991 = vst [vmem:[%s2569_s22 + $0x90] sm:$0xff] %v2195_v8  ;;  %v1813_v28 = vadd.f32 %v1812_v25, %v2555_v56 }
 0x268   : > { %v1854_v29 = vadd.f32 %v1853_v26, %v2557_v16  ;;  %v2199_v7 = vpop.eup %2198  ;;  %1992 = vst [vmem:[%s2569_s22 + $0x98] sm:$0xff] %v2197_v27  ;;  %2202 = vtanh.f32 %v1892_v23 }
 0x269   : > { %v2201_v30 = vpop.eup %2200  ;;  %1993 = vst [vmem:[%s2569_s22 + $0xa0] sm:$0xff] %v2199_v7  ;;  %2204 = vtanh.f32 %v1933_v24 }
 0x26a   : > { %1994 = vst [vmem:[%s2569_s22 + $0xa8] sm:$0xff] %v2201_v30  ;;  %2206 = vtanh.f32 %v1813_v28 }
 0x26b   : > { %2208 = vtanh.f32 %v1854_v29 }
 0x26d   : > { %v1894_v3 = vpop.f32.mrf.mxu2  ;;  %v1935_v31 = vpop.f32.mrf.mxu3 }
 0x26e   : > { %v2203_v32 = vpop.eup %2202  ;;  %v1895_v34 = vadd.f32 %v1894_v3, %v2562_v21  ;;  %v1936_v36 = vadd.f32 %v1935_v31, %v2564_v22  ;;  %v1815_v37 = vpop.f32.mrf.mxu0 }
 0x26f   : > { %v1856_v38 = vpop.f32.mrf.mxu1  ;;  %v2205_v39 = vpop.eup %2204  ;;  %1995 = vst [vmem:[%s2569_s22 + $0xb0] sm:$0xff] %v2203_v32  ;;  %v1816_v40 = vadd.f32 %v1815_v37, %v2555_v56 }
 0x270   : > { %v1857_v41 = vadd.f32 %v1856_v38, %v2557_v16  ;;  %v2207_v42 = vpop.eup %2206  ;;  %1996 = vst [vmem:[%s2569_s22 + $0xb8] sm:$0xff] %v2205_v39  ;;  %2210 = vtanh.f32 %v1895_v34 }
 0x271   : > { %v2209_v43 = vpop.eup %2208  ;;  %1997 = vst [vmem:[%s2569_s22 + $0xc0] sm:$0xff] %v2207_v42  ;;  %2212 = vtanh.f32 %v1936_v36 }
 0x272   : > { %1998 = vst [vmem:[%s2569_s22 + $0xc8] sm:$0xff] %v2209_v43  ;;  %2214 = vtanh.f32 %v1816_v40 }
 0x273   : > { %2216 = vtanh.f32 %v1857_v41 }
 0x275   : > { %v1897_v50 = vpop.f32.mrf.mxu2  ;;  %v1938_v44 = vpop.f32.mrf.mxu3 }
 0x276   : > { %v2211_v56 = vpop.eup %2210  ;;  %v1898_v16 = vadd.f32 %v1897_v50, %v2562_v21  ;;  %v1939_v45 = vadd.f32 %v1938_v44, %v2564_v22 }
 0x277   : > { %v2213_v46 = vpop.eup %2212  ;;  %1999 = vst [vmem:[%s2569_s22 + $0xd0] sm:$0xff] %v2211_v56 }
 0x278   : > { %v2215_v47 = vpop.eup %2214  ;;  %2000 = vst [vmem:[%s2569_s22 + $0xd8] sm:$0xff] %v2213_v46  ;;  %2218 = vtanh.f32 %v1898_v16 }
 0x279   : > { %v2217_v48 = vpop.eup %2216  ;;  %2001 = vst [vmem:[%s2569_s22 + $0xe0] sm:$0xff] %v2215_v47  ;;  %2220 = vtanh.f32 %v1939_v45 }
 0x27a   : > { %2002 = vst [vmem:[%s2569_s22 + $0xe8] sm:$0xff] %v2217_v48 }
 0x27e   : > { %v2219_v51 = vpop.eup %2218 }
 0x27f   : > { %v2221_v52 = vpop.eup %2220  ;;  %2003 = vst [vmem:[%s2569_s22 + $0xf0] sm:$0xff] %v2219_v51 }
 0x280   : > { %2004 = vst [vmem:[%s2569_s22 + $0xf8] sm:$0xff] %v2221_v52 }
 0x281 PF: > { %s19_s24 = sadd.s32 1, %s2326_s24  }
 0x282   : > { %p16_p7 = scmp.ge.s32.totalorder %s19_s24, 4  }
 0x284   :  { %18 = sbr.rel (!%p16_p7) target bundleno = 2 (0x2), region = 147 }
 0x289   :  { %2026 = vsyncpa [#allocation6], 1 }
 0x28a   :  { %2028 = vsyncpa [#allocation6 + $0x1], 1 }
 0x28b   :  { %2029 = vsyncpa [#allocation8], 1 }

</bundles_post_ra>
